<compile_context>
chip_gen: v5e
topology: v5e:2x2
jax: 0.10.0
libtpu: 0.0.40
codegen_flags: <defaults>
</compile_context>

<pallas_src>
import functools
import math

import jax
import jax.numpy as jnp
from jax.experimental import pallas as pl
from jax.experimental.pallas import tpu as pltpu


def _round_up(v, m):
    return (v + m - 1) // m * m


def _pad_axis(a, axis, target):
    pad = target - a.shape[axis]
    if pad == 0:
        return a
    widths = [(0, 0)] * a.ndim
    widths[axis] = (0, pad)
    return jnp.pad(a, widths)


def _attn_lora_kernel(
    x_ref,       # (N_pad, C_pad)        one batch element, bf16
    wqkv_ref,    # (C_pad, 3*C_pad)      fused pre-transposed Q|K|V weight (Q pre-scaled), bf16
    bqkv_ref,    # (1, 3*C_pad)          fused Q|K|V bias (Q pre-scaled), f32
    aqkv_ref,    # (C_pad, 3r)           fused LoRA down-projection, bf16
    uqkv_ref,    # (3r, 3*C_pad)         block-diag LoRA up (lora_s & Q-scale folded), bf16
    wo_ref,      # (H, D, C_pad)         output projection, per-head packed, bf16
    bo_ref,      # (1, C_pad)            output bias, f32
    o_ref,       # (N_pad, C_pad)        f32
    *, num_heads, head_dim, c_pad, n_tokens,
):
    H, D = num_heads, head_dim
    xb = x_ref[...]                                                   # bf16 already

    # Fused QKV projection: one wide matmul (scale + bias already folded in).
    qkv = jnp.dot(xb, wqkv_ref[...], preferred_element_type=jnp.float32)
    qkv = qkv + bqkv_ref[...]

    # Fused LoRA path: (N,C)x(C,3r) down, then block-diagonal (3r,3C) up.
    low = jnp.dot(xb, aqkv_ref[...], preferred_element_type=jnp.float32)
    qkv = qkv + jnp.dot(low.astype(jnp.bfloat16), uqkv_ref[...],
                        preferred_element_type=jnp.float32)           # (N_pad, 3*C_pad)

    qkv_bf = qkv.astype(jnp.bfloat16)

    def split_heads(col0):
        # (N, H*D) slab -> (H, N, D) with the head axis leading so attention is
        # one batched einsum.  Static lane slices + stack (no lane-splitting
        # reshape for D < 128).
        return jnp.stack(
            [qkv_bf[:, col0 + h * D: col0 + (h + 1) * D] for h in range(H)],
            axis=0)

    qh = split_heads(0)
    kh = split_heads(c_pad)
    vh = split_heads(2 * c_pad)

    # Scores already scaled by 1/sqrt(D) via the Q weights.
    scores = jnp.einsum("hnd,hmd->hnm", qh, kh,
                        preferred_element_type=jnp.float32)           # (H, N_pad, N_pad)
    n_pad = scores.shape[-1]
    if n_tokens != n_pad:
        # Mask padded key columns with a large negative before max/exp.
        key_ids = jax.lax.broadcasted_iota(jnp.int32, (1, 1, n_pad), 2)
        scores = jnp.where(key_ids < n_tokens, scores, jnp.float32(-1e30))

    scores = scores - jnp.max(scores, axis=-1, keepdims=True)
    p = jnp.exp(scores)                                               # f32 softmax
    p = p * pl.reciprocal(jnp.sum(p, axis=-1, keepdims=True), approx=True)
    ctx = jnp.einsum("hnm,hmd->hnd", p.astype(jnp.bfloat16), vh,
                     preferred_element_type=jnp.float32)              # (H, N_pad, D)
    ctx_bf = ctx.astype(jnp.bfloat16)

    # Output projection without concatenating heads: accumulate per-head
    # (N,D)x(D,C_pad) partials straight into the f32 output slab.
    acc = jnp.dot(ctx_bf[0], wo_ref[0], preferred_element_type=jnp.float32)
    for h in range(1, H):
        acc = acc + jnp.dot(ctx_bf[h], wo_ref[h],
                            preferred_element_type=jnp.float32)
    o_ref[...] = (acc + bo_ref[...]).astype(o_ref.dtype)


def attention_with_lora(x, params, *, num_heads, rank, lora_s=1.0):
    """x: (B, N, C) float32. params: PyTorch-layout weights (see make_params)."""
    B, N, C = x.shape
    assert C % num_heads == 0
    head_dim = C // num_heads
    C_pad = _round_up(C, 128)     # lane-dense; ViT-B C=768 already aligned
    N_pad = _round_up(N, 128)     # lane-dense scores & aligned matmul M dims
    # Padded weight rows/cols and bias entries are zero and padded output
    # columns are sliced off; this relies on H*D == C <= C_pad.
    assert num_heads * head_dim == C and C <= C_pad

    r3 = 3 * rank
    wdt = jnp.bfloat16            # MXU-native operand dtype; accumulation stays f32
    scale = 1.0 / math.sqrt(head_dim)
    gain = {"q": scale, "k": 1.0, "v": 1.0}   # fold 1/sqrt(D) into the Q path

    # --- pack / pre-transpose / pre-scale all weights once ---------------------
    # NOTE: for pure inference one could additionally fold W_eff = W + s*(B@A);
    # the LoRA path is kept explicit (adapters are the trainable/hot-swap part)
    # but fully fused, so it costs only two extra rank-3r matmuls per step.
    w_qkv = jnp.concatenate(
        [_pad_axis(_pad_axis(params[f"w_{p}"].T * gain[p], 0, C_pad), 1, C_pad)
         for p in ("q", "k", "v")], axis=1).astype(wdt)               # (C_pad, 3*C_pad)
    b_qkv = jnp.concatenate(
        [_pad_axis(params[f"b_{p}"] * gain[p], 1, C_pad) for p in ("q", "k", "v")],
        axis=1).astype(jnp.float32)                                   # (1, 3*C_pad)
    a_qkv = jnp.concatenate(
        [_pad_axis(params[f"lora_a_{p}"].T, 0, C_pad) for p in ("q", "k", "v")],
        axis=1).astype(wdt)                                           # (C_pad, 3r)
    ups = [_pad_axis(params[f"lora_b_{p}"].T * (lora_s * gain[p]), 1, C_pad)
           for p in ("q", "k", "v")]                                  # (rank, C_pad) each
    u_qkv = jnp.concatenate(
        [jnp.concatenate(
            [ups[i] if j == i else jnp.zeros((rank, C_pad), ups[i].dtype)
             for j in range(3)], axis=1)
         for i in range(3)], axis=0).astype(wdt)                      # (3r, 3*C_pad)
    w_o = _pad_axis(params["w_o"].T, 1, C_pad).reshape(
        num_heads, head_dim, C_pad).astype(wdt)                       # (H, D, C_pad)
    b_o = _pad_axis(params["b_o"], 1, C_pad).astype(jnp.float32)      # (1, C_pad)

    # bf16 input halves x DMA + its double-buffered VMEM; the kernel used bf16
    # operands anyway so numerics are unchanged.  Output stays f32 here.
    x_p = _pad_axis(_pad_axis(x, 1, N_pad), 2, C_pad).astype(wdt)     # (B, N_pad, C_pad)

    # Resident-set estimate -> generation-aware scoped-VMEM limit (~80% of the
    # chip's physical per-core VMEM instead of a hard 64 MiB cap).
    weight_bytes = (2 * (w_qkv.size + a_qkv.size + u_qkv.size + w_o.size)
                    + 4 * (b_qkv.size + b_o.size))
    io_bytes = 2 * N_pad * C_pad + 4 * N_pad * C_pad                  # x bf16 + out f32
    est = 2 * (weight_bytes + io_bytes)                               # double buffering
    est += (4 + 2) * N_pad * 3 * C_pad                                # qkv f32 + bf16
    est += 4 * N_pad * r3                                             # low
    est += 2 * 3 * num_heads * N_pad * head_dim                       # qh/kh/vh bf16
    est += (4 + 2) * num_heads * N_pad * N_pad                        # scores f32 + p bf16
    est += (4 + 2) * num_heads * N_pad * head_dim                     # ctx f32 + bf16
    est += 4 * N_pad * C_pad                                          # acc
    try:
        vmem_cap = int(pltpu.get_tpu_info().vmem_capacity_bytes)
    except Exception:
        vmem_cap = 64 * 1024 * 1024                                   # conservative (v7x)
    vmem_limit = int(min(max(int(1.5 * est), 32 * 1024 * 1024),
                         int(0.8 * vmem_cap)))

    kernel = functools.partial(
        _attn_lora_kernel, num_heads=num_heads, head_dim=head_dim,
        c_pad=C_pad, n_tokens=N)

    def fixed(shape):
        # Whole (untiled) weight, same block every grid step.
        # TODO(synk): pipeline_mode=pl.Buffered(1) here would drop the dead
        # second pipeline buffer (~5-9 MB at ViT scale) on v7x.
        ndim = len(shape)
        return pl.BlockSpec(shape, lambda b, _n=ndim: (0,) * _n)

    out_p = pl.pallas_call(
        kernel,
        out_shape=jax.ShapeDtypeStruct((B, N_pad, C_pad), jnp.float32),
        grid_spec=pl.GridSpec(
            grid=(B,),
            in_specs=[
                pl.BlockSpec((None, N_pad, C_pad), lambda b: (b, 0, 0)),  # x
                fixed((C_pad, 3 * C_pad)),                                # W_qkv
                fixed((1, 3 * C_pad)),                                    # b_qkv
                fixed((C_pad, r3)),                                       # LoRA down
                fixed((r3, 3 * C_pad)),                                   # LoRA up (blkdiag)
                fixed((num_heads, head_dim, C_pad)),                      # W_o per-head
                fixed((1, C_pad)),                                        # b_o
            ],
            out_specs=pl.BlockSpec((None, N_pad, C_pad), lambda b: (b, 0, 0)),
        ),
        compiler_params=pltpu.CompilerParams(
            dimension_semantics=("parallel",),
            vmem_limit_bytes=vmem_limit,
        ),
    )(x_p, w_qkv, b_qkv, a_qkv, u_qkv, w_o, b_o)

    out_p = out_p[:, :N, :] if N_pad != N else out_p
    return out_p[:, :, :C] if C_pad != C else out_p


def reference_attention_with_lora(x, params, *, num_heads, lora_s=1.0):
    """Pure-JAX f32 reference with identical semantics."""
    B, N, C = x.shape
    D = C // num_heads

    def proj(p):
        base = jnp.einsum("bnc,oc->bno", x, params[f"w_{p}"]) + params[f"b_{p}"][0]
        low = jnp.einsum("bnc,rc->bnr", x, params[f"lora_a_{p}"])
        lora = jnp.einsum("bnr,or->bno", low, params[f"lora_b_{p}"])
        return base + lora_s * lora

    q, k, v = proj("q"), proj("k"), proj("v")
    qh = q.reshape(B, N, num_heads, D).transpose(0, 2, 1, 3)
    kh = k.reshape(B, N, num_heads, D).transpose(0, 2, 1, 3)
    vh = v.reshape(B, N, num_heads, D).transpose(0, 2, 1, 3)
    scores = jnp.einsum("bhnd,bhmd->bhnm", qh, kh) / math.sqrt(D)
    p = jax.nn.softmax(scores, axis=-1)
    out = jnp.einsum("bhnm,bhmd->bhnd", p, vh)
    out = out.transpose(0, 2, 1, 3).reshape(B, N, C)
    return jnp.einsum("bnc,oc->bno", out, params["w_o"]) + params["b_o"][0]


def make_params(key, embed_dim, rank):
    ks = jax.random.split(key, 16)
    i = iter(range(16))
    params = {}
    for p in ("q", "k", "v"):
        params[f"w_{p}"] = 0.05 * jax.random.normal(
            ks[next(i)], (embed_dim, embed_dim), jnp.float32)
        params[f"b_{p}"] = 0.01 * jax.random.normal(
            ks[next(i)], (1, embed_dim), jnp.float32)
        params[f"lora_a_{p}"] = 0.05 * jax.random.normal(
            ks[next(i)], (rank, embed_dim), jnp.float32)
        # Standard LoRA zero-inits the up-projection; use a nonzero init so the
        # LoRA path is numerically exercised.
        params[f"lora_b_{p}"] = 0.05 * jax.random.normal(
            ks[next(i)], (embed_dim, rank), jnp.float32)
    params["w_o"] = 0.05 * jax.random.normal(
        ks[next(i)], (embed_dim, embed_dim), jnp.float32)
    params["b_o"] = 0.01 * jax.random.normal(
        ks[next(i)], (1, embed_dim), jnp.float32)
    return params


if __name__ == "__main__":
    key = jax.random.PRNGKey(0)
    kx, kp = jax.random.split(key)

    B, N, C = 2, 8, 32          # batch, tokens, embed dim
    NUM_HEADS, RANK, S = 4, 4, 1.0

    x = jax.random.normal(kx, (B, N, C), jnp.float32)
    params = make_params(kp, C, RANK)

    out = attention_with_lora(x, params, num_heads=NUM_HEADS, rank=RANK, lora_s=S)
    out = jax.block_until_ready(out)

    ref = reference_attention_with_lora(x, params, num_heads=NUM_HEADS, lora_s=S)
    assert out.shape == (B, N, C)
    # bf16 MXU operands (f32 accumulation) + approx reciprocal -> loosened tolerance.
    assert jnp.allclose(out, ref, atol=2e-2, rtol=2e-2), (
        f"max abs err {jnp.max(jnp.abs(out - ref))}")

    print("KERNEL_OK")
</pallas_src>

<mosaic_0001>
module attributes {stable_mosaic.version = 11 : i64} {
  func.func @_attn_lora_kernel(%arg0: i32, %arg1: memref<1x128x128xbf16, #tpu.memory_space<vmem>>, %arg2: memref<128x384xbf16, #tpu.memory_space<vmem>>, %arg3: memref<1x384xf32, #tpu.memory_space<vmem>>, %arg4: memref<128x12xbf16, #tpu.memory_space<vmem>>, %arg5: memref<12x384xbf16, #tpu.memory_space<vmem>>, %arg6: memref<4x8x128xbf16, #tpu.memory_space<vmem>>, %arg7: memref<1x128xf32, #tpu.memory_space<vmem>>, %arg8: memref<1x128x128xf32, #tpu.memory_space<vmem>>) attributes {dimension_semantics = [#tpu.dimension_semantics<parallel>], iteration_bounds = array<i64: 2>, scalar_prefetch = 0 : i64, scratch_operands = 0 : i64, tpu.core_type = #tpu.core_type<tc>, window_params = [{transform_indices = @transform_0, window_bounds = array<i64: 1, 128, 128>}, {pipeline_mode = #tpu.pipeline_mode<synchronous>, transform_indices = @transform_1, window_bounds = array<i64: 128, 384>}, {pipeline_mode = #tpu.pipeline_mode<synchronous>, transform_indices = @transform_2, window_bounds = array<i64: 1, 384>}, {pipeline_mode = #tpu.pipeline_mode<synchronous>, transform_indices = @transform_3, window_bounds = array<i64: 128, 12>}, {pipeline_mode = #tpu.pipeline_mode<synchronous>, transform_indices = @transform_4, window_bounds = array<i64: 12, 384>}, {pipeline_mode = #tpu.pipeline_mode<synchronous>, transform_indices = @transform_5, window_bounds = array<i64: 4, 8, 128>}, {pipeline_mode = #tpu.pipeline_mode<synchronous>, transform_indices = @transform_6, window_bounds = array<i64: 1, 128>}, {transform_indices = @transform_7, window_bounds = array<i64: 1, 128, 128>}]} {
    %c0 = arith.constant 0 : index
    %c0_0 = arith.constant 0 : index
    %c0_1 = arith.constant 0 : index
    %0 = vector.load %arg1[%c0, %c0_0, %c0_1] : memref<1x128x128xbf16, #tpu.memory_space<vmem>>, vector<1x128x128xbf16>
    %1 = vector.shape_cast %0 : vector<1x128x128xbf16> to vector<128x128xbf16>
    %c0_2 = arith.constant 0 : index
    %c0_3 = arith.constant 0 : index
    %2 = vector.load %arg2[%c0_2, %c0_3] : memref<128x384xbf16, #tpu.memory_space<vmem>>, vector<128x384xbf16>
    %cst = arith.constant dense<0.000000e+00> : vector<128x384xf32>
    %3 = tpu.matmul %1, %2, %cst {dimension_numbers = #tpu.dot_dimension_numbers<[1], [0], [0], [1], [0, 0, 1, 1], [], []>} : vector<128x128xbf16>, vector<128x384xbf16>, vector<128x384xf32> -> vector<128x384xf32>
    %c0_4 = arith.constant 0 : index
    %c0_5 = arith.constant 0 : index
    %4 = vector.load %arg3[%c0_4, %c0_5] : memref<1x384xf32, #tpu.memory_space<vmem>>, vector<1x384xf32>
    %5 = vector.broadcast %4 : vector<1x384xf32> to vector<128x384xf32>
    %6 = arith.addf %3, %5 : vector<128x384xf32>
    %c0_6 = arith.constant 0 : index
    %c0_7 = arith.constant 0 : index
    %7 = vector.load %arg4[%c0_6, %c0_7] : memref<128x12xbf16, #tpu.memory_space<vmem>>, vector<128x12xbf16>
    %cst_8 = arith.constant dense<0.000000e+00> : vector<128x12xf32>
    %8 = tpu.matmul %1, %7, %cst_8 {dimension_numbers = #tpu.dot_dimension_numbers<[1], [0], [0], [1], [0, 0, 1, 1], [], []>} : vector<128x128xbf16>, vector<128x12xbf16>, vector<128x12xf32> -> vector<128x12xf32>
    %9 = arith.truncf %8 : vector<128x12xf32> to vector<128x12xbf16>
    %c0_9 = arith.constant 0 : index
    %c0_10 = arith.constant 0 : index
    %10 = vector.load %arg5[%c0_9, %c0_10] : memref<12x384xbf16, #tpu.memory_space<vmem>>, vector<12x384xbf16>
    %cst_11 = arith.constant dense<0.000000e+00> : vector<128x384xf32>
    %11 = tpu.matmul %9, %10, %cst_11 {dimension_numbers = #tpu.dot_dimension_numbers<[1], [0], [0], [1], [0, 0, 1, 1], [], []>} : vector<128x12xbf16>, vector<12x384xbf16>, vector<128x384xf32> -> vector<128x384xf32>
    %12 = arith.addf %6, %11 : vector<128x384xf32>
    %13 = arith.truncf %12 : vector<128x384xf32> to vector<128x384xbf16>
    %14 = vector.extract_strided_slice %13 {offsets = [0, 0], sizes = [128, 8], strides = [1, 1]} : vector<128x384xbf16> to vector<128x8xbf16>
    %15 = vector.extract_strided_slice %13 {offsets = [0, 8], sizes = [128, 8], strides = [1, 1]} : vector<128x384xbf16> to vector<128x8xbf16>
    %16 = vector.extract_strided_slice %13 {offsets = [0, 16], sizes = [128, 8], strides = [1, 1]} : vector<128x384xbf16> to vector<128x8xbf16>
    %17 = vector.extract_strided_slice %13 {offsets = [0, 24], sizes = [128, 8], strides = [1, 1]} : vector<128x384xbf16> to vector<128x8xbf16>
    %18 = vector.shape_cast %14 : vector<128x8xbf16> to vector<1x128x8xbf16>
    %19 = vector.shape_cast %15 : vector<128x8xbf16> to vector<1x128x8xbf16>
    %20 = vector.shape_cast %16 : vector<128x8xbf16> to vector<1x128x8xbf16>
    %21 = vector.shape_cast %17 : vector<128x8xbf16> to vector<1x128x8xbf16>
    %22 = tpu.concatenate %18, %19, %20, %21 in 0 : vector<1x128x8xbf16>, vector<1x128x8xbf16>, vector<1x128x8xbf16>, vector<1x128x8xbf16> -> vector<4x128x8xbf16>
    %23 = vector.extract_strided_slice %13 {offsets = [0, 128], sizes = [128, 8], strides = [1, 1]} : vector<128x384xbf16> to vector<128x8xbf16>
    %24 = vector.extract_strided_slice %13 {offsets = [0, 136], sizes = [128, 8], strides = [1, 1]} : vector<128x384xbf16> to vector<128x8xbf16>
    %25 = vector.extract_strided_slice %13 {offsets = [0, 144], sizes = [128, 8], strides = [1, 1]} : vector<128x384xbf16> to vector<128x8xbf16>
    %26 = vector.extract_strided_slice %13 {offsets = [0, 152], sizes = [128, 8], strides = [1, 1]} : vector<128x384xbf16> to vector<128x8xbf16>
    %27 = vector.shape_cast %23 : vector<128x8xbf16> to vector<1x128x8xbf16>
    %28 = vector.shape_cast %24 : vector<128x8xbf16> to vector<1x128x8xbf16>
    %29 = vector.shape_cast %25 : vector<128x8xbf16> to vector<1x128x8xbf16>
    %30 = vector.shape_cast %26 : vector<128x8xbf16> to vector<1x128x8xbf16>
    %31 = tpu.concatenate %27, %28, %29, %30 in 0 : vector<1x128x8xbf16>, vector<1x128x8xbf16>, vector<1x128x8xbf16>, vector<1x128x8xbf16> -> vector<4x128x8xbf16>
    %32 = vector.extract_strided_slice %13 {offsets = [0, 256], sizes = [128, 8], strides = [1, 1]} : vector<128x384xbf16> to vector<128x8xbf16>
    %33 = vector.extract_strided_slice %13 {offsets = [0, 264], sizes = [128, 8], strides = [1, 1]} : vector<128x384xbf16> to vector<128x8xbf16>
    %34 = vector.extract_strided_slice %13 {offsets = [0, 272], sizes = [128, 8], strides = [1, 1]} : vector<128x384xbf16> to vector<128x8xbf16>
    %35 = vector.extract_strided_slice %13 {offsets = [0, 280], sizes = [128, 8], strides = [1, 1]} : vector<128x384xbf16> to vector<128x8xbf16>
    %36 = vector.shape_cast %32 : vector<128x8xbf16> to vector<1x128x8xbf16>
    %37 = vector.shape_cast %33 : vector<128x8xbf16> to vector<1x128x8xbf16>
    %38 = vector.shape_cast %34 : vector<128x8xbf16> to vector<1x128x8xbf16>
    %39 = vector.shape_cast %35 : vector<128x8xbf16> to vector<1x128x8xbf16>
    %40 = tpu.concatenate %36, %37, %38, %39 in 0 : vector<1x128x8xbf16>, vector<1x128x8xbf16>, vector<1x128x8xbf16>, vector<1x128x8xbf16> -> vector<4x128x8xbf16>
    "tpu.trace_start"() <{level = 10 : i32, message = "hnd,hmd->hnm"}> : () -> ()
    %cst_12 = arith.constant dense<0.000000e+00> : vector<4x128x128xf32>
    %41 = tpu.matmul %22, %31, %cst_12 {dimension_numbers = #tpu.dot_dimension_numbers<[2], [2], [1], [1], [0, 0, 0, 1, 1, 1], [0], [0]>} : vector<4x128x8xbf16>, vector<4x128x8xbf16>, vector<4x128x128xf32> -> vector<4x128x128xf32>
    "tpu.trace_stop"() : () -> ()
    %42 = tpu.iota {dimensions = array<i32: 2>} : vector<1x1x128xi32>
    %c8_i32 = arith.constant 8 : i32
    %43 = vector.broadcast %c8_i32 : i32 to vector<1x1x128xi32>
    %44 = arith.cmpi slt, %42, %43 : vector<1x1x128xi32>
    %cst_13 = arith.constant -1.000000e+30 : f32
    %45 = vector.shape_cast %44 : vector<1x1x128xi1> to vector<1x1x128xi1>
    %46 = vector.broadcast %45 : vector<1x1x128xi1> to vector<4x128x128xi1>
    %47 = vector.broadcast %cst_13 : f32 to vector<4x128x128xf32>
    %48 = arith.select %46, %41, %47 : vector<4x128x128xi1>, vector<4x128x128xf32>
    %cst_14 = arith.constant dense<0xFF800000> : vector<4x128xf32>
    %49 = vector.multi_reduction <maximumf>, %48, %cst_14 [2] : vector<4x128x128xf32> to vector<4x128xf32>
    %50 = vector.shape_cast %49 : vector<4x128xf32> to vector<4x128x1xf32>
    %51 = vector.broadcast %50 : vector<4x128x1xf32> to vector<4x128x128xf32>
    %52 = arith.subf %48, %51 : vector<4x128x128xf32>
    %53 = math.exp %52 : vector<4x128x128xf32>
    %cst_15 = arith.constant dense<0.000000e+00> : vector<4x128xf32>
    %54 = vector.multi_reduction <add>, %53, %cst_15 [2] : vector<4x128x128xf32> to vector<4x128xf32>
    %55 = vector.shape_cast %54 : vector<4x128xf32> to vector<4x128x1xf32>
    %56 = tpu.reciprocal %55 {approx = true} : vector<4x128x1xf32> -> vector<4x128x1xf32>
    %57 = vector.broadcast %56 : vector<4x128x1xf32> to vector<4x128x128xf32>
    %58 = arith.mulf %53, %57 : vector<4x128x128xf32>
    %59 = arith.truncf %58 : vector<4x128x128xf32> to vector<4x128x128xbf16>
    "tpu.trace_start"() <{level = 10 : i32, message = "hnm,hmd->hnd"}> : () -> ()
    %cst_16 = arith.constant dense<0.000000e+00> : vector<4x128x8xf32>
    %60 = tpu.matmul %59, %40, %cst_16 {dimension_numbers = #tpu.dot_dimension_numbers<[2], [1], [1], [2], [0, 0, 0, 1, 1, 2], [0], [0]>} : vector<4x128x128xbf16>, vector<4x128x8xbf16>, vector<4x128x8xf32> -> vector<4x128x8xf32>
    "tpu.trace_stop"() : () -> ()
    %61 = arith.truncf %60 : vector<4x128x8xf32> to vector<4x128x8xbf16>
    %62 = vector.extract_strided_slice %61 {offsets = [0, 0, 0], sizes = [1, 128, 8], strides = [1, 1, 1]} : vector<4x128x8xbf16> to vector<1x128x8xbf16>
    %63 = vector.shape_cast %62 : vector<1x128x8xbf16> to vector<128x8xbf16>
    %c0_17 = arith.constant 0 : index
    %c0_18 = arith.constant 0 : index
    %c0_19 = arith.constant 0 : index
    %64 = vector.load %arg6[%c0_17, %c0_18, %c0_19] : memref<4x8x128xbf16, #tpu.memory_space<vmem>>, vector<1x8x128xbf16>
    %65 = vector.shape_cast %64 : vector<1x8x128xbf16> to vector<8x128xbf16>
    %cst_20 = arith.constant dense<0.000000e+00> : vector<128x128xf32>
    %66 = tpu.matmul %63, %65, %cst_20 {dimension_numbers = #tpu.dot_dimension_numbers<[1], [0], [0], [1], [0, 0, 1, 1], [], []>} : vector<128x8xbf16>, vector<8x128xbf16>, vector<128x128xf32> -> vector<128x128xf32>
    %67 = vector.extract_strided_slice %61 {offsets = [1, 0, 0], sizes = [1, 128, 8], strides = [1, 1, 1]} : vector<4x128x8xbf16> to vector<1x128x8xbf16>
    %68 = vector.shape_cast %67 : vector<1x128x8xbf16> to vector<128x8xbf16>
    %c1 = arith.constant 1 : index
    %c0_21 = arith.constant 0 : index
    %c0_22 = arith.constant 0 : index
    %69 = vector.load %arg6[%c1, %c0_21, %c0_22] : memref<4x8x128xbf16, #tpu.memory_space<vmem>>, vector<1x8x128xbf16>
    %70 = vector.shape_cast %69 : vector<1x8x128xbf16> to vector<8x128xbf16>
    %cst_23 = arith.constant dense<0.000000e+00> : vector<128x128xf32>
    %71 = tpu.matmul %68, %70, %cst_23 {dimension_numbers = #tpu.dot_dimension_numbers<[1], [0], [0], [1], [0, 0, 1, 1], [], []>} : vector<128x8xbf16>, vector<8x128xbf16>, vector<128x128xf32> -> vector<128x128xf32>
    %72 = arith.addf %66, %71 : vector<128x128xf32>
    %73 = vector.extract_strided_slice %61 {offsets = [2, 0, 0], sizes = [1, 128, 8], strides = [1, 1, 1]} : vector<4x128x8xbf16> to vector<1x128x8xbf16>
    %74 = vector.shape_cast %73 : vector<1x128x8xbf16> to vector<128x8xbf16>
    %c2 = arith.constant 2 : index
    %c0_24 = arith.constant 0 : index
    %c0_25 = arith.constant 0 : index
    %75 = vector.load %arg6[%c2, %c0_24, %c0_25] : memref<4x8x128xbf16, #tpu.memory_space<vmem>>, vector<1x8x128xbf16>
    %76 = vector.shape_cast %75 : vector<1x8x128xbf16> to vector<8x128xbf16>
    %cst_26 = arith.constant dense<0.000000e+00> : vector<128x128xf32>
    %77 = tpu.matmul %74, %76, %cst_26 {dimension_numbers = #tpu.dot_dimension_numbers<[1], [0], [0], [1], [0, 0, 1, 1], [], []>} : vector<128x8xbf16>, vector<8x128xbf16>, vector<128x128xf32> -> vector<128x128xf32>
    %78 = arith.addf %72, %77 : vector<128x128xf32>
    %79 = vector.extract_strided_slice %61 {offsets = [3, 0, 0], sizes = [1, 128, 8], strides = [1, 1, 1]} : vector<4x128x8xbf16> to vector<1x128x8xbf16>
    %80 = vector.shape_cast %79 : vector<1x128x8xbf16> to vector<128x8xbf16>
    %c3 = arith.constant 3 : index
    %c0_27 = arith.constant 0 : index
    %c0_28 = arith.constant 0 : index
    %81 = vector.load %arg6[%c3, %c0_27, %c0_28] : memref<4x8x128xbf16, #tpu.memory_space<vmem>>, vector<1x8x128xbf16>
    %82 = vector.shape_cast %81 : vector<1x8x128xbf16> to vector<8x128xbf16>
    %cst_29 = arith.constant dense<0.000000e+00> : vector<128x128xf32>
    %83 = tpu.matmul %80, %82, %cst_29 {dimension_numbers = #tpu.dot_dimension_numbers<[1], [0], [0], [1], [0, 0, 1, 1], [], []>} : vector<128x8xbf16>, vector<8x128xbf16>, vector<128x128xf32> -> vector<128x128xf32>
    %84 = arith.addf %78, %83 : vector<128x128xf32>
    %c0_30 = arith.constant 0 : index
    %c0_31 = arith.constant 0 : index
    %85 = vector.load %arg7[%c0_30, %c0_31] : memref<1x128xf32, #tpu.memory_space<vmem>>, vector<1x128xf32>
    %86 = vector.broadcast %85 : vector<1x128xf32> to vector<128x128xf32>
    %87 = arith.addf %84, %86 : vector<128x128xf32>
    %c0_32 = arith.constant 0 : index
    %c0_33 = arith.constant 0 : index
    %c0_34 = arith.constant 0 : index
    %88 = vector.load %arg8[%c0_32, %c0_33, %c0_34] : memref<1x128x128xf32, #tpu.memory_space<vmem>>, vector<1x128x128xf32>
    %89 = vector.shape_cast %88 : vector<1x128x128xf32> to vector<128x128xf32>
    %90 = vector.shape_cast %87 : vector<128x128xf32> to vector<1x128x128xf32>
    tpu.vector_store %arg8[%c0_32, %c0_33, %c0_34], %90 {strides = array<i32>} : memref<1x128x128xf32, #tpu.memory_space<vmem>>, vector<1x128x128xf32>,
    return
  }
  func.func @transform_0(%arg0: i32) -> (i32, i32, i32) {
    %c0_i32 = arith.constant 0 : i32
    %c0_i32_0 = arith.constant 0 : i32
    %c0_i32_1 = arith.constant 0 : i32
    return %arg0, %c0_i32, %c0_i32_0 : i32, i32, i32
  }
  func.func @transform_1(%arg0: i32) -> (i32, i32) {
    %c0_i32 = arith.constant 0 : i32
    %c0_i32_0 = arith.constant 0 : i32
    %c0_i32_1 = arith.constant 0 : i32
    return %c0_i32, %c0_i32_0 : i32, i32
  }
  func.func @transform_2(%arg0: i32) -> (i32, i32) {
    %c0_i32 = arith.constant 0 : i32
    %c0_i32_0 = arith.constant 0 : i32
    %c0_i32_1 = arith.constant 0 : i32
    return %c0_i32, %c0_i32_0 : i32, i32
  }
  func.func @transform_3(%arg0: i32) -> (i32, i32) {
    %c0_i32 = arith.constant 0 : i32
    %c0_i32_0 = arith.constant 0 : i32
    %c0_i32_1 = arith.constant 0 : i32
    return %c0_i32, %c0_i32_0 : i32, i32
  }
  func.func @transform_4(%arg0: i32) -> (i32, i32) {
    %c0_i32 = arith.constant 0 : i32
    %c0_i32_0 = arith.constant 0 : i32
    %c0_i32_1 = arith.constant 0 : i32
    return %c0_i32, %c0_i32_0 : i32, i32
  }
  func.func @transform_5(%arg0: i32) -> (i32, i32, i32) {
    %c0_i32 = arith.constant 0 : i32
    %c0_i32_0 = arith.constant 0 : i32
    %c0_i32_1 = arith.constant 0 : i32
    %c0_i32_2 = arith.constant 0 : i32
    return %c0_i32, %c0_i32_0, %c0_i32_1 : i32, i32, i32
  }
  func.func @transform_6(%arg0: i32) -> (i32, i32) {
    %c0_i32 = arith.constant 0 : i32
    %c0_i32_0 = arith.constant 0 : i32
    %c0_i32_1 = arith.constant 0 : i32
    return %c0_i32, %c0_i32_0 : i32, i32
  }
  func.func @transform_7(%arg0: i32) -> (i32, i32, i32) {
    %c0_i32 = arith.constant 0 : i32
    %c0_i32_0 = arith.constant 0 : i32
    %c0_i32_1 = arith.constant 0 : i32
    return %arg0, %c0_i32, %c0_i32_0 : i32, i32, i32
  }
}

</mosaic_0001>

<bundles_post_ra>
// kernel: tpu_custom_call.1
= control target key start
LH: loop header
LB: loop body
LE: loop exit
PB: predicated region body
PF: predicated region fallthrough
CT: control target
= control target key end

     0   :  { %s6677_s0 = inlined_call_operand.hbm [shape: bf16[2,128,128], index: 0, kind: input, shape index: {}]   ;;  %s6678_s1 = inlined_call_operand.hbm [shape: bf16[128,384], index: 1, kind: input, shape index: {}]   ;;  %s6679_s2 = inlined_call_operand.vmem [shape: f32[1,384], index: 2, kind: input, shape index: {}]   ;;  %s6680_s3 = inlined_call_operand.vmem [shape: bf16[128,12], index: 3, kind: input, shape index: {}]   ;;  %s6681_s4 = inlined_call_operand.vmem [shape: bf16[12,384], index: 4, kind: input, shape index: {}]   ;;  %s6682_s5 = inlined_call_operand.vmem [shape: bf16[4,8,128], index: 5, kind: input, shape index: {}]   ;;  %s6683_s6 = inlined_call_operand.vmem [shape: f32[1,128], index: 6, kind: input, shape index: {}]   ;;  %s6684_s7 = inlined_call_operand.hbm [shape: f32[2,128,128], index: 7, kind: output, shape index: {}]  }
   0x1   :  { %6742 = sst [smem:[#allocation58_spill]] %s6678_s1 }
   0x2   :  { %12 = vsyncpa [#allocation3], 0 }
   0x3   :  { %14 = vsyncpa [#allocation3 + $0x1], 0 }
   0x4   :  { %15 = vsyncpa [#allocation6], 0 }
   0x5   :  { %16 = vsyncpa [#allocation4], 0 }
   0x6   :  { %18 = vsyncpa [#allocation4 + $0x1], 0  ;;  %s4739_s24 = smov 0   ;;  %s4741_s25 = smov 0  }
   0x7   :  { %s4743_s26 = smov 0   ;;  %s4745_s27 = smov 0  }
   0x8 LB: > { %s4760_s28 = sadd.s32 4294967295, %s4687_s27   ;;  %s3893_s29 = sadd.s32 4294967294, %s4687_s27   ;;  %s4687_s27 = sphi %s4745_s27, %s6922_s27   ;;  %s4683_s26 = sphi %s4743_s26, %s6921_s26   ;;  %s4679_s25 = sphi %s4741_s25, %s6920_s25   ;;  %s4675_s24 = sphi %s4739_s24, %s6919_s24  }
   0x9   : > { %p44_p0 = scmp.ne.s32.totalorder %s4679_s25, %s4675_s24  ;;  %p45_p1 = scmp.eq.s32.totalorder %s4760_s28, 0 }
   0xa   : > { %p194_p2 = scmp.eq.s32.totalorder %s4760_s28, 1  ;;  %p200_p3 = scmp.eq.s32.totalorder %s3893_s29, 1 }
   0xb   : > { %p4769_p4 = por %p45_p1, %p44_p0  ;;  %p3894_p5 = scmp.ge.s32.totalorder %s4687_s27, 1 }
   0xc   : > { %p4774_p6 = por %p200_p3, %p44_p0  ;;  %p207_p7 = scmp.lt.s32.totalorder %s4687_s27, 3 }
   0xd   : > { %s6745_s1 = sld [smem:[#allocation58_spill]]  ;;  %s4689_s13 = smov [#allocation5]  }
   0xe   : > { %p4782_p8 = pnand %p3894_p5, %p207_p7  ;;  %s220_s14 = sshll.u32 %s4689_s13, 4  ;;  %s221_s14 = int_to_ptr.vmem [resolvable:$true] %s220_s14 }
   0xf   : > { %s4792_s15 = sadd.s32 1, %s4687_s27   ;;  %s4690_s16 = smov 192  }
  0x10   : > { %p4242_p9 = pneg %p4782_p8  ;;  %s4691_s17 = smov 12  }
  0x11   : > { %s28_s18 = ssub.s32 %s4687_s27, %s4792_s15  ;;  %s31_s19 = sadd.s32 1, %s4683_s26 }
  0x12   : > { %p4243_p10 = pnand %p4242_p9, %p45_p1  ;;  %p29_p12 = scmp.eq.s32.totalorder %s28_s18, 0 }
  0x13   : > { %s218_s11 = sshll.u32 %s6745_s1, 4  ;;  %p38_p13 = scmp.ne.s32.totalorder %s4683_s26, %s4679_s25  ;;  %s219_s11 = int_to_ptr.hbm [resolvable:$true] %s218_s11 }
  0x14   : > { %4245 = dma.hbm_to_vmem [thread:$0]  (!%p4243_p10), %s219_s11, 3072, %s221_s14, [#allocation6], %s4690_s16, %s4690_s16, %s4691_s17  }
  0x15   : > { %p39_p0 = scmp.eq.s32.totalorder %s4687_s27, 0  ;;  %p4255_p3 = scmp.lt.s32.totalorder %s4687_s27, 2 }
  0x16   : > { %s4802_s20 = scalar_select %p29_p12, %s4683_s26, %s31_s19  }
  0x17   : > { %p40_p5 = por %p39_p0, %p38_p13  ;;  %p4806_p7 = por %p194_p2, %p38_p13 }
  0x18   : > { %s249_s22 = sand.u32 1, %s4683_s26   ;;  %s4172_s23 = sshll.u32 %s4687_s27, 6 }
  0x19   : > { %s3897_s29 = sshll.u32 %s249_s22, 6  ;;  %s258_s11 = scalar_lea.hbm %s6677_s0, %s4172_s23 }
  0x1a   : > { %s259_s13 = sshll.u32 %s258_s11, 4  ;;  %s253_s14 = scalar_lea.vmem [#allocation2], %s3897_s29  ;;  %s260_s13 = int_to_ptr.hbm [resolvable:$true] %s259_s13 }
  0x1b   : > { %s261_s16 = sshll.u32 %s253_s14, 4  ;;  %p4817_p9 = pnand %p4255_p3, %p40_p5  ;;  %s262_s16 = int_to_ptr.vmem [resolvable:$true] %s261_s16 }
  0x1c   : > { %s250_s18 = scalar_lea.sflag [#allocation3], %s249_s22  ;;  %s4587_s19 = sshra.s32 %s260_s13, 4  ;;  %s4588_s19 = int_to_ptr.hbm [resolvable:$true] %s4587_s19 }
  0x1d   : > { %s4589_s1 = scalar_lea.hbm %s4588_s19, 64  ;;  %p4591_p10 = pneg %p4817_p9 }
  0x1e   : > { %p4590_p2 = scmp.ne.s32.totalorder %s4588_s19, %s4589_s1  ;;  %s4594_s9 = scalar_lea.hbm %s6677_s0, 128 }
  0x1f   : > { %p4595_p0 = scmp.lt.s32.totalorder %s4588_s19, %s6677_s0  ;;  %p4596_p3 = scmp.lt.s32.totalorder %s4594_s9, %s4589_s1 }
  0x20   : > { %p4592_p12 = pnand %p4591_p10, %p4590_p2 }
  0x21   : > { %p4597_p5 = por %p4596_p3, %p4595_p0 }
  0x22   : > { %p4593_p13 = pneg %p4592_p12 }
  0x24   : > { %p4598_p11 = pnand %p4597_p5, %p4593_p13 }
  0x26   : > { %4601 = shalt.err (!%p4598_p11)
}
  0x27   : > { %s4692_s22 = smov 64   ;;  %s4693_s14 = smov 4  }
  0x28   : > { %4249 = dma.hbm_to_vmem [thread:$0]  (!%p4817_p9), %s260_s13, 1024, %s262_s16, %s250_s18, %s4692_s22, %s4692_s22, %s4693_s14  }
  0x29   : > { %273 = sbr.rel (%p4782_p8) target bundleno = 1639 (0x667), region = 48 }
  0x2e   : > { %s4834_s23 = sand.u32 1, %s4679_s25  }
  0x2f   : > { %s3901_s29 = sshll.u32 %s4834_s23, 6  ;;  %s276_s19 = scalar_lea.sflag [#allocation3], %s4834_s23 }
  0x30   : > { %s4838_s1 = scalar_lea.vmem [#allocation2], %s3901_s29 }
  0x31   : > { %4662 = dma.done.wait (%p4769_p4), %s276_s19, 1024  }
  0x32   : > { %4664 = vsyncadd (%p4769_p4), %s276_s19, 4294966272 }
  0x33   : > { %4666 = dma.done.wait (%p45_p1), [#allocation6], 3072  }
  0x34   : > { %4668 = vsyncadd (%p45_p1), [#allocation6], 4294964224  ;;  %v4030_v0 = vld [vmem:[#allocation5 + $0xb0] sm:$0xf]  ;;  %v4204_v1 = vld [vmem:[#allocation5 + $0xb8] sm:$0xf0] }
  0x35   : > { %v4018_v2 = vld [vmem:[#allocation5 + $0x98] sm:$0xf]  ;;  %v4031_v3 = vor.u32 %v4204_v1, %v4030_v0  ;;  %v4201_v4 = vld [vmem:[#allocation5 + $0xa0] sm:$0xf0]  ;;  %v4022_v5 = vld [vmem:[#allocation5 + $0xa8] sm:$0xf] }
  0x36   : > { %v4203_v6 = vld [vmem:[#allocation5 + $0xb0] sm:$0xf0]  ;;  %v4010_v8 = vld [vmem:[#allocation5 + $0x90] sm:$0xf]  ;;  %v4019_v9 = vor.u32 %v4201_v4, %v4018_v2  ;;  %v4200_v10 = vld [vmem:[#allocation5 + $0x98] sm:$0xf0] }
  0x37   : > { %v4023_v7 = vor.u32 %v4203_v6, %v4022_v5  ;;  %4225 = vmatpush.bf16.msra.mxu3 %v4031_v3  ;;  %647 = vmatpush.bf16.msra.mxu2 %v4031_v3  ;;  %v4006_v11 = vld [vmem:[#allocation5 + $0x80] sm:$0xf]  ;;  %v4198_v12 = vld [vmem:[#allocation5 + $0x88] sm:$0xf0]  ;;  %v4011_v13 = vor.u32 %v4200_v10, %v4010_v8  ;;  %v3998_v14 = vld [vmem:[#allocation5 + $0x78] sm:$0xf] }
  0x38   : > { %v4197_v15 = vld [vmem:[#allocation5 + $0x80] sm:$0xf0]  ;;  %v4007_v16 = vor.u32 %v4198_v12, %v4006_v11  ;;  %v3994_v17 = vld [vmem:[#allocation5 + $0x68] sm:$0xf]  ;;  %v4195_v18 = vld [vmem:[#allocation5 + $0x70] sm:$0xf0] }
  0x39   : > { %549 = vmatpush.bf16.msra.mxu0 %v4023_v7  ;;  %v3999_v19 = vor.u32 %v4197_v15, %v3998_v14  ;;  %v3986_v20 = vld [vmem:[#allocation5 + $0x60] sm:$0xf]  ;;  %v4194_v21 = vld [vmem:[#allocation5 + $0x68] sm:$0xf0]  ;;  %v3995_v22 = vor.u32 %v4195_v18, %v3994_v17  ;;  %v3982_v23 = vld [vmem:[#allocation5 + $0x50] sm:$0xf] }
  0x3a   : > { %v4192_v24 = vld [vmem:[#allocation5 + $0x58] sm:$0xf0]  ;;  %v3987_v25 = vor.u32 %v4194_v21, %v3986_v20  ;;  %v3974_v26 = vld [vmem:[#allocation5 + $0x48] sm:$0xf]  ;;  %v4191_v27 = vld [vmem:[#allocation5 + $0x50] sm:$0xf0] }
  0x3b   : > { %4226 = vmatpush.bf16.msra.mxu3 %v4019_v9  ;;  %648 = vmatpush.bf16.msra.mxu2 %v4019_v9  ;;  %v3983_v28 = vor.u32 %v4192_v24, %v3982_v23  ;;  %v3970_v29 = vld [vmem:[#allocation5 + $0x38] sm:$0xf]  ;;  %v4189_v30 = vld [vmem:[#allocation5 + $0x40] sm:$0xf0]  ;;  %v3975_v31 = vor.u32 %v4191_v27, %v3974_v26  ;;  %v3962_v32 = vld [vmem:[#allocation5 + $0x30] sm:$0xf] }
  0x3c   : > { %v4188_v33 = vld [vmem:[#allocation5 + $0x38] sm:$0xf0]  ;;  %v3971_v34 = vor.u32 %v4189_v30, %v3970_v29  ;;  %v3958_v35 = vld [vmem:[#allocation5 + $0x20] sm:$0xf]  ;;  %v4186_v36 = vld [vmem:[#allocation5 + $0x28] sm:$0xf0] }
  0x3d   : > { %550 = vmatpush.bf16.msra.mxu0 %v4011_v13  ;;  %v3963_v37 = vor.u32 %v4188_v33, %v3962_v32  ;;  %v3950_v38 = vld [vmem:[#allocation5 + $0x18] sm:$0xf]  ;;  %v4185_v39 = vld [vmem:[#allocation5 + $0x20] sm:$0xf0]  ;;  %v3959_v40 = vor.u32 %v4186_v36, %v3958_v35  ;;  %v3946_v41 = vld [vmem:[#allocation5 + $0x8] sm:$0xf] }
  0x3e   : > { %v4183_v42 = vld [vmem:[#allocation5 + $0x10] sm:$0xf0]  ;;  %v3951_v43 = vor.u32 %v4185_v39, %v3950_v38  ;;  %v3938_v44 = vld [vmem:[#allocation5] sm:$0xf]  ;;  %v4182_v45 = vld [vmem:[#allocation5 + $0x8] sm:$0xf0] }
  0x3f   : > { %4227 = vmatpush.bf16.msra.mxu3 %v4007_v16  ;;  %649 = vmatpush.bf16.msra.mxu2 %v4007_v16  ;;  %v3947_v46 = vor.u32 %v4183_v42, %v3946_v41  ;;  %v4212_v47 = vld [vmem:[%s6680_s3 + $0x38] sm:$0xff]  ;;  %v3939_v48 = vor.u32 %v4182_v45, %v3938_v44  ;;  %v4852_v49 = vld [vmem:[%s4838_s1 + $0x30] sm:$0xff]  ;;  %v4855_v50 = vld [vmem:[%s4838_s1] sm:$0xff]  ;;  %vm859_vm0 = vcmask 1045504   ;;  %vm834_vm1 = vcmask 97280   ;;  %s4694_s16 = smov 120  }
  0x40   : > { %v4211_v51 = vld [vmem:[%s6680_s3 + $0x30] sm:$0xff]  ;;  %v4202_v52 = vld [vmem:[#allocation5 + $0xac] sm:$0xf]  ;;  %v4024_v53 = vld [vmem:[#allocation5 + $0xb4] sm:$0xf0]  ;;  %s4695_s17 = smov 104  }
  0x41   : > { %551 = vmatpush.bf16.msra.mxu0 %v3999_v19  ;;  %v4199_v54 = vld [vmem:[#allocation5 + $0x94] sm:$0xf]  ;;  %v4210_v55 = vld [vmem:[%s6680_s3 + $0x28] sm:$0xff]  ;;  %v4027_v56 = vor.u32 %v4202_v52, %v4024_v53  ;;  %v4012_v57 = vld [vmem:[#allocation5 + $0x9c] sm:$0xf0]  ;;  %s4696_s18 = smov 112  }
  0x42   : > { %v4015_v58 = vor.u32 %v4199_v54, %v4012_v57  ;;  %v4196_v59 = vld [vmem:[#allocation5 + $0x7c] sm:$0xf]  ;;  %v4000_v60 = vld [vmem:[#allocation5 + $0x84] sm:$0xf0]  ;;  %v4209_v61 = vld [vmem:[%s6680_s3 + $0x20] sm:$0xff]  ;;  %vm1432_vm2 = vcmask 64512  }
  0x43   : > { %4228 = vmatpush.bf16.msra.mxu3 %v3995_v22  ;;  %650 = vmatpush.bf16.msra.mxu2 %v3995_v22  ;;  %v4003_v62 = vor.u32 %v4196_v59, %v4000_v60  ;;  %v4208_v63 = vld [vmem:[%s6680_s3 + $0x18] sm:$0xff]  ;;  %v4876_v1 = vld [vmem:[%s4838_s1 + $0x8] sm:$0xff]  ;;  %v4207_v2 = vld [vmem:[%s6680_s3 + $0x10] sm:$0xff]  ;;  %vm3321_vm4 = vcmask 1043456   ;;  %s3903_s30 = sshll.u32 %s4834_s23, 7 }
  0x44   : > { %4217 = vmatpush.bf16.msra.mxu1 %v4027_v56  ;;  %v4873_v0 = vld [vmem:[%s4838_s1 + $0x38] sm:$0xff]  ;;  %v4193_v3 = vld [vmem:[#allocation5 + $0x64] sm:$0xf]  ;;  %v3988_v4 = vld [vmem:[#allocation5 + $0x6c] sm:$0xf0] }
  0x45   : > { %552 = vmatpush.bf16.msra.mxu0 %v3987_v25  ;;  %v3991_v5 = vor.u32 %v4193_v3, %v3988_v4  ;;  %v4190_v6 = vld [vmem:[#allocation5 + $0x4c] sm:$0xf]  ;;  %v3976_v7 = vld [vmem:[#allocation5 + $0x54] sm:$0xf0]  ;;  %v4187_v10 = vld [vmem:[#allocation5 + $0x34] sm:$0xf] }
  0x46   : > { %v4206_v8 = vld [vmem:[%s6680_s3 + $0x8] sm:$0xff]  ;;  %v3979_v9 = vor.u32 %v4190_v6, %v3976_v7  ;;  %v3964_v11 = vld [vmem:[#allocation5 + $0x3c] sm:$0xf0]  ;;  %v4184_v14 = vld [vmem:[#allocation5 + $0x1c] sm:$0xf] }
  0x47   : > { %4229 = vmatpush.bf16.msra.mxu3 %v3983_v28  ;;  %651 = vmatpush.bf16.msra.mxu2 %v3983_v28  ;;  %v4205_v12 = vld [vmem:[%s6680_s3] sm:$0xff]  ;;  %v3967_v13 = vor.u32 %v4187_v10, %v3964_v11  ;;  %v3952_v15 = vld [vmem:[#allocation5 + $0x24] sm:$0xf0]  ;;  %v4175_v17 = vld [vmem:[%s4838_s1 + $0x10] sm:$0xff] }
  0x48   : > { %4218 = vmatpush.bf16.msra.mxu1 %v4015_v58  ;;  %v3955_v16 = vor.u32 %v4184_v14, %v3952_v15  ;;  %v4181_v18 = vld [vmem:[#allocation5 + $0x4] sm:$0xf]  ;;  %v3940_v19 = vld [vmem:[#allocation5 + $0xc] sm:$0xf0]  ;;  %v4176_v21 = vld [vmem:[%s4838_s1 + $0x18] sm:$0xff] }
  0x49   : > { %553 = vmatpush.bf16.msra.mxu0 %v3975_v31  ;;  %v3943_v20 = vor.u32 %v4181_v18, %v3940_v19  ;;  %v4177_v22 = vld [vmem:[%s4838_s1 + $0x20] sm:$0xff]  ;;  %v4178_v23 = vld [vmem:[%s4838_s1 + $0x28] sm:$0xff]  ;;  %v4068_v25 = vld [vmem:[%s6681_s4 + $0xc] sm:$0x30] }
  0x4a   : > { %v4213_v24 = vld [vmem:[%s6681_s4 + $0x4] sm:$0xf]  ;;  %v4074_v28 = vld [vmem:[%s6681_s4 + $0x8] sm:$0xf]  ;;  %v4215_v29 = vld [vmem:[%s6681_s4 + $0x10] sm:$0x30] }
  0x4b   : > { %4230 = vmatpush.bf16.msra.mxu3 %v3971_v34  ;;  %652 = vmatpush.bf16.msra.mxu2 %v3971_v34  ;;  %v4071_v26 = vor.u32 %v4213_v24, %v4068_v25  ;;  %v4075_v30 = vor.u32 %v4215_v29, %v4074_v28  ;;  %v4066_v35 = vld [vmem:[%s6681_s4] sm:$0xf]  ;;  %v4214_v36 = vld [vmem:[%s6681_s4 + $0x8] sm:$0x30] }
  0x4c   : > { %4219 = vmatpush.bf16.msra.mxu1 %v4003_v62 }
  0x4d   : > { %554 = vmatpush.bf16.msra.mxu0 %v3963_v37  ;;  %v864_v27 = vsel %vm859_vm0, %v4071_v26, 0  ;;  %v867_v31 = vsel %vm859_vm0, %v4075_v30, 0  ;;  %v4067_v37 = vor.u32 %v4214_v36, %v4066_v35 }
  0x4f   : > { %4231 = vmatpush.bf16.msra.mxu3 %v3959_v40  ;;  %653 = vmatpush.bf16.msra.mxu2 %v3959_v40  ;;  %v861_v38 = vsel %vm859_vm0, %v4067_v37, 0 }
  0x50   : > { %4220 = vmatpush.bf16.msra.mxu1 %v3991_v5 }
  0x51   : > { %555 = vmatpush.bf16.msra.mxu0 %v3951_v43 }
  0x53   : > { %4232 = vmatpush.bf16.msra.mxu3 %v3947_v46  ;;  %654 = vmatpush.bf16.msra.mxu2 %v3947_v46 }
  0x54   : > { %4221 = vmatpush.bf16.msra.mxu1 %v3979_v9 }
  0x55   : > { %556 = vmatpush.bf16.msra.mxu0 %v3939_v48 }
  0x56   : > { %685 = vmatmul.bf16.vlgmr.msra.gmra.mxu3 %v4852_v49  ;;  %655 = vmatmul.bf16.vlgmr.msra.gmra.mxu2 %v4855_v50 }
  0x57   : > { %760 = vmatpush.bf16.msrb.mxu3 %v4212_v47  ;;  %974 = vmatpush.bf16.msrb.mxu2 %v867_v31 }
  0x58   : > { %557 = vmatmul.bf16.vlgmr.msra.gmra.mxu0 %v4855_v50  ;;  %4222 = vmatpush.bf16.msra.mxu1 %v3967_v13 }
  0x59   : > { %598 = vmatpush.bf16.msrb.mxu0 %v4027_v56 }
  0x5b   : > { %761 = vmatpush.bf16.msrb.mxu3 %v4211_v51 }
  0x5c   : > { %4223 = vmatpush.bf16.msra.mxu1 %v3955_v16 }
  0x5d   : > { %599 = vmatpush.bf16.msrb.mxu0 %v4015_v58 }
  0x5f   : > { %762 = vmatpush.bf16.msrb.mxu3 %v4210_v55 }
  0x60   : > { %4224 = vmatpush.bf16.msra.mxu1 %v3943_v20 }
  0x61   : > { %600 = vmatpush.bf16.msrb.mxu0 %v4003_v62 }
  0x63   : > { %763 = vmatpush.bf16.msrb.mxu3 %v4209_v61  ;;  %616 = vmatmul.bf16.vlgmr.msra.gmra.mxu1 %v4175_v17 }
  0x64   : > { %925 = vmatpush.bf16.msrb.mxu1 %v864_v27 }
  0x65   : > { %601 = vmatpush.bf16.msrb.mxu0 %v3991_v5 }
  0x66   : > { %690 = vmatmul.bf16.gmra.mxu3 %v4873_v0  ;;  %660 = vmatmul.bf16.gmra.mxu2 %v4876_v1 }
  0x67   : > { %764 = vmatpush.bf16.msrb.mxu3 %v4208_v63 }
  0x68   : > { %562 = vmatmul.bf16.gmra.mxu0 %v4876_v1 }
  0x69   : > { %602 = vmatpush.bf16.msrb.mxu0 %v3979_v9 }
  0x6b   : > { %765 = vmatpush.bf16.msrb.mxu3 %v4207_v2 }
  0x6d   : > { %603 = vmatpush.bf16.msrb.mxu0 %v3967_v13 }
  0x6f   : > { %766 = vmatpush.bf16.msrb.mxu3 %v4206_v8 }
  0x71   : > { %604 = vmatpush.bf16.msrb.mxu0 %v3955_v16 }
  0x73   : > { %767 = vmatpush.bf16.msrb.mxu3 %v4205_v12  ;;  %621 = vmatmul.bf16.gmra.mxu1 %v4176_v21 }
  0x75   : > { %605 = vmatpush.bf16.msrb.mxu0 %v3943_v20 }
  0x76   : > { %768 = vmatmul.bf16.vlgmr.msrb.gmra.mxu3 %v4855_v50  ;;  %665 = vmatmul.bf16.gmra.mxu2 %v4175_v17 }
  0x77   : > { %4233 = vmatpush.bf16.msra.mxu3 %v861_v38 }
  0x78   : > { %567 = vmatmul.bf16.gmra.mxu0 %v4175_v17 }
  0x79   : > { %876 = vmatpush.bf16.msra.mxu0 %v861_v38 }
  0x83   : > { %626 = vmatmul.bf16.gmra.mxu1 %v4177_v22 }
  0x86   : > { %773 = vmatmul.bf16.gmra.mxu3 %v4876_v1  ;;  %670 = vmatmul.bf16.gmra.mxu2 %v4176_v21 }
  0x88   : > { %572 = vmatmul.bf16.gmra.mxu0 %v4176_v21 }
  0x93   : > { %631 = vmatmul.bf16.gmra.mxu1 %v4178_v23 }
  0x96   : > { %778 = vmatmul.bf16.gmra.mxu3 %v4175_v17  ;;  %675 = vmatmul.bf16.gmra.mxu2 %v4177_v22 }
  0x98   : > { %577 = vmatmul.bf16.gmra.mxu0 %v4177_v22 }
  0xa3   : > { %636 = vmatmul.bf16.gmra.mxu1 %v4852_v49 }
  0xa6   : > { %783 = vmatmul.bf16.gmra.mxu3 %v4176_v21  ;;  %680 = vmatmul.bf16.gmra.mxu2 %v4178_v23 }
  0xa8   : > { %582 = vmatmul.bf16.gmra.mxu0 %v4178_v23 }
  0xb3   : > { %641 = vmatmul.bf16.gmra.mxu1 %v4873_v0 }
  0xb6   : > { %788 = vmatmul.bf16.gmra.mxu3 %v4177_v22 }
  0xb8   : > { %587 = vmatmul.bf16.gmra.mxu0 %v4852_v49 }
  0xc6   : > { %793 = vmatmul.bf16.gmra.mxu3 %v4178_v23 }
  0xc8   : > { %592 = vmatmul.bf16.gmra.mxu0 %v4873_v0 }
  0xd5   : > { %v4914_v32 = vpop.f32.mrf.mxu0 }
  0xd6   : > { %798 = vmatmul.bf16.gmra.mxu3 %v4852_v49 }
  0xd8   : > { %606 = vmatmul.bf16.vlgmr.msrb.gmra.mxu0 %v4855_v50 }
  0xd9   : > { %v4918_v33 = vpop.f32.mrf.mxu3  ;;  %v4954_v53 = vpop.f32.mrf.mxu2 }
  0xdd   : > { %v4920_v34 = vpop.f32.mrf.mxu0 }
  0xe0   : > { %v4950_v51 = vpop.f32.mrf.mxu1 }
  0xe1   : > { %v4929_v39 = vpop.f32.mrf.mxu3  ;;  %v4963_v59 = vpop.f32.mrf.mxu2 }
  0xe5   : > { %v4931_v40 = vpop.f32.mrf.mxu0 }
  0xe6   : > { %803 = vmatmul.bf16.gmra.mxu3 %v4873_v0 }
  0xe8   : > { %611 = vmatmul.bf16.gmra.mxu0 %v4876_v1  ;;  %v4960_v57 = vpop.f32.mrf.mxu1 }
  0xe9   : > { %v4935_v41 = vpop.f32.mrf.mxu3  ;;  %v4973_v1 = vpop.f32.mrf.mxu2 }
  0xed   : > { %v4937_v42 = vpop.f32.mrf.mxu0 }
  0xf0   : > { %v4967_v61 = vpop.f32.mrf.mxu1 }
  0xf1   : > { %v4939_v43 = vpop.f32.mrf.mxu3  ;;  %v4980_v5 = vpop.f32.mrf.mxu2 }
  0xf5   : > { %v4941_v44 = vpop.f32.mrf.mxu0 }
  0xf8   : > { %v4976_v2 = vpop.f32.mrf.mxu1 }
  0xf9   : > { %v769_v45 = vpop.f32.mrf.mxu3  ;;  %v4989_v10 = vpop.f32.mrf.mxu2 }
  0xfd   : > { %v4943_v46 = vpop.f32.mrf.mxu0 }
 0x100   : > { %v4982_v8 = vpop.f32.mrf.mxu1 }
 0x101   : > { %v771_v47 = vpop.f32.mrf.mxu3  ;;  %v4995_v16 = vpop.f32.mrf.mxu2 }
 0x102   : > { %v809_v48 = vpack.c.bf16 %v771_v47, %v769_v45 }
 0x104   : > { %4076 = vmatmul.msk.bf16.vlgmr.msra.gmra.mxu0 %vm834_vm1, %v809_v48  ;;  %4084 = vmatmul.msk.bf16.vlgmr.msrb.gmra.mxu1 %vm834_vm1, %v809_v48 }
 0x105   : > { %v4947_v49 = vpop.f32.mrf.mxu0  ;;  %4092 = vmatmul.msk.bf16.vlgmr.msrb.gmra.mxu2 %vm834_vm1, %v809_v48 }
 0x108   : > { %v4991_v12 = vpop.f32.mrf.mxu1 }
 0x109   : > { %v774_v50 = vpop.f32.mrf.mxu3  ;;  %v5004_v20 = vpop.f32.mrf.mxu2 }
 0x10d   : > { %v4952_v52 = vpop.f32.mrf.mxu0 }
 0x110   : > { %v5000_v17 = vpop.f32.mrf.mxu1 }
 0x111   : > { %v776_v54 = vpop.f32.mrf.mxu3  ;;  %v5013_v25 = vpop.f32.mrf.mxu2 }
 0x112   : > { %v810_v55 = vpack.c.bf16 %v776_v54, %v774_v50 }
 0x114   : > { %4077 = vmatmul.msk.bf16.gmra.mxu0 %vm834_vm1, %v810_v55  ;;  %4085 = vmatmul.msk.bf16.gmra.mxu1 %vm834_vm1, %v810_v55 }
 0x115   : > { %v4958_v56 = vpop.f32.mrf.mxu0  ;;  %4093 = vmatmul.msk.bf16.gmra.mxu2 %vm834_vm1, %v810_v55 }
 0x118   : > { %v5006_v21 = vpop.f32.mrf.mxu1 }
 0x119   : > { %v779_v58 = vpop.f32.mrf.mxu3  ;;  %v5017_v29 = vpop.f32.mrf.mxu2 }
 0x11d   : > { %v4965_v60 = vpop.f32.mrf.mxu0 }
 0x120   : > { %v5015_v28 = vpop.f32.mrf.mxu1 }
 0x121   : > { %v781_v62 = vpop.f32.mrf.mxu3  ;;  %v5024_v38 = vpop.f32.mrf.mxu2 }
 0x122   : > { %v811_v63 = vpack.c.bf16 %v781_v62, %v779_v58  ;;  %v365_v62 = vld [vmem:[%s6679_s2] sm:$0x7] }
 0x124   : > { %4078 = vmatmul.msk.bf16.gmra.mxu0 %vm834_vm1, %v811_v63  ;;  %4086 = vmatmul.msk.bf16.gmra.mxu1 %vm834_vm1, %v811_v63 }
 0x125   : > { %v4971_v0 = vpop.f32.mrf.mxu0  ;;  %4094 = vmatmul.msk.bf16.gmra.mxu2 %vm834_vm1, %v811_v63  ;;  %v5038_v63 = vperm.slane %v365_v62, 0 }
 0x128   : > { %v5021_v36 = vpop.f32.mrf.mxu1 }
 0x129   : > { %v784_v3 = vpop.f32.mrf.mxu3  ;;  %v5028_v54 = vpop.f32.mrf.mxu2 }
 0x12d   : > { %v4978_v4 = vpop.f32.mrf.mxu0 }
 0x130   : > { %v5026_v47 = vpop.f32.mrf.mxu1 }
 0x131   : > { %v786_v6 = vpop.f32.mrf.mxu3 }
 0x132   : > { %v812_v7 = vpack.c.bf16 %v786_v6, %v784_v3  ;;  %v5040_v3 = vperm.slane %v365_v62, 1  ;;  %v5042_v6 = vpop.f32.mrf.mxu2 }
 0x134   : > { %4079 = vmatmul.msk.bf16.gmra.mxu0 %vm834_vm1, %v812_v7  ;;  %4087 = vmatmul.msk.bf16.gmra.mxu1 %vm834_vm1, %v812_v7 }
 0x135   : > { %v4986_v9 = vpop.f32.mrf.mxu0  ;;  %4095 = vmatmul.msk.bf16.gmra.mxu2 %vm834_vm1, %v812_v7  ;;  %v559_v7 = vadd.f32 %v4914_v32, %v5038_v63  ;;  %v561_v32 = vadd.f32 %v4920_v34, %v5038_v63 }
 0x138   : > { %v5033_v58 = vpop.f32.mrf.mxu1 }
 0x139   : > { %v789_v11 = vpop.f32.mrf.mxu3 }
 0x13d   : > { %v4993_v13 = vpop.f32.mrf.mxu0 }
 0x141   : > { %v791_v14 = vpop.f32.mrf.mxu3 }
 0x142   : > { %v813_v15 = vpack.c.bf16 %v791_v14, %v789_v11 }
 0x144   : > { %4080 = vmatmul.msk.bf16.vlgmr.msra.gmra.mxu3 %vm834_vm1, %v813_v15  ;;  %4088 = vmatmul.msk.bf16.gmra.mxu1 %vm834_vm1, %v813_v15 }
 0x145   : > { %4096 = vmatmul.msk.bf16.gmra.mxu2 %vm834_vm1, %v813_v15  ;;  %v5002_v18 = vpop.f32.mrf.mxu0 }
 0x149   : > { %v794_v19 = vpop.f32.mrf.mxu3 }
 0x14d   : > { %v5008_v22 = vpop.f32.mrf.mxu0 }
 0x151   : > { %v796_v23 = vpop.f32.mrf.mxu3 }
 0x152   : > { %v814_v24 = vpack.c.bf16 %v796_v23, %v794_v19 }
 0x154   : > { %4081 = vmatmul.msk.bf16.gmra.mxu3 %vm834_vm1, %v814_v24  ;;  %4089 = vmatmul.msk.bf16.gmra.mxu1 %vm834_vm1, %v814_v24 }
 0x155   : > { %4097 = vmatmul.msk.bf16.gmra.mxu2 %vm834_vm1, %v814_v24  ;;  %v607_v27 = vpop.f32.mrf.mxu0 }
 0x156   : > { %v608_v11 = vadd.f32 %v607_v27, %v5040_v3 }
 0x159   : > { %v799_v26 = vpop.f32.mrf.mxu3 }
 0x15d   : > { %v609_v35 = vpop.f32.mrf.mxu0 }
 0x15e   : > { %v610_v27 = vadd.f32 %v609_v35, %v5040_v3 }
 0x161   : > { %v801_v30 = vpop.f32.mrf.mxu3 }
 0x162   : > { %v815_v31 = vpack.c.bf16 %v801_v30, %v799_v26  ;;  %v5047_v26 = vperm.slane %v365_v62, 2 }
 0x164   : > { %4082 = vmatmul.msk.bf16.gmra.mxu3 %vm834_vm1, %v815_v31  ;;  %4090 = vmatmul.msk.bf16.gmra.mxu1 %vm834_vm1, %v815_v31  ;;  %v657_v30 = vadd.f32 %v4954_v53, %v5047_v26  ;;  %v564_v53 = vadd.f32 %v4931_v40, %v5038_v63 }
 0x165   : > { %4098 = vmatmul.msk.bf16.gmra.mxu2 %vm834_vm1, %v815_v31  ;;  %v612_v45 = vpop.f32.mrf.mxu0 }
 0x166   : > { %v613_v35 = vadd.f32 %v612_v45, %v5040_v3  ;;  %v659_v45 = vadd.f32 %v4963_v59, %v5047_v26  ;;  %v662_v59 = vadd.f32 %v4973_v1, %v5047_v26 }
 0x169   : > { %v804_v37 = vpop.f32.mrf.mxu3 }
 0x16d   : > { %v614_v55 = vpop.f32.mrf.mxu0 }
 0x171   : > { %v806_v48 = vpop.f32.mrf.mxu3 }
 0x172   : > { %v816_v50 = vpack.c.bf16 %v806_v48, %v804_v37 }
 0x174   : > { %4083 = vmatmul.msk.bf16.gmra.mxu3 %vm834_vm1, %v816_v50  ;;  %4091 = vmatmul.msk.bf16.gmra.mxu1 %vm834_vm1, %v816_v50 }
 0x175   : > { %4099 = vmatmul.msk.bf16.gmra.mxu2 %vm834_vm1, %v816_v50 }
 0x181   : > { %v878_v14 = vpop.f32.mrf.mxu0  ;;  %v927_v15 = vpop.f32.mrf.mxu1 }
 0x182   : > { %v1016_v19 = vadd.f32 %v878_v14, %v559_v7  ;;  %v1017_v23 = vadd.f32 %v927_v15, %v608_v11 }
 0x184   : > { %v1064_v24 = vpack.c.bf16 %v1017_v23, %v1016_v19 }
 0x186   : > { %1112 = vrot.lane.b32.xlu0 %v1064_v24, %s4694_s16  ;;  %1176 = vrot.lane.b32.xlu1 %v1064_v24, %s4695_s17  ;;  %v1208_v15 = vrot.slane %v1064_v24, 4  ;;  %v1384_v19 = vunpack.c.l.b16 %v1064_v24 }
 0x188   : > { %v976_v31 = vpop.f32.mrf.mxu2 }
 0x189   : > { %v1018_v37 = vadd.f32 %v976_v31, %v657_v30  ;;  %v880_v48 = vpop.f32.mrf.mxu0  ;;  %v929_v50 = vpop.f32.mrf.mxu1 }
 0x18a   : > { %v1019_v62 = vadd.f32 %v880_v48, %v561_v32  ;;  %v1020_v7 = vadd.f32 %v929_v50, %v610_v27  ;;  %v5065_v32 = vunpack.c.l.b16 %v1208_v15  ;;  %v615_v15 = vadd.f32 %v614_v55, %v5040_v3 }
 0x18b   : > { %v5056_v11 = vpack.c.bf16 %v1018_v37, %v1018_v37 }
 0x18c   : > { %v1066_v14 = vpack.c.bf16 %v1020_v7, %v1019_v62 }
 0x18d   : > { %6749 = vst [vmem:[#allocation11_spill] sm:$0xff] %v5056_v11 }
 0x18e   : > { %v1385_v23 = vunpack.c.l.b16 %v1066_v14  ;;  %1178 = vrot.lane.b32.xlu2 %v1066_v14, %s4695_s17  ;;  %1288 = vrot.lane.b32.xlu0 %v5056_v11, %s4694_s16  ;;  %v1209_v34 = vrot.slane %v1066_v14, 4 }
 0x18f   : > { %1144 = vrot.lane.b32.xlu1 %v1064_v24, %s4696_s18  ;;  %v566_v24 = vadd.f32 %v4937_v42, %v5038_v63 }
 0x190   : > { %v978_v30 = vpop.f32.mrf.mxu2  ;;  %v5067_v27 = vunpack.c.l.b16 %v1209_v34  ;;  %v5069_v31 = vpack.c.b16 %v1385_v23, %v1384_v19 }
 0x191   : > { %v883_v37 = vpop.f32.mrf.mxu0  ;;  %v932_v48 = vpop.f32.mrf.mxu1  ;;  %v1021_v23 = vadd.f32 %v978_v30, %v659_v45  ;;  %v569_v30 = vadd.f32 %v4941_v44, %v5038_v63  ;;  %v618_v45 = vadd.f32 %v4950_v51, %v5040_v3 }
 0x192   : > { %6750 = vst [vmem:[#allocation12_spill] sm:$0xff] %v5069_v31  ;;  %v1022_v50 = vadd.f32 %v883_v37, %v564_v53  ;;  %v1023_v62 = vadd.f32 %v932_v48, %v613_v35 }
 0x194   : > { %v1068_v40 = vpack.c.bf16 %v1023_v62, %v1022_v50  ;;  %v5081_v62 = vpack.c.bf16 %v1021_v23, %v1021_v23 }
 0x196   : > { %1146 = vrot.lane.b32.xlu2 %v1066_v14, %s4696_s18  ;;  %1116 = vrot.lane.b32.xlu0 %v1068_v40, %s4694_s16  ;;  %v1210_v50 = vrot.slane %v1068_v40, 4 }
 0x197   : > { %1114 = vrot.lane.b32.xlu1 %v1066_v14, %s4694_s16  ;;  %v1386_v14 = vunpack.c.l.b16 %v1068_v40 }
 0x198   : > { %v981_v19 = vpop.f32.mrf.mxu2  ;;  %v5095_v23 = vunpack.c.l.b16 %v1210_v50  ;;  %v571_v50 = vadd.f32 %v4943_v46, %v5038_v63  ;;  %v574_v46 = vadd.f32 %v4947_v49, %v5038_v63 }
 0x199   : > { %v885_v34 = vpop.f32.mrf.mxu0  ;;  %v934_v53 = vpop.f32.mrf.mxu1  ;;  %v1024_v1 = vadd.f32 %v981_v19, %v662_v59  ;;  %v620_v59 = vadd.f32 %v4960_v57, %v5040_v3  ;;  %v623_v57 = vadd.f32 %v4967_v61, %v5040_v3  ;;  %v667_v61 = vadd.f32 %v4989_v10, %v5047_v26 }
 0x19a   : > { %v1025_v35 = vadd.f32 %v885_v34, %v566_v24  ;;  %v1026_v37 = vadd.f32 %v934_v53, %v615_v15  ;;  %v664_v24 = vadd.f32 %v4980_v5, %v5047_v26 }
 0x19b   : > { %v5103_v5 = vpack.c.bf16 %v1024_v1, %v1024_v1 }
 0x19c   : > { %v1070_v48 = vpack.c.bf16 %v1026_v37, %v1025_v35 }
 0x19e   : > { %1148 = vrot.lane.b32.xlu2 %v1068_v40, %s4696_s18  ;;  %1150 = vrot.lane.b32.xlu0 %v1070_v48, %s4696_s18  ;;  %v1211_v42 = vrot.slane %v1070_v48, 4  ;;  %v1387_v55 = vunpack.c.l.b16 %v1070_v48 }
 0x19f   : > { %1290 = vrot.lane.b32.xlu1 %v5081_v62, %s4694_s16 }
 0x1a0   : > { %v983_v15 = vpop.f32.mrf.mxu2  ;;  %v5097_v34 = vunpack.c.l.b16 %v1211_v42  ;;  %v5099_v53 = vpack.c.b16 %v1387_v55, %v1386_v14 }
 0x1a1   : > { %v1027_v35 = vadd.f32 %v983_v15, %v664_v24  ;;  %v888_v37 = vpop.f32.mrf.mxu0  ;;  %v937_v44 = vpop.f32.mrf.mxu1 }
 0x1a2   : > { %v1028_v7 = vadd.f32 %v888_v37, %v569_v30  ;;  %v1029_v11 = vadd.f32 %v937_v44, %v618_v45 }
 0x1a3   : > { %v5105_v31 = vpack.c.bf16 %v1027_v35, %v1027_v35 }
 0x1a4   : > { %v1072_v19 = vpack.c.bf16 %v1029_v11, %v1028_v7 }
 0x1a6   : > { %1292 = vrot.lane.b32.xlu2 %v5103_v5, %s4694_s16  ;;  %1294 = vrot.lane.b32.xlu0 %v5105_v31, %s4694_s16  ;;  %v1212_v7 = vrot.slane %v1072_v19, 4  ;;  %v1388_v1 = vunpack.c.l.b16 %v1072_v19 }
 0x1a7   : > { %1180 = vrot.lane.b32.xlu1 %v1068_v40, %s4695_s17 }
 0x1a8   : > { %v986_v42 = vpop.f32.mrf.mxu2  ;;  %v5123_v15 = vunpack.c.l.b16 %v1212_v7 }
 0x1a9   : > { %v890_v14 = vpop.f32.mrf.mxu0  ;;  %v939_v55 = vpop.f32.mrf.mxu1  ;;  %v1030_v7 = vadd.f32 %v986_v42, %v667_v61 }
 0x1aa   : > { %v1031_v30 = vadd.f32 %v890_v14, %v571_v50  ;;  %v1032_v45 = vadd.f32 %v939_v55, %v620_v59 }
 0x1ac   : > { %v1074_v11 = vpack.c.bf16 %v1032_v45, %v1031_v30  ;;  %v625_v45 = vadd.f32 %v4976_v2, %v5040_v3 }
 0x1ae   : > { %1182 = vrot.lane.b32.xlu2 %v1070_v48, %s4695_s17  ;;  %1120 = vrot.lane.b32.xlu0 %v1072_v19, %s4694_s16  ;;  %v1213_v24 = vrot.slane %v1074_v11, 4  ;;  %v1389_v40 = vunpack.c.l.b16 %v1074_v11 }
 0x1af   : > { %1118 = vrot.lane.b32.xlu1 %v1070_v48, %s4694_s16  ;;  %v576_v48 = vadd.f32 %v4952_v52, %v5038_v63 }
 0x1b0   : > { %v5125_v35 = vunpack.c.l.b16 %v1213_v24  ;;  %v5127_v37 = vpack.c.b16 %v1389_v40, %v1388_v1  ;;  %v988_v30 = vpop.f32.mrf.mxu2 }
 0x1b1   : > { %v893_v44 = vpop.f32.mrf.mxu0  ;;  %v942_v50 = vpop.f32.mrf.mxu1 }
 0x1b2   : > { %v1034_v59 = vadd.f32 %v893_v44, %v574_v46  ;;  %v1035_v14 = vadd.f32 %v942_v50, %v623_v57  ;;  %v669_v50 = vadd.f32 %v4995_v16, %v5047_v26 }
 0x1b4   : > { %v1076_v49 = vpack.c.bf16 %v1035_v14, %v1034_v59  ;;  %v5142_v59 = vpack.c.bf16 %v1030_v7, %v1030_v7  ;;  %v1033_v14 = vadd.f32 %v988_v30, %v669_v50  ;;  %v579_v30 = vadd.f32 %v4958_v56, %v5038_v63 }
 0x1b5   : > { %v581_v56 = vadd.f32 %v4965_v60, %v5038_v63 }
 0x1b6   : > { %1152 = vrot.lane.b32.xlu2 %v1072_v19, %s4696_s18  ;;  %1154 = vrot.lane.b32.xlu0 %v1074_v11, %s4696_s18  ;;  %v1214_v44 = vrot.slane %v1076_v49, 4  ;;  %v1390_v2 = vunpack.c.l.b16 %v1076_v49 }
 0x1b7   : > { %1184 = vrot.lane.b32.xlu1 %v1072_v19, %s4695_s17  ;;  %v672_v19 = vadd.f32 %v5004_v20, %v5047_v26 }
 0x1b8   : > { %v991_v10 = vpop.f32.mrf.mxu2 }
 0x1b9   : > { %v895_v24 = vpop.f32.mrf.mxu0  ;;  %v944_v1 = vpop.f32.mrf.mxu1  ;;  %v1036_v61 = vadd.f32 %v991_v10, %v672_v19 }
 0x1ba   : > { %v1037_v40 = vadd.f32 %v895_v24, %v576_v48  ;;  %v1038_v46 = vadd.f32 %v944_v1, %v625_v45  ;;  %v5150_v48 = vunpack.c.l.b16 %v1214_v44  ;;  %v5158_v24 = vpack.c.bf16 %v1033_v14, %v1033_v14 }
 0x1bb   : > { %v5160_v1 = vpack.c.bf16 %v1036_v61, %v1036_v61 }
 0x1bc   : > { %v1078_v57 = vpack.c.bf16 %v1038_v46, %v1037_v40  ;;  %v628_v40 = vadd.f32 %v4982_v8, %v5040_v3  ;;  %v630_v8 = vadd.f32 %v4991_v12, %v5040_v3  ;;  %v584_v12 = vadd.f32 %v4971_v0, %v5038_v63 }
 0x1be   : > { %1186 = vrot.lane.b32.xlu2 %v1074_v11, %s4695_s17  ;;  %1124 = vrot.lane.b32.xlu0 %v1076_v49, %s4694_s16  ;;  %v1215_v52 = vrot.slane %v1078_v57, 4  ;;  %v1391_v42 = vunpack.c.l.b16 %v1078_v57 }
 0x1bf   : > { %1296 = vrot.lane.b32.xlu1 %v5142_v59, %s4694_s16 }
 0x1c0   : > { %v5152_v16 = vunpack.c.l.b16 %v1215_v52  ;;  %v5154_v45 = vpack.c.b16 %v1391_v42, %v1390_v2  ;;  %v993_v10 = vpop.f32.mrf.mxu2 }
 0x1c1   : > { %v947_v7 = vpop.f32.mrf.mxu1 }
 0x1c2   : > { %v1427_v20 = vpack.c.b16 %v5152_v16, %v5150_v48  ;;  %v1041_v44 = vadd.f32 %v947_v7, %v628_v40  ;;  %v6759_v48 = vpack.c.b16 %v5125_v35, %v5123_v15 }
 0x1c4   : > { %v1464_v16 = vsel %vm1432_vm2, %v6759_v48, 0 }
 0x1c6   : > { %1298 = vrot.lane.b32.xlu2 %v5158_v24, %s4694_s16  ;;  %1300 = vrot.lane.b32.xlu0 %v5160_v1, %s4694_s16 }
 0x1c7   : > { %1122 = vrot.lane.b32.xlu1 %v1074_v11, %s4694_s16  ;;  %v898_v46 = vpop.f32.mrf.mxu3 }
 0x1c8   : > { %v1040_v50 = vadd.f32 %v898_v46, %v579_v30  ;;  %v996_v30 = vpop.f32.mrf.mxu2 }
 0x1c9   : > { %v949_v19 = vpop.f32.mrf.mxu1 }
 0x1ca   : > { %v1080_v52 = vpack.c.bf16 %v1041_v44, %v1040_v50  ;;  %v1044_v11 = vadd.f32 %v949_v19, %v630_v8  ;;  %v633_v44 = vadd.f32 %v5000_v17, %v5040_v3 }
 0x1cc   : > { %v1216_v7 = vrot.slane %v1080_v52, 4  ;;  %v1392_v60 = vunpack.c.l.b16 %v1080_v52 }
 0x1ce   : > { %1156 = vrot.lane.b32.xlu2 %v1076_v49, %s4696_s18  ;;  %1158 = vrot.lane.b32.xlu0 %v1078_v57, %s4696_s18 }
 0x1cf   : > { %1188 = vrot.lane.b32.xlu1 %v1076_v49, %s4695_s17  ;;  %v900_v2 = vpop.f32.mrf.mxu3  ;;  %v5188_v49 = vunpack.c.l.b16 %v1216_v7  ;;  %v586_v7 = vadd.f32 %v4978_v4, %v5038_v63 }
 0x1d0   : > { %v1043_v42 = vadd.f32 %v900_v2, %v581_v56  ;;  %v674_v56 = vadd.f32 %v5013_v25, %v5047_v26  ;;  %v635_v25 = vadd.f32 %v5006_v21, %v5040_v3 }
 0x1d1   : > { %v952_v14 = vpop.f32.mrf.mxu1 }
 0x1d2   : > { %v5178_v61 = vpack.c.bf16 %v1044_v11, %v1043_v42  ;;  %v1047_v0 = vadd.f32 %v952_v14, %v633_v44  ;;  %v1039_v11 = vadd.f32 %v993_v10, %v674_v56  ;;  %v679_v14 = vadd.f32 %v5024_v38, %v5047_v26 }
 0x1d4   : > { %v1217_v40 = vrot.slane %v5178_v61, 4  ;;  %v1393_v46 = vunpack.c.l.b16 %v5178_v61 }
 0x1d6   : > { %1190 = vrot.lane.b32.xlu2 %v1078_v57, %s4695_s17  ;;  %1128 = vrot.lane.b32.xlu0 %v1080_v52, %s4694_s16  ;;  %v5190_v50 = vunpack.c.l.b16 %v1217_v40  ;;  %v5192_v19 = vpack.c.b16 %v1393_v46, %v1392_v60  ;;  %v5203_v40 = vpack.c.bf16 %v1039_v11, %v1039_v11  ;;  %v998_v60 = vpop.f32.mrf.mxu2 }
 0x1d7   : > { %1126 = vrot.lane.b32.xlu1 %v1078_v57, %s4694_s16  ;;  %v903_v8 = vpop.f32.mrf.mxu3  ;;  %v677_v57 = vadd.f32 %v5017_v29, %v5047_v26  ;;  %v1045_v46 = vadd.f32 %v998_v60, %v679_v14 }
 0x1d8   : > { %v1046_v2 = vadd.f32 %v903_v8, %v584_v12  ;;  %v1428_v17 = vpack.c.b16 %v5190_v50, %v5188_v49 }
 0x1d9   : > { %v954_v42 = vpop.f32.mrf.mxu1  ;;  %v1042_v10 = vadd.f32 %v996_v30, %v677_v57  ;;  %v5220_v8 = vpack.c.bf16 %v1045_v46, %v1045_v46  ;;  %v638_v30 = vadd.f32 %v5015_v28, %v5040_v3  ;;  %v591_v28 = vadd.f32 %v4993_v13, %v5038_v63 }
 0x1da   : > { %v5199_v51 = vpack.c.bf16 %v1047_v0, %v1046_v2  ;;  %v1050_v12 = vadd.f32 %v954_v42, %v635_v25  ;;  %v589_v2 = vadd.f32 %v4986_v9, %v5038_v63 }
 0x1db   : > { %v5218_v29 = vpack.c.bf16 %v1042_v10, %v1042_v10 }
 0x1dc   : > { %v1394_v38 = vunpack.c.l.b16 %v5199_v51 }
 0x1de   : > { %1160 = vrot.lane.b32.xlu2 %v1080_v52, %s4696_s18  ;;  %1162 = vrot.lane.b32.xlu0 %v5178_v61, %s4696_s18  ;;  %v1001_v14 = vpop.f32.mrf.mxu2 }
 0x1df   : > { %1302 = vrot.lane.b32.xlu1 %v5203_v40, %s4694_s16  ;;  %v905_v4 = vpop.f32.mrf.mxu3 }
 0x1e0   : > { %v1049_v44 = vadd.f32 %v905_v4, %v586_v7  ;;  %v640_v4 = vadd.f32 %v5021_v36, %v5040_v3 }
 0x1e1   : > { %v957_v21 = vpop.f32.mrf.mxu1 }
 0x1e2   : > { %v5216_v56 = vpack.c.bf16 %v1050_v12, %v1049_v44  ;;  %v1053_v7 = vadd.f32 %v957_v21, %v638_v30  ;;  %v682_v30 = vadd.f32 %v5028_v54, %v5047_v26 }
 0x1e4   : > { %v1395_v0 = vunpack.c.l.b16 %v5216_v56 }
 0x1e6   : > { %1304 = vrot.lane.b32.xlu2 %v5218_v29, %s4694_s16  ;;  %1306 = vrot.lane.b32.xlu0 %v5220_v8, %s4694_s16  ;;  %v5232_v11 = vpack.c.b16 %v1395_v0, %v1394_v38  ;;  %v594_v38 = vadd.f32 %v5002_v18, %v5038_v63  ;;  %v643_v0 = vadd.f32 %v5026_v47, %v5040_v3 }
 0x1e7   : > { %1192 = vrot.lane.b32.xlu1 %v1080_v52, %s4695_s17  ;;  %v908_v42 = vpop.f32.mrf.mxu3  ;;  %v1048_v47 = vadd.f32 %v1001_v14, %v682_v30  ;;  %v645_v14 = vadd.f32 %v5033_v58, %v5040_v3 }
 0x1e8   : > { %v1052_v60 = vadd.f32 %v908_v42, %v589_v2  ;;  %v5235_v25 = vpop.permute.xlu2 %1178  ;;  %v1003_v2 = vpop.f32.mrf.mxu2  ;;  %v684_v42 = vadd.f32 %v5042_v6, %v5047_v26 }
 0x1e9   : > { %v959_v57 = vpop.f32.mrf.mxu1 }
 0x1ea   : > { %v5237_v9 = vpack.c.bf16 %v1053_v7, %v1052_v60  ;;  %v1056_v10 = vadd.f32 %v959_v57, %v640_v4  ;;  %v1051_v60 = vadd.f32 %v1003_v2, %v684_v42  ;;  %v687_v42 = vadd.f32 %v4918_v33, %v5047_v26 }
 0x1ec   : > { %v1396_v21 = vunpack.c.l.b16 %v5237_v9 }
 0x1ee   : > { %1194 = vrot.lane.b32.xlu2 %v5178_v61, %s4695_s17  ;;  %1132 = vrot.lane.b32.xlu0 %v5199_v51, %s4694_s16 }
 0x1ef   : > { %1368 = vrot.lane.b32.xlu1 %v5218_v29, %s4695_s17  ;;  %v910_v52 = vpop.f32.mrf.mxu3 }
 0x1f0   : > { %v1055_v46 = vadd.f32 %v910_v52, %v591_v28  ;;  %v5249_v12 = vpop.permute.xlu2 %1146  ;;  %v1006_v30 = vpop.f32.mrf.mxu2 }
 0x1f1   : > { %v962_v13 = vpop.f32.mrf.mxu1 }
 0x1f2   : > { %v5251_v44 = vpack.c.bf16 %v1056_v10, %v1055_v46  ;;  %v1059_v57 = vadd.f32 %v962_v13, %v643_v0  ;;  %v5279_v10 = vpack.c.bf16 %v1048_v47, %v1048_v47  ;;  %v5281_v46 = vpack.c.bf16 %v1051_v60, %v1051_v60 }
 0x1f4   : > { %v1397_v36 = vunpack.c.l.b16 %v5251_v44  ;;  %v1221_v60 = vrot.slane %v5251_v44, 4 }
 0x1f6   : > { %1164 = vrot.lane.b32.xlu2 %v5199_v51, %s4696_s18  ;;  %1166 = vrot.lane.b32.xlu0 %v5216_v56, %s4696_s18  ;;  %v5267_v7 = vpack.c.b16 %v1397_v36, %v1396_v21 }
 0x1f7   : > { %1130 = vrot.lane.b32.xlu1 %v5178_v61, %s4694_s16  ;;  %v913_v18 = vpop.f32.mrf.mxu3  ;;  %v596_v61 = vadd.f32 %v5008_v22, %v5038_v63 }
 0x1f8   : > { %v1058_v28 = vadd.f32 %v913_v18, %v594_v38  ;;  %v5271_v54 = vpop.permute.xlu2 %1148  ;;  %v5273_v4 = vpop.permute.xlu0 %1112 }
 0x1f9   : > { %6751 = vst [vmem:[#allocation13_spill] sm:$0xff] %v5273_v4  ;;  %v5275_v6 = vpop.permute.xlu1 %1176  ;;  %v964_v21 = vpop.f32.mrf.mxu1 }
 0x1fa   : > { %v5277_v52 = vpack.c.bf16 %v1059_v57, %v1058_v28  ;;  %v1062_v36 = vadd.f32 %v964_v21, %v645_v14  ;;  %v1054_v57 = vadd.f32 %v1006_v30, %v687_v42  ;;  %v1220_v14 = vrot.slane %v5237_v9, 4 }
 0x1fb   : > { %v1219_v30 = vrot.slane %v5216_v56, 4 }
 0x1fc   : > { %v1222_v58 = vrot.slane %v5277_v52, 4 }
 0x1fe   : > { %1372 = vrot.lane.b32.xlu2 %v5279_v10, %s4695_s17  ;;  %1374 = vrot.lane.b32.xlu0 %v5281_v46, %s4695_s17  ;;  %v1422_v18 = vunpack.c.l.b16 %v1222_v58  ;;  %v1420_v58 = vunpack.c.l.b16 %v1220_v14  ;;  %v1419_v14 = vunpack.c.l.b16 %v1219_v30 }
 0x1ff   : > { %1370 = vrot.lane.b32.xlu1 %v5220_v8, %s4695_s17  ;;  %v915_v13 = vpop.f32.mrf.mxu3 }
 0x200   : > { %v1061_v38 = vadd.f32 %v915_v13, %v596_v61  ;;  %v5293_v0 = vpop.permute.xlu2 %1292  ;;  %v5295_v2 = vpop.permute.xlu0 %1288 }
 0x201   : > { %6752 = vst [vmem:[#allocation14_spill] sm:$0xff] %v5293_v0  ;;  %v5297_v22 = vpop.permute.xlu1 %1144 }
 0x202   : > { %6753 = vst [vmem:[#allocation15_spill] sm:$0xff] %v5295_v2  ;;  %v5299_v63 = vpack.c.bf16 %v1062_v36, %v1061_v38  ;;  %v1421_v36 = vunpack.c.l.b16 %v1221_v60  ;;  %v5320_v38 = vpack.c.bf16 %v1054_v57, %v1054_v57  ;;  %v1218_v60 = vrot.slane %v5199_v51, 4  ;;  %v1008_v57 = vpop.f32.mrf.mxu2 }
 0x204   : > { %v1223_v3 = vrot.slane %v5299_v63, 4 }
 0x206   : > { %1198 = vrot.lane.b32.xlu2 %v5216_v56, %s4695_s17  ;;  %1136 = vrot.lane.b32.xlu0 %v5237_v9, %s4694_s16  ;;  %v1423_v47 = vunpack.c.l.b16 %v1223_v3  ;;  %v1430_v3 = vpack.c.b16 %v1421_v36, %v1420_v58 }
 0x207   : > { %1196 = vrot.lane.b32.xlu1 %v5199_v51, %s4695_s17 }
 0x208   : > { %v5312_v28 = vpop.permute.xlu2 %1182  ;;  %v1431_v21 = vpack.c.b16 %v1423_v47, %v1422_v18  ;;  %v5314_v61 = vpop.permute.xlu0 %1116 }
 0x209   : > { %v5316_v33 = vpop.permute.xlu1 %1114 }
 0x20a   : > { %6754 = vst [vmem:[#allocation16_spill] sm:$0xff] %v5316_v33  ;;  %v1479_v13 = vsel %vm1432_vm2, %v1431_v21, 0  ;;  %v1476_v21 = vsel %vm1432_vm2, %v1430_v3, 0  ;;  %v1011_v30 = vpop.f32.mrf.mxu2 }
 0x20b   : > { %1481 = vmatpush.bf16.xpose.msrb.mxu3 %v1479_v13  ;;  %v1418_v13 = vunpack.c.l.b16 %v1218_v60  ;;  %v692_v60 = vadd.f32 %v4935_v41, %v5047_v26  ;;  %v1470_v41 = vsel %vm1432_vm2, %v1428_v17, 0 }
 0x20d   : > { %v1429_v36 = vpack.c.b16 %v1419_v14, %v1418_v13 }
 0x20e   : > { %1310 = vrot.lane.b32.xlu2 %v5281_v46, %s4694_s16  ;;  %1312 = vrot.lane.b32.xlu0 %v5320_v38, %s4694_s16 }
 0x20f   : > { %1308 = vrot.lane.b32.xlu1 %v5279_v10, %s4694_s16  ;;  %v1473_v3 = vsel %vm1432_vm2, %v1429_v36, 0 }
 0x210   : > { %v5329_v42 = vpop.permute.xlu2 %1152  ;;  %v5331_v18 = vpop.permute.xlu0 %1150 }
 0x211   : > { %v5333_v47 = vpop.permute.xlu1 %1290 }
 0x212   : > { %6755 = vst [vmem:[#allocation17_spill] sm:$0xff] %v5333_v47  ;;  %v2723_v47 = vunpack.c.l.b16 %v5081_v62 }
 0x213   : > { %1482 = vmatpush.bf16.xpose.msrb.mxu3 %v1476_v21 }
 0x216   : > { %1200 = vrot.lane.b32.xlu2 %v5237_v9, %s4695_s17  ;;  %1170 = vrot.lane.b32.xlu0 %v5251_v44, %s4696_s18 }
 0x217   : > { %1134 = vrot.lane.b32.xlu1 %v5216_v56, %s4694_s16  ;;  %v1060_v56 = vadd.f32 %v1011_v30, %v692_v60 }
 0x218   : > { %v5343_v58 = vpop.permute.xlu2 %1186  ;;  %v5345_v55 = vpop.permute.xlu0 %1294 }
 0x219   : > { %6756 = vst [vmem:[#allocation18_spill] sm:$0xff] %v5345_v55  ;;  %v5347_v51 = vpop.permute.xlu1 %1180  ;;  %v5368_v36 = vpack.c.bf16 %v1060_v56, %v1060_v56 }
 0x21b   : > { %1483 = vmatpush.bf16.xpose.msrb.mxu3 %v1473_v3 }
 0x21e   : > { %1168 = vrot.lane.b32.xlu2 %v5237_v9, %s4696_s18  ;;  %1204 = vrot.lane.b32.xlu0 %v5277_v52, %s4695_s17  ;;  %v689_v9 = vadd.f32 %v4929_v39, %v5047_v26  ;;  %v1467_v39 = vsel %vm1432_vm2, %v1427_v20, 0  ;;  %v1013_v20 = vpop.f32.mrf.mxu2 }
 0x21f   : > { %1376 = vrot.lane.b32.xlu1 %v5320_v38, %s4695_s17 }
 0x220   : > { %v5358_v21 = vpop.permute.xlu2 %1298  ;;  %v5360_v14 = vpop.permute.xlu0 %1120  ;;  %v1057_v3 = vadd.f32 %v1008_v57, %v689_v9 }
 0x221   : > { %6757 = vst [vmem:[#allocation19_spill] sm:$0xff] %v5358_v21  ;;  %v5362_v13 = vpop.permute.xlu1 %1118 }
 0x222   : > { %v1091_v17 = vpack.c.bf16 %v1057_v3, %v1057_v3 }
 0x223   : > { %1484 = vmatpush.bf16.xpose.msrb.mxu3 %v1470_v41  ;;  %v694_v41 = vadd.f32 %v4939_v43, %v5047_v26  ;;  %v6761_v43 = vpack.c.b16 %v5097_v34, %v5095_v23  ;;  %v6763_v34 = vpack.c.b16 %v5067_v27, %v5065_v32  ;;  %v2733_v32 = vunpack.c.l.b16 %v5281_v46 }
 0x225   : > { %v1461_v26 = vsel %vm1432_vm2, %v6761_v43, 0  ;;  %v2735_v43 = vunpack.c.l.b16 %v1091_v17 }
 0x226   : > { %1202 = vrot.lane.b32.xlu2 %v5251_v44, %s4695_s17  ;;  %1316 = vrot.lane.b32.xlu0 %v5368_v36, %s4694_s16 }
 0x227   : > { %1344 = vrot.lane.b32.xlu1 %v5320_v38, %s4696_s18 }
 0x228   : > { %v5378_v30 = vpop.permute.xlu2 %1156  ;;  %v5380_v49 = vpop.permute.xlu0 %1154 }
 0x229   : > { %v5382_v50 = vpop.permute.xlu1 %1184 }
 0x22b   : > { %1485 = vmatpush.bf16.xpose.msrb.mxu3 %v1467_v39 }
 0x22e   : > { %1378 = vrot.lane.b32.xlu2 %v1091_v17, %s4695_s17  ;;  %1348 = vrot.lane.b32.xlu0 %v5368_v36, %s4696_s18 }
 0x22f   : > { %1138 = vrot.lane.b32.xlu1 %v5251_v44, %s4694_s16  ;;  %v1063_v44 = vadd.f32 %v1013_v20, %v694_v41  ;;  %v1458_v41 = vsel %vm1432_vm2, %v6763_v34, 0 }
 0x230   : > { %v5393_v57 = vpop.permute.xlu2 %1190  ;;  %v5395_v60 = vpop.permute.xlu0 %1124 }
 0x231   : > { %v5397_v56 = vpop.permute.xlu1 %1296  ;;  %v5416_v35 = vpack.c.bf16 %v1063_v44, %v1063_v44 }
 0x232   : > { %6758 = vst [vmem:[#allocation20_spill] sm:$0xff] %v5397_v56 }
 0x233   : > { %1486 = vmatpush.bf16.xpose.msrb.mxu3 %v1464_v16  ;;  %v2737_v39 = vunpack.c.l.b16 %v5416_v35  ;;  %v2736_v16 = vunpack.c.l.b16 %v5368_v36 }
 0x235   : > { %v2745_v44 = vpack.c.b16 %v2737_v39, %v2736_v16  ;;  %v6765_v16 = vld [vmem:[#allocation12_spill] sm:$0xff] }
 0x236   : > { %1172 = vrot.lane.b32.xlu2 %v5277_v52, %s4696_s18  ;;  %1206 = vrot.lane.b32.xlu0 %v5299_v63, %s4695_s17 }
 0x237   : > { %1314 = vrot.lane.b32.xlu1 %v1091_v17, %s4694_s16 }
 0x238   : > { %v5410_v9 = vpop.permute.xlu2 %1160  ;;  %v5412_v3 = vpop.permute.xlu0 %1300 }
 0x239   : > { %6760 = vst [vmem:[#allocation21_spill] sm:$0xff] %v5412_v3  ;;  %v5414_v15 = vpop.permute.xlu1 %1122 }
 0x23b   : > { %1487 = vmatpush.bf16.xpose.msrb.mxu3 %v1461_v26  ;;  %v2734_v26 = vunpack.c.l.b16 %v5320_v38  ;;  %v2732_v38 = vunpack.c.l.b16 %v5279_v10 }
 0x23d   : > { %v2744_v2 = vpack.c.b16 %v2735_v43, %v2734_v26  ;;  %v2743_v34 = vpack.c.b16 %v2733_v32, %v2732_v38  ;;  %v2728_v32 = vunpack.c.l.b16 %v5160_v1 }
 0x23e   : > { %1366 = vrot.lane.b32.xlu2 %v5203_v40, %s4695_s17  ;;  %1340 = vrot.lane.b32.xlu0 %v5279_v10, %s4696_s18  ;;  %v2729_v10 = vunpack.c.l.b16 %v5203_v40 }
 0x23f   : > { %1346 = vrot.lane.b32.xlu1 %v1091_v17, %s4696_s18 }
 0x240   : > { %v5428_v48 = vpop.permute.xlu2 %1304  ;;  %v5431_v20 = vpop.permute.xlu0 %1158  ;;  %v2741_v38 = vpack.c.b16 %v2729_v10, %v2728_v32 }
 0x241   : > { %6762 = vst [vmem:[#allocation22_spill] sm:$0xff] %v5428_v48  ;;  %v5433_v23 = vpop.permute.xlu1 %1188 }
 0x243   : > { %1488 = vmatpush.bf16.xpose.msrb.mxu3 %v1458_v41  ;;  %v2731_v41 = vunpack.c.l.b16 %v5220_v8 }
 0x246   : > { %1342 = vrot.lane.b32.xlu2 %v5281_v46, %s4696_s18  ;;  %1174 = vrot.lane.b32.xlu0 %v5299_v63, %s4696_s18 }
 0x247   : > { %1140 = vrot.lane.b32.xlu1 %v5277_v52, %s4694_s16 }
 0x248   : > { %v5447_v27 = vpop.permute.xlu2 %1194  ;;  %v5449_v39 = vpop.permute.xlu0 %1128 }
 0x249   : > { %6764 = vst [vmem:[#allocation23_spill] sm:$0xff] %v5449_v39  ;;  %v5451_v17 = vpop.permute.xlu1 %1126 }
 0x24a   : > { %4100 = vmatmul.msk.bf16.vlgmr.msrb.gmra.mxu3 %vm1432_vm2, %v6765_v16  ;;  %v2727_v16 = vunpack.c.l.b16 %v5158_v24 }
 0x24b   : > { %2754 = vmatpush.bf16.msra.mxu3 %v2745_v44  ;;  %v2730_v44 = vunpack.c.l.b16 %v5218_v29 }
 0x24d   : > { %v2742_v46 = vpack.c.b16 %v2731_v41, %v2730_v44  ;;  %v2725_v44 = vunpack.c.l.b16 %v5105_v31 }
 0x24e   : > { %1362 = vrot.lane.b32.xlu2 %v5158_v24, %s4695_s17  ;;  %1360 = vrot.lane.b32.xlu0 %v5142_v59, %s4695_s17 }
 0x24f   : > { %2755 = vmatpush.bf16.msra.mxu3 %v2744_v2  ;;  %1380 = vrot.lane.b32.xlu1 %v5368_v36, %s4695_s17  ;;  %v6768_v36 = vld [vmem:[#allocation11_spill] sm:$0xff] }
 0x250   : > { %v5465_v2 = vpop.permute.xlu2 %1164  ;;  %v5467_v43 = vpop.permute.xlu0 %1162 }
 0x251   : > { %6766 = vst [vmem:[#allocation12_spill] sm:$0xff] %v5465_v2  ;;  %v5469_v26 = vpop.permute.xlu1 %1302 }
 0x252   : > { %6767 = vst [vmem:[#allocation24_spill] sm:$0xff] %v5469_v26 }
 0x253   : > { %2756 = vmatpush.bf16.msra.mxu3 %v2743_v34  ;;  %v2726_v34 = vunpack.c.l.b16 %v5142_v59 }
 0x255   : > { %v2740_v41 = vpack.c.b16 %v2727_v16, %v2726_v34  ;;  %v2722_v16 = vunpack.c.l.b16 %v6768_v36 }
 0x256   : > { %1336 = vrot.lane.b32.xlu2 %v5218_v29, %s4696_s18  ;;  %1352 = vrot.lane.b32.xlu0 %v6768_v36, %s4695_s17 }
 0x257   : > { %2757 = vmatpush.bf16.msra.mxu3 %v2742_v46  ;;  %1142 = vrot.lane.b32.xlu1 %v5299_v63, %s4694_s16  ;;  %v2738_v34 = vpack.c.b16 %v2723_v47, %v2722_v16 }
 0x258   : > { %v5481_v46 = vpop.permute.xlu2 %1372  ;;  %v5483_v10 = vpop.permute.xlu0 %1306 }
 0x259   : > { %6769 = vst [vmem:[#allocation11_spill] sm:$0xff] %v5483_v10  ;;  %v5485_v32 = vpop.permute.xlu1 %1192 }
 0x25a   : > { %4101 = vmatmul.msk.bf16.gmra.mxu3 %vm1432_vm2, %v5099_v53 }
 0x25b   : > { %2758 = vmatpush.bf16.msra.mxu3 %v2741_v38  ;;  %v2724_v38 = vunpack.c.l.b16 %v5103_v5 }
 0x25d   : > { %v2739_v29 = vpack.c.b16 %v2725_v44, %v2724_v38 }
 0x25e   : > { %1356 = vrot.lane.b32.xlu2 %v5103_v5, %s4695_s17  ;;  %1354 = vrot.lane.b32.xlu0 %v5081_v62, %s4695_s17 }
 0x25f   : > { %2759 = vmatpush.bf16.msra.mxu3 %v2740_v41  ;;  %1364 = vrot.lane.b32.xlu1 %v5160_v1, %s4695_s17 }
 0x260   : > { %v5498_v41 = vpop.permute.xlu2 %1198  ;;  %v5500_v0 = vpop.permute.xlu0 %1132 }
 0x261   : > { %6770 = vst [vmem:[#allocation25_spill] sm:$0xff] %v5498_v41  ;;  %v5502_v53 = vpop.permute.xlu1 %1368 }
 0x262   : > { %6771 = vst [vmem:[#allocation26_spill] sm:$0xff] %v5500_v0 }
 0x263   : > { %2760 = vmatpush.bf16.msra.mxu3 %v2739_v29 }
 0x266   : > { %1358 = vrot.lane.b32.xlu2 %v5105_v31, %s4695_s17  ;;  %1324 = vrot.lane.b32.xlu0 %v5103_v5, %s4696_s18 }
 0x267   : > { %2761 = vmatpush.bf16.msra.mxu3 %v2738_v34  ;;  %1338 = vrot.lane.b32.xlu1 %v5220_v8, %s4696_s18 }
 0x268   : > { %v5510_v44 = vpop.permute.xlu2 %1310  ;;  %v5512_v38 = vpop.permute.xlu0 %1166 }
 0x269   : > { %6772 = vst [vmem:[#allocation27_spill] sm:$0xff] %v5510_v44  ;;  %v5514_v47 = vpop.permute.xlu1 %1130 }
 0x26a   : > { %6773 = vst [vmem:[#allocation28_spill] sm:$0xff] %v5512_v38  ;;  %4102 = vmatmul.msk.bf16.gmra.mxu3 %vm1432_vm2, %v5127_v37 }
 0x26b   : > { %6774 = vst [vmem:[#allocation29_spill] sm:$0xff] %v5514_v47 }
 0x26e   : > { %1332 = vrot.lane.b32.xlu2 %v5160_v1, %s4696_s18  ;;  %1326 = vrot.lane.b32.xlu0 %v5105_v31, %s4696_s18 }
 0x26f   : > { %1334 = vrot.lane.b32.xlu1 %v5203_v40, %s4696_s18 }
 0x270   : > { %v5524_v5 = vpop.permute.xlu2 %1200  ;;  %v5526_v8 = vpop.permute.xlu0 %1374 }
 0x271   : > { %6775 = vst [vmem:[#allocation30_spill] sm:$0xff] %v5524_v5  ;;  %v5528_v29 = vpop.permute.xlu1 %1370 }
 0x276   : > { %1330 = vrot.lane.b32.xlu2 %v5158_v24, %s4696_s18 }
 0x277   : > { %1328 = vrot.lane.b32.xlu1 %v5142_v59, %s4696_s18 }
 0x278   : > { %v5534_v37 = vpop.permute.xlu2 %1168  ;;  %v5536_v1 = vpop.permute.xlu0 %1136 }
 0x279   : > { %6776 = vst [vmem:[#allocation31_spill] sm:$0xff] %v5534_v37  ;;  %v5538_v31 = vpop.permute.xlu1 %1196 }
 0x27a   : > { %6777 = vst [vmem:[#allocation32_spill] sm:$0xff] %v5536_v1  ;;  %4103 = vmatmul.msk.bf16.gmra.mxu3 %vm1432_vm2, %v5154_v45 }
 0x27b   : > { %6778 = vst [vmem:[#allocation33_spill] sm:$0xff] %v5538_v31 }
 0x27e   : > { %1322 = vrot.lane.b32.xlu2 %v5081_v62, %s4696_s18 }
 0x27f   : > { %1320 = vrot.lane.b32.xlu1 %v6768_v36, %s4696_s18 }
 0x280   : > { %v5546_v40 = vpop.permute.xlu2 %1202  ;;  %v5548_v24 = vpop.permute.xlu0 %1312 }
 0x281   : > { %6779 = vst [vmem:[#allocation34_spill] sm:$0xff] %v5546_v40  ;;  %v5550_v59 = vpop.permute.xlu1 %1308 }
 0x282   : > { %6780 = vst [vmem:[#allocation35_spill] sm:$0xff] %v5548_v24 }
 0x283   : > { %6781 = vst [vmem:[#allocation36_spill] sm:$0xff] %v5550_v59 }
 0x286   : > { %1382 = vrot.lane.b32.xlu2 %v5416_v35, %s4695_s17  ;;  %s4216_s17 = sshll.u32 %s4760_s28, 7  ;;  %s3795_s28 = scalar_lea.sflag [#allocation4], %s4834_s23 }
 0x287   : > { %1318 = vrot.lane.b32.xlu1 %v5416_v35, %s4694_s16  ;;  %s6610_s16 = scalar_lea.vmem [#allocation7], %s3903_s30  ;;  %s3806_s1 = scalar_lea.hbm %s6684_s7, %s4216_s17 }
 0x288   : > { %v5556_v16 = vpop.permute.xlu2 %1378  ;;  %v5558_v45 = vpop.permute.xlu0 %1170  ;;  %s3807_s10 = sshll.u32 %s6610_s16, 4  ;;  %s3809_s11 = sshll.u32 %s3806_s1, 4  ;;  %s3808_s10 = int_to_ptr.vmem [resolvable:$true] %s3807_s10  ;;  %s3810_s11 = int_to_ptr.hbm [resolvable:$true] %s3809_s11 }
 0x289   : > { %6782 = vst [vmem:[#allocation37_spill] sm:$0xff] %v5558_v45  ;;  %v5560_v62 = vpop.permute.xlu1 %1134  ;;  %s4631_s22 = sshra.s32 %s3810_s11, 4  ;;  %s4637_s30 = scalar_lea.hbm %s6684_s7, 256  ;;  %s4632_s22 = int_to_ptr.hbm [resolvable:$true] %s4631_s22 }
 0x28a   : > { %6783 = vst [vmem:[#allocation38_spill] sm:$0xff] %v5560_v62  ;;  %4104 = vmatmul.msk.bf16.gmra.mxu3 %vm1432_vm2, %v5192_v19  ;;  %s4633_s14 = scalar_lea.hbm %s4632_s22, 128  ;;  %p4638_p11 = scmp.lt.s32.totalorder %s4632_s22, %s6684_s7 }
 0x28b   : > { %p4634_p1 = scmp.ne.s32.totalorder %s4632_s22, %s4633_s14  ;;  %p4639_p9 = scmp.lt.s32.totalorder %s4637_s30, %s4633_s14 }
 0x28d   : > { %p4635_p4 = pnand %p4634_p1, %p4806_p7  ;;  %p4640_p2 = por %p4639_p9, %p4638_p11 }
 0x28f   : > { %1350 = vrot.lane.b32.xlu1 %v5416_v35, %s4696_s18  ;;  %p4636_p8 = pneg %p4635_p4 }
 0x290   : > { %v5566_v36 = vpop.permute.xlu2 %1172  ;;  %v5568_v34 = vpop.permute.xlu0 %1204 }
 0x291   : > { %6784 = vst [vmem:[#allocation39_spill] sm:$0xff] %v5566_v36  ;;  %v5570_v55 = vpop.permute.xlu1 %1376  ;;  %v1270_v48 = vrot.slane %v5568_v34, 4  ;;  %p4641_p10 = pnand %p4640_p2, %p4636_p8 }
 0x292   : > { %6785 = vst [vmem:[#allocation40_spill] sm:$0xff] %v5568_v34 }
 0x298   : > { %v5572_v21 = vpop.permute.xlu2 %1366  ;;  %v5574_v56 = vpop.permute.xlu0 %1316 }
 0x299   : > { %6786 = vst [vmem:[#allocation41_spill] sm:$0xff] %v5572_v21  ;;  %v5576_v3 = vpop.permute.xlu1 %1344 }
 0x29a   : > { %6787 = vst [vmem:[#allocation42_spill] sm:$0xff] %v5574_v56  ;;  %4105 = vmatmul.msk.bf16.gmra.mxu3 %vm1432_vm2, %v5232_v11  ;;  %v1269_v11 = vrot.slane %v5546_v40, 4 }
 0x29b   : > { %6788 = vst [vmem:[#allocation43_spill] sm:$0xff] %v5576_v3  ;;  %v1268_v3 = vrot.slane %v5524_v5, 4 }
 0x29c   : > { %v1857_v4 = vunpack.c.l.b16 %v1269_v11  ;;  %v1254_v11 = vrot.slane %v5566_v36, 4 }
 0x2a0   : > { %v5580_v26 = vpop.permute.xlu2 %1342  ;;  %v5582_v19 = vpop.permute.xlu0 %1348 }
 0x2a1   : > { %6789 = vst [vmem:[#allocation44_spill] sm:$0xff] %v5580_v26  ;;  %v5584_v35 = vpop.permute.xlu1 %1138  ;;  %v1858_v26 = vunpack.c.l.b16 %v1270_v48  ;;  %v1399_v48 = vunpack.c.l.b16 %v5299_v63 }
 0x2a2   : > { %6790 = vst [vmem:[#allocation45_spill] sm:$0xff] %v5582_v19 }
 0x2a3   : > { %6791 = vst [vmem:[#allocation46_spill] sm:$0xff] %v5584_v35 }
 0x2a8   : > { %v5587_v10 = vpop.permute.xlu2 %1362  ;;  %v5589_v44 = vpop.permute.xlu0 %1206 }
 0x2a9   : > { %6792 = vst [vmem:[#allocation47_spill] sm:$0xff] %v5587_v10  ;;  %v5591_v59 = vpop.permute.xlu1 %1314  ;;  %v1271_v24 = vrot.slane %v5589_v44, 4 }
 0x2aa   : > { %6793 = vst [vmem:[#allocation48_spill] sm:$0xff] %v5589_v44  ;;  %4106 = vmatmul.msk.bf16.gmra.mxu3 %vm1432_vm2, %v5267_v7  ;;  %v1856_v44 = vunpack.c.l.b16 %v1268_v3  ;;  %v1266_v7 = vrot.slane %v5538_v31, 4 }
 0x2ab   : > { %6794 = vst [vmem:[#allocation49_spill] sm:$0xff] %v5591_v59  ;;  %v1859_v56 = vunpack.c.l.b16 %v1271_v24  ;;  %v1267_v24 = vrot.slane %v5498_v41, 4 }
 0x2ac   : > { %v1866_v21 = vpack.c.b16 %v1857_v4, %v1856_v44  ;;  %v1264_v44 = vrot.slane %v5485_v32, 4 }
 0x2ad   : > { %v1867_v19 = vpack.c.b16 %v1859_v56, %v1858_v26  ;;  %v1398_v56 = vunpack.c.l.b16 %v5277_v52  ;;  %v1854_v26 = vunpack.c.l.b16 %v1266_v7  ;;  %v1855_v4 = vunpack.c.l.b16 %v1267_v24 }
 0x2ae   : > { %v1253_v52 = vrot.slane %v5558_v45, 4  ;;  %v1713_v7 = vunpack.c.l.b16 %v1254_v11  ;;  %v1237_v45 = vrot.slane %v5584_v35, 4 }
 0x2af   : > { %v1914_v33 = vsel %vm1432_vm2, %v1867_v19, 0  ;;  %v1407_v40 = vpack.c.b16 %v1399_v48, %v1398_v56  ;;  %v1865_v41 = vpack.c.b16 %v1855_v4, %v1854_v26  ;;  %v1251_v26 = vrot.slane %v5512_v38, 4 }
 0x2b0   : > { %v5598_v34 = vpop.permute.xlu2 %1336  ;;  %1916 = vmatpush.bf16.xpose.msra.mxu2 %v1914_v33  ;;  %v5601_v10 = vpop.permute.xlu0 %1340  ;;  %v1911_v33 = vsel %vm1432_vm2, %v1866_v21, 0  ;;  %v1265_v21 = vrot.slane %v5447_v27, 4 }
 0x2b1   : > { %6795 = vst [vmem:[#allocation50_spill] sm:$0xff] %v5598_v34  ;;  %v5603_v59 = vpop.permute.xlu1 %1346  ;;  %v1852_v34 = vunpack.c.l.b16 %v1264_v44  ;;  %v1908_v56 = vsel %vm1432_vm2, %v1865_v41, 0  ;;  %v1250_v44 = vrot.slane %v5465_v2, 4 }
 0x2b2   : > { %6796 = vst [vmem:[#allocation51_spill] sm:$0xff] %v5601_v10  ;;  %v1712_v10 = vunpack.c.l.b16 %v1253_v52  ;;  %v1853_v11 = vunpack.c.l.b16 %v1265_v21  ;;  %v1263_v52 = vrot.slane %v5393_v57, 4 }
 0x2b8   : > { %v5610_v5 = vpop.permute.xlu2 %1356  ;;  %1917 = vmatpush.bf16.xpose.msra.mxu2 %v1911_v33  ;;  %v5613_v19 = vpop.permute.xlu0 %1174  ;;  %v1252_v33 = vrot.slane %v5534_v37, 4  ;;  %v1965_v37 = vlaneseq }
 0x2b9   : > { %6797 = vst [vmem:[#allocation52_spill] sm:$0xff] %v5613_v19  ;;  %v5615_v3 = vpop.permute.xlu1 %1140  ;;  %v1255_v63 = vrot.slane %v5613_v19, 4  ;;  %v1864_v19 = vpack.c.b16 %v1853_v11, %v1852_v34  ;;  %v1709_v34 = vunpack.c.l.b16 %v1250_v44  ;;  %v1236_v44 = vrot.slane %v5536_v1, 4 }
 0x2ba   : > { %6798 = vst [vmem:[#allocation53_spill] sm:$0xff] %v5615_v3  ;;  %4107 = vmatmul.msk.bf16.gmra.mxu3 %vm1432_vm2, %v1407_v40  ;;  %v1238_v41 = vrot.slane %v5615_v3, 4 }
 0x2bb   : > { %v1714_v36 = vunpack.c.l.b16 %v1255_v63  ;;  %v1711_v63 = vunpack.c.l.b16 %v1252_v33  ;;  %v1905_v21 = vsel %vm1432_vm2, %v1864_v19, 0  ;;  %v5638_v33 = vand.u32 127, %v1965_v37 }
 0x2bc   : > { %v1568_v2 = vunpack.c.l.b16 %v1238_v41  ;;  %v1260_v37 = vrot.slane %v5382_v50, 4  ;;  %v1567_v41 = vunpack.c.l.b16 %v1237_v45  ;;  %v1247_v45 = vrot.slane %v5431_v20, 4 }
 0x2bd   : > { %v1722_v31 = vpack.c.b16 %v1714_v36, %v1713_v7  ;;  %v1721_v4 = vpack.c.b16 %v1712_v10, %v1711_v63  ;;  %v1262_v36 = vrot.slane %v5433_v23, 4  ;;  %v1851_v63 = vunpack.c.l.b16 %v1263_v52 }
 0x2be   : > { %vm1967_vm3 = vcmp.lt.s32.totalorder %v5638_v33, 8  ;;  %v1261_v52 = vrot.slane %v5343_v58, 4 }
 0x2bf   : > { %v1769_v24 = vsel %vm1432_vm2, %v1722_v31, 0  ;;  %v1710_v31 = vunpack.c.l.b16 %v1251_v26  ;;  %v1850_v10 = vunpack.c.l.b16 %v1262_v36  ;;  %v1249_v26 = vrot.slane %v5467_v43, 4 }
 0x2c0   : > { %v5623_v48 = vpop.permute.xlu2 %1358  ;;  %1771 = vmatpush.bf16.xpose.msra.mxu1 %v1769_v24  ;;  %1918 = vmatpush.bf16.xpose.msra.mxu2 %v1908_v56  ;;  %v1766_v24 = vsel %vm1432_vm2, %v1721_v4, 0  ;;  %v1248_v36 = vrot.slane %v5410_v9, 4 }
 0x2c1   : > { %v5627_v40 = vpop.permute.xlu1 %1380  ;;  %v1720_v3 = vpack.c.b16 %v1710_v31, %v1709_v34  ;;  %v1863_v19 = vpack.c.b16 %v1851_v63, %v1850_v10  ;;  %v1708_v34 = vunpack.c.l.b16 %v1249_v26  ;;  %v1849_v26 = vunpack.c.l.b16 %v1261_v52 }
 0x2c2   : > { %v1707_v1 = vunpack.c.l.b16 %v1248_v36 }
 0x2c3   : > { %v1763_v10 = vsel %vm1432_vm2, %v1720_v3, 0  ;;  %v1258_v3 = vrot.slane %v5347_v51, 4 }
 0x2c4   : > { %v1719_v35 = vpack.c.b16 %v1708_v34, %v1707_v1 }
 0x2c6   : > { %v1760_v34 = vsel %vm1432_vm2, %v1719_v35, 0  ;;  %v1256_v35 = vrot.slane %v5275_v6, 4 }
 0x2c8   : > { %v5634_v7 = vpop.permute.xlu2 %1332  ;;  %1772 = vmatpush.bf16.xpose.msra.mxu1 %v1766_v24  ;;  %1919 = vmatpush.bf16.xpose.msra.mxu2 %v1905_v21 }
 0x2c9   : > { %v5640_v56 = vpop.permute.xlu1 %1142 }
 0x2ca   : > { %6799 = vst [vmem:[#allocation54_spill] sm:$0xff] %v5640_v56  ;;  %v1239_v11 = vrot.slane %v5640_v56, 4  ;;  %v1848_v56 = vunpack.c.l.b16 %v1260_v37  ;;  %v1246_v37 = vrot.slane %v5378_v30, 4 }
 0x2cc   : > { %v1569_v4 = vunpack.c.l.b16 %v1239_v11 }
 0x2cd   : > { %v1490_v24 = vpop.f32.mrf.mxu3 }
 0x2ce   : > { %v1577_v21 = vpack.c.b16 %v1569_v4, %v1568_v2  ;;  %v5652_v31 = vsel %vm1967_vm3, %v1490_v24, -1e+30  ;;  %v1902_v2 = vsel %vm1432_vm2, %v1863_v19, 0  ;;  %v1566_v24 = vunpack.c.l.b16 %v1236_v44 }
 0x2cf   : > { %6800 = vst [vmem:[#allocation55_spill] sm:$0xff] %v5652_v31  ;;  %2034 = vmax.xlane.f32.xlu0 %v5652_v31  ;;  %v1235_v31 = vrot.slane %v5560_v62, 4  ;;  %v1706_v44 = vunpack.c.l.b16 %v1247_v45 }
 0x2d0   : > { %v5655_v11 = vpop.permute.xlu2 %1330  ;;  %v1624_v63 = vsel %vm1432_vm2, %v1577_v21, 0  ;;  %1773 = vmatpush.bf16.xpose.msra.mxu1 %v1763_v10  ;;  %1920 = vmatpush.bf16.xpose.msra.mxu2 %v1902_v2  ;;  %v1576_v38 = vpack.c.b16 %v1567_v41, %v1566_v24  ;;  %v1862_v21 = vpack.c.b16 %v1849_v26, %v1848_v56  ;;  %v1234_v10 = vrot.slane %v5500_v0, 4 }
 0x2d1   : > { %1626 = vmatpush.bf16.xpose.msrb.mxu0 %v1624_v63  ;;  %v5660_v4 = vpop.permute.xlu1 %1364  ;;  %v1259_v63 = vrot.slane %v5312_v28, 4  ;;  %v1565_v52 = vunpack.c.l.b16 %v1235_v31  ;;  %v1846_v41 = vunpack.c.l.b16 %v1258_v3  ;;  %v1705_v26 = vunpack.c.l.b16 %v1246_v37 }
 0x2d2   : > { %v1621_v56 = vsel %vm1432_vm2, %v1576_v38, 0  ;;  %v1899_v2 = vsel %vm1432_vm2, %v1862_v21, 0  ;;  %v1245_v31 = vrot.slane %v5380_v49, 4  ;;  %v1244_v3 = vrot.slane %v5329_v42, 4 }
 0x2d3   : > { %v1847_v45 = vunpack.c.l.b16 %v1259_v63  ;;  %v1718_v0 = vpack.c.b16 %v1706_v44, %v1705_v26 }
 0x2d5   : > { %v1492_v19 = vpop.f32.mrf.mxu3  ;;  %v1861_v38 = vpack.c.b16 %v1847_v45, %v1846_v41  ;;  %v1757_v44 = vsel %vm1432_vm2, %v1718_v0, 0  ;;  %v1844_v41 = vunpack.c.l.b16 %v1256_v35  ;;  %v1243_v0 = vrot.slane %v5331_v18, 4 }
 0x2d6   : > { %v5670_v36 = vsel %vm1967_vm3, %v1492_v19, -1e+30  ;;  %v1564_v19 = vunpack.c.l.b16 %v1234_v10  ;;  %v1704_v10 = vunpack.c.l.b16 %v1245_v31  ;;  %v1230_v35 = vrot.slane %v5395_v60, 4 }
 0x2d7   : > { %6801 = vst [vmem:[#allocation56_spill] sm:$0xff] %v5670_v36  ;;  %2036 = vmax.xlane.f32.xlu2 %v5670_v36  ;;  %v1233_v36 = vrot.slane %v5514_v47, 4 }
 0x2d8   : > { %v5673_v1 = vpop.permute.xlu2 %1322  ;;  %1774 = vmatpush.bf16.xpose.msra.mxu1 %v1760_v34  ;;  %1921 = vmatpush.bf16.xpose.msra.mxu2 %v1899_v2  ;;  %v1575_v62 = vpack.c.b16 %v1565_v52, %v1564_v19  ;;  %v1232_v34 = vrot.slane %v5449_v39, 4  ;;  %v1896_v2 = vsel %vm1432_vm2, %v1861_v38, 0  ;;  %v1703_v19 = vunpack.c.l.b16 %v1244_v3 }
 0x2d9   : > { %1627 = vmatpush.bf16.xpose.msrb.mxu0 %v1621_v56  ;;  %v5678_v24 = vpop.permute.xlu1 %1338  ;;  %v1257_v56 = vrot.slane %v5235_v25, 4  ;;  %v1563_v63 = vunpack.c.l.b16 %v1233_v36  ;;  %v1231_v36 = vrot.slane %v5451_v17, 4  ;;  %v1242_v38 = vrot.slane %v5271_v54, 4 }
 0x2da   : > { %v1618_v52 = vsel %vm1432_vm2, %v1575_v62, 0  ;;  %v1562_v45 = vunpack.c.l.b16 %v1232_v34 }
 0x2db   : > { %v1561_v34 = vunpack.c.l.b16 %v1231_v36  ;;  %v1820_v36 = vunpack.c.l.b16 %v5275_v6 }
 0x2dc   : > { %v1574_v31 = vpack.c.b16 %v1563_v63, %v1562_v45  ;;  %v3121_v63 = vunpack.c.l.b16 %v5570_v55  ;;  %v5712_v45 = vpop.permute.xlu0 %1360  ;;  %v1229_v55 = vrot.slane %v5414_v15, 4 }
 0x2dd   : > { %v1495_v21 = vpop.f32.mrf.mxu3 }
 0x2de   : > { %v5688_v37 = vsel %vm1967_vm3, %v1495_v21, -1e+30  ;;  %v1845_v21 = vunpack.c.l.b16 %v1257_v56  ;;  %v1615_v56 = vsel %vm1432_vm2, %v1574_v31, 0  ;;  %v3122_v31 = vunpack.c.l.b16 %v5556_v16 }
 0x2df   : > { %6802 = vst [vmem:[#allocation57_spill] sm:$0xff] %v5688_v37  ;;  %2038 = vmax.xlane.f32.xlu1 %v5688_v37  ;;  %v1717_v37 = vpack.c.b16 %v1704_v10, %v1703_v19  ;;  %v1560_v19 = vunpack.c.l.b16 %v1230_v35  ;;  %v3119_v16 = vunpack.c.l.b16 %v5481_v46 }
 0x2e0   : > { %1775 = vmatpush.bf16.xpose.msra.mxu1 %v1757_v44  ;;  %v1383_v39 = vpop.permute.xlu2 %1382  ;;  %1922 = vmatpush.bf16.xpose.msra.mxu2 %v1896_v2  ;;  %v1860_v62 = vpack.c.b16 %v1845_v21, %v1844_v41  ;;  %v1701_v21 = vunpack.c.l.b16 %v1242_v38  ;;  %v1241_v38 = vrot.slane %v5249_v12, 4 }
 0x2e1   : > { %1628 = vmatpush.bf16.xpose.msrb.mxu0 %v1618_v52  ;;  %v5694_v26 = vpop.permute.xlu1 %1334  ;;  %v3124_v47 = vunpack.c.l.b16 %v1383_v39  ;;  %v3123_v52 = vunpack.c.l.b16 %v5627_v40  ;;  %v1754_v10 = vsel %vm1432_vm2, %v1717_v37, 0  ;;  %v1702_v39 = vunpack.c.l.b16 %v1243_v0 }
 0x2e2   : > { %v1893_v2 = vsel %vm1432_vm2, %v1860_v62, 0  ;;  %v1821_v37 = vunpack.c.l.b16 %v5235_v25  ;;  %v1240_v0 = vrot.slane %v5297_v22, 4  ;;  %v3120_v62 = vunpack.c.l.b16 %v5526_v8 }
 0x2e3   : > { %v3132_v41 = vpack.c.b16 %v3124_v47, %v3123_v52  ;;  %v1573_v47 = vpack.c.b16 %v1561_v34, %v1560_v19  ;;  %v1716_v35 = vpack.c.b16 %v1702_v39, %v1701_v21  ;;  %v1228_v52 = vrot.slane %v5360_v14, 4 }
 0x2e4   : > { %v1836_v6 = vpack.c.b16 %v1821_v37, %v1820_v36  ;;  %v1559_v34 = vunpack.c.l.b16 %v1229_v55  ;;  %v3130_v39 = vpack.c.b16 %v3120_v62, %v3119_v16  ;;  %v1700_v19 = vunpack.c.l.b16 %v1241_v38  ;;  %v1353_v36 = vpop.permute.xlu0 %1352 }
 0x2e5   : > { %v1497_v44 = vpop.f32.mrf.mxu3  ;;  %v1612_v8 = vsel %vm1432_vm2, %v1573_v47, 0  ;;  %v3117_v21 = vunpack.c.l.b16 %v5502_v53  ;;  %v1227_v37 = vrot.slane %v5362_v13, 4  ;;  %v1226_v62 = vrot.slane %v5314_v61, 4 }
 0x2e6   : > { %v5703_v3 = vsel %vm1967_vm3, %v1497_v44, -1e+30  ;;  %v3131_v44 = vpack.c.b16 %v3122_v31, %v3121_v63  ;;  %v3118_v63 = vunpack.c.l.b16 %v5528_v29  ;;  %v3115_v29 = vunpack.c.l.b16 %v5660_v4 }
 0x2e7   : > { %2040 = vmax.xlane.f32.xlu2 %v5703_v3  ;;  %v3113_v38 = vunpack.c.l.b16 %v5712_v45 }
 0x2e8   : > { %1776 = vmatpush.bf16.xpose.msra.mxu1 %v1754_v10  ;;  %1923 = vmatpush.bf16.xpose.msra.mxu2 %v1893_v2  ;;  %v1699_v10 = vunpack.c.l.b16 %v1240_v0  ;;  %v1558_v2 = vunpack.c.l.b16 %v1228_v52  ;;  %v3129_v55 = vpack.c.b16 %v3118_v63, %v3117_v21  ;;  %v3112_v21 = vunpack.c.l.b16 %v5623_v48 }
 0x2e9   : > { %1629 = vmatpush.bf16.xpose.msrb.mxu0 %v1615_v56  ;;  %v5710_v40 = vpop.permute.xlu1 %1328 }
 0x2ea   : > { %v1572_v31 = vpack.c.b16 %v1559_v34, %v1558_v2  ;;  %v1715_v47 = vpack.c.b16 %v1700_v19, %v1699_v10  ;;  %v1675_v34 = vunpack.c.l.b16 %v5297_v22  ;;  %v1822_v10 = vunpack.c.l.b16 %v5347_v51  ;;  %v6805_v19 = vld [vmem:[#allocation16_spill] sm:$0xff] }
 0x2eb   : > { %v1823_v2 = vunpack.c.l.b16 %v5312_v28  ;;  %v1225_v45 = vrot.slane %v6805_v19, 4  ;;  %v3111_v51 = vunpack.c.l.b16 %v5610_v5 }
 0x2ec   : > { %v1609_v53 = vsel %vm1432_vm2, %v1572_v31, 0  ;;  %v1748_v4 = vsel %vm1432_vm2, %v1715_v47, 0  ;;  %v1355_v47 = vpop.permute.xlu0 %1354 }
 0x2ed   : > { %v1500_v56 = vpop.f32.mrf.mxu3  ;;  %v1555_v28 = vunpack.c.l.b16 %v1225_v45  ;;  %v3110_v48 = vunpack.c.l.b16 %v1355_v47 }
 0x2ee   : > { %v5725_v25 = vsel %vm1967_vm3, %v1500_v56, -1e+30  ;;  %v1557_v56 = vunpack.c.l.b16 %v1227_v37 }
 0x2ef   : > { %2042 = vmax.xlane.f32.xlu2 %v5725_v25  ;;  %4124 = vmatmul.msk.bf16.vlgmr.msra.gmra.mxu2 %vm1432_vm2, %v1836_v6 }
 0x2f0   : > { %3141 = vmatpush.bf16.msrb.mxu2 %v3132_v41  ;;  %v1751_v41 = vsel %vm1432_vm2, %v1716_v35, 0 }
 0x2f1   : > { %1630 = vmatpush.bf16.xpose.msrb.mxu0 %v1612_v8  ;;  %v5732_v46 = vpop.permute.xlu1 %1320  ;;  %1777 = vmatpush.bf16.xpose.msra.mxu1 %v1751_v41  ;;  %v1556_v8 = vunpack.c.l.b16 %v1226_v62  ;;  %v1676_v41 = vunpack.c.l.b16 %v5249_v12  ;;  %v1837_v62 = vpack.c.b16 %v1823_v2, %v1822_v10 }
 0x2f3   : > { %v1571_v37 = vpack.c.b16 %v1557_v56, %v1556_v8  ;;  %v6807_v56 = vld [vmem:[#allocation45_spill] sm:$0xff] }
 0x2f4   : > { %3142 = vmatpush.bf16.msrb.mxu2 %v3131_v44  ;;  %v6803_v44 = vld [vmem:[#allocation41_spill] sm:$0xff] }
 0x2f5   : > { %v1502_v0 = vpop.f32.mrf.mxu3  ;;  %v3116_v35 = vunpack.c.l.b16 %v6803_v44  ;;  %v3126_v44 = vpack.c.b16 %v3112_v21, %v3111_v51  ;;  %v6809_v21 = vld [vmem:[#allocation42_spill] sm:$0xff] }
 0x2f6   : > { %v5741_v52 = vsel %vm1967_vm3, %v1502_v0, -1e+30  ;;  %v1691_v0 = vpack.c.b16 %v1676_v41, %v1675_v34  ;;  %v2993_v34 = vunpack.c.l.b16 %v5603_v59  ;;  %v6808_v41 = vld [vmem:[#allocation43_spill] sm:$0xff]  ;;  %v6811_v59 = vld [vmem:[#allocation49_spill] sm:$0xff] }
 0x2f7   : > { %2044 = vmax.xlane.f32.xlu1 %v5741_v52  ;;  %v3128_v6 = vpack.c.b16 %v3116_v35, %v3115_v29  ;;  %v1606_v35 = vsel %vm1432_vm2, %v1571_v37, 0  ;;  %v2992_v2 = vunpack.c.l.b16 %v6808_v41 }
 0x2f8   : > { %3143 = vmatpush.bf16.msrb.mxu2 %v3130_v39  ;;  %v6804_v39 = vld [vmem:[#allocation47_spill] sm:$0xff] }
 0x2f9   : > { %1631 = vmatpush.bf16.xpose.msrb.mxu0 %v1609_v53  ;;  %v1319_v16 = vpop.permute.xlu1 %1318  ;;  %1778 = vmatpush.bf16.xpose.msra.mxu1 %v1748_v4  ;;  %v3114_v63 = vunpack.c.l.b16 %v6804_v39  ;;  %v3109_v4 = vunpack.c.l.b16 %v1353_v36  ;;  %v3002_v47 = vpack.c.b16 %v2993_v34, %v2992_v2  ;;  %v6814_v34 = vld [vmem:[#allocation36_spill] sm:$0xff] }
 0x2fa   : > { %v2866_v39 = vunpack.c.l.b16 %v1319_v16 }
 0x2fb   : > { %v3127_v31 = vpack.c.b16 %v3114_v63, %v3113_v38  ;;  %v2994_v38 = vunpack.c.l.b16 %v6807_v56  ;;  %v3125_v10 = vpack.c.b16 %v3110_v48, %v3109_v4  ;;  %v6813_v48 = vld [vmem:[#allocation35_spill] sm:$0xff]  ;;  %v1824_v56 = vunpack.c.l.b16 %v5382_v50 }
 0x2fc   : > { %3144 = vmatpush.bf16.msrb.mxu2 %v3129_v55  ;;  %v6806_v55 = vld [vmem:[#allocation13_spill] sm:$0xff] }
 0x2fd   : > { %v1224_v29 = vrot.slane %v6806_v55, 4  ;;  %v1505_v22 = vpop.f32.mrf.mxu3  ;;  %v1530_v4 = vunpack.c.l.b16 %v6806_v55 }
 0x2fe   : > { %v5758_v12 = vsel %vm1967_vm3, %v1505_v22, -1e+30  ;;  %v2864_v22 = vunpack.c.l.b16 %v6811_v59 }
 0x2ff   : > { %2046 = vmax.xlane.f32.xlu0 %v5758_v12  ;;  %4125 = vmatmul.msk.bf16.gmra.mxu2 %vm1432_vm2, %v1837_v62  ;;  %v6812_v62 = vld [vmem:[#allocation44_spill] sm:$0xff] }
 0x300   : > { %3145 = vmatpush.bf16.msrb.mxu2 %v3128_v6  ;;  %4116 = vmatmul.msk.bf16.vlgmr.msra.gmra.mxu1 %vm1432_vm2, %v1691_v0  ;;  %v1554_v6 = vunpack.c.l.b16 %v1224_v29  ;;  %v6810_v29 = vld [vmem:[#allocation51_spill] sm:$0xff]  ;;  %v2991_v51 = vunpack.c.l.b16 %v6812_v62 }
 0x301   : > { %v1351_v53 = vpop.permute.xlu1 %1350  ;;  %1632 = vmatpush.bf16.xpose.msrb.mxu0 %v1606_v35  ;;  %v2990_v36 = vunpack.c.l.b16 %v6810_v29  ;;  %v2863_v35 = vunpack.c.l.b16 %v6813_v48  ;;  %v6820_v48 = vld [vmem:[#allocation21_spill] sm:$0xff] }
 0x302   : > { %v2995_v5 = vunpack.c.l.b16 %v1351_v53  ;;  %v1570_v63 = vpack.c.b16 %v1555_v28, %v1554_v6  ;;  %v1531_v28 = vunpack.c.l.b16 %v6805_v19  ;;  %v1325_v53 = vpop.permute.xlu0 %1324  ;;  %v1677_v6 = vunpack.c.l.b16 %v5271_v54 }
 0x303   : > { %v1825_v19 = vunpack.c.l.b16 %v5343_v58  ;;  %v6817_v58 = vld [vmem:[#allocation11_spill] sm:$0xff] }
 0x304   : > { %3146 = vmatpush.bf16.msrb.mxu2 %v3127_v31  ;;  %v3003_v8 = vpack.c.b16 %v2995_v5, %v2994_v38  ;;  %v2865_v31 = vunpack.c.l.b16 %v6809_v21  ;;  %v1603_v0 = vsel %vm1432_vm2, %v1570_v63, 0  ;;  %v3001_v38 = vpack.c.b16 %v2991_v51, %v2990_v36 }
 0x305   : > { %v1507_v45 = vpop.f32.mrf.mxu3  ;;  %v2989_v5 = vunpack.c.l.b16 %v5678_v24  ;;  %v1546_v41 = vpack.c.b16 %v1531_v28, %v1530_v4  ;;  %v1838_v54 = vpack.c.b16 %v1825_v19, %v1824_v56  ;;  %v2987_v21 = vunpack.c.l.b16 %v5694_v26 }
 0x306   : > { %3012 = vmatpush.bf16.msrb.mxu1 %v3003_v8  ;;  %v5770_v37 = vsel %vm1967_vm3, %v1507_v45, -1e+30  ;;  %v2874_v16 = vpack.c.b16 %v2866_v39, %v2865_v31  ;;  %v2861_v8 = vunpack.c.l.b16 %v6814_v34  ;;  %v6815_v39 = vld [vmem:[#allocation50_spill] sm:$0xff]  ;;  %v6816_v45 = vld [vmem:[#allocation27_spill] sm:$0xff]  ;;  %v2860_v31 = vunpack.c.l.b16 %v6817_v58  ;;  %v6825_v58 = vld [vmem:[#allocation17_spill] sm:$0xff] }
 0x307   : > { %2048 = vmax.xlane.f32.xlu2 %v5770_v37  ;;  %v2862_v50 = vunpack.c.l.b16 %v6816_v45  ;;  %v2986_v36 = vunpack.c.l.b16 %v5634_v7  ;;  %v2984_v26 = vunpack.c.l.b16 %v5710_v40  ;;  %v2985_v28 = vunpack.c.l.b16 %v5655_v11  ;;  %v6821_v40 = vld [vmem:[#allocation20_spill] sm:$0xff]  ;;  %v6822_v34 = vld [vmem:[#allocation19_spill] sm:$0xff] }
 0x308   : > { %3147 = vmatpush.bf16.msrb.mxu2 %v3126_v44  ;;  %v1678_v44 = vunpack.c.l.b16 %v5331_v18  ;;  %v2988_v18 = vunpack.c.l.b16 %v6815_v39  ;;  %v2982_v4 = vunpack.c.l.b16 %v1325_v53  ;;  %v2856_v11 = vunpack.c.l.b16 %v6822_v34 }
 0x309   : > { %1633 = vmatpush.bf16.xpose.msrb.mxu0 %v1603_v0  ;;  %v2872_v29 = vpack.c.b16 %v2862_v50, %v2861_v8  ;;  %v1533_v8 = vunpack.c.l.b16 %v5362_v13  ;;  %v1826_v19 = vunpack.c.l.b16 %v5433_v23  ;;  %v1827_v50 = vunpack.c.l.b16 %v5393_v57 }
 0x30a   : > { %3013 = vmatpush.bf16.msrb.mxu1 %v3002_v47  ;;  %v1692_v2 = vpack.c.b16 %v1678_v44, %v1677_v6  ;;  %v3000_v55 = vpack.c.b16 %v2989_v5, %v2988_v18  ;;  %v6818_v47 = vld [vmem:[#allocation22_spill] sm:$0xff]  ;;  %v1327_v51 = vpop.permute.xlu0 %1326  ;;  %v2855_v5 = vunpack.c.l.b16 %v6821_v40  ;;  %v2980_v18 = vunpack.c.l.b16 %v5732_v46 }
 0x30b   : > { %v2859_v59 = vunpack.c.l.b16 %v6818_v47  ;;  %v2983_v56 = vunpack.c.l.b16 %v1327_v51  ;;  %v1829_v51 = vunpack.c.l.b16 %v5447_v27  ;;  %v6829_v27 = vld [vmem:[#allocation33_spill] sm:$0xff]  ;;  %v1683_v40 = vunpack.c.l.b16 %v5410_v9  ;;  %v6835_v9 = vld [vmem:[#allocation12_spill] sm:$0xff] }
 0x30c   : > { %3148 = vmatpush.bf16.msrb.mxu2 %v3125_v10  ;;  %v2873_v10 = vpack.c.b16 %v2864_v22, %v2863_v35  ;;  %v2999_v22 = vpack.c.b16 %v2987_v21, %v2986_v36  ;;  %v2857_v35 = vunpack.c.l.b16 %v6820_v48  ;;  %v2869_v53 = vpack.c.b16 %v2856_v11, %v2855_v5  ;;  %v6830_v5 = vld [vmem:[#allocation25_spill] sm:$0xff] }
 0x30d   : > { %v1510_v63 = vpop.f32.mrf.mxu3  ;;  %v2871_v62 = vpack.c.b16 %v2860_v31, %v2859_v59  ;;  %v2997_v39 = vpack.c.b16 %v2983_v56, %v2982_v4  ;;  %v2852_v31 = vunpack.c.l.b16 %v6825_v58  ;;  %v6841_v58 = vld [vmem:[#allocation31_spill] sm:$0xff] }
 0x30e   : > { %3014 = vmatpush.bf16.msrb.mxu1 %v3001_v38  ;;  %v5790_v24 = vsel %vm1967_vm3, %v1510_v63, -1e+30  ;;  %v2998_v38 = vpack.c.b16 %v2985_v28, %v2984_v26  ;;  %v1532_v63 = vunpack.c.l.b16 %v5314_v61  ;;  %v1839_v61 = vpack.c.b16 %v1827_v50, %v1826_v19  ;;  %v6833_v19 = vld [vmem:[#allocation34_spill] sm:$0xff] }
 0x30f   : > { %2050 = vmax.xlane.f32.xlu0 %v5790_v24  ;;  %4126 = vmatmul.msk.bf16.gmra.mxu2 %vm1432_vm2, %v1838_v54  ;;  %v2981_v54 = vunpack.c.l.b16 %v5673_v1  ;;  %v6826_v1 = vld [vmem:[#allocation15_spill] sm:$0xff]  ;;  %v1682_v26 = vunpack.c.l.b16 %v5431_v20  ;;  %v1684_v20 = vunpack.c.l.b16 %v5467_v43  ;;  %v6832_v43 = vld [vmem:[#allocation29_spill] sm:$0xff] }
 0x310   : > { %4108 = vmatmul.msk.bf16.vlgmr.msrb.gmra.mxu0 %vm1432_vm2, %v1546_v41  ;;  %4117 = vmatmul.msk.bf16.gmra.mxu1 %vm1432_vm2, %v1692_v2  ;;  %v1679_v41 = vunpack.c.l.b16 %v5329_v42  ;;  %v6823_v2 = vld [vmem:[#allocation18_spill] sm:$0xff]  ;;  %v1547_v21 = vpack.c.b16 %v1533_v8, %v1532_v63  ;;  %v1685_v63 = vunpack.c.l.b16 %v6835_v9 }
 0x311   : > { %2883 = vmatpush.bf16.msra.mxu0 %v2874_v16  ;;  %v6819_v16 = vld [vmem:[#allocation24_spill] sm:$0xff]  ;;  %v2854_v45 = vunpack.c.l.b16 %v6823_v2  ;;  %v2996_v42 = vpack.c.b16 %v2981_v54, %v2980_v18  ;;  %v1695_v34 = vpack.c.b16 %v1684_v20, %v1683_v40  ;;  %v6837_v54 = vld [vmem:[#allocation37_spill] sm:$0xff]  ;;  %v6847_v20 = vld [vmem:[#allocation54_spill] sm:$0xff] }
 0x312   : > { %3015 = vmatpush.bf16.msrb.mxu1 %v3000_v55  ;;  %v2858_v0 = vunpack.c.l.b16 %v6819_v16  ;;  %v1828_v16 = vunpack.c.l.b16 %v5485_v32  ;;  %v1830_v32 = vunpack.c.l.b16 %v6829_v27  ;;  %v1545_v27 = vunpack.c.l.b16 %v6847_v20 }
 0x314   : > { %v2870_v6 = vpack.c.b16 %v2858_v0, %v2857_v35  ;;  %v1534_v0 = vunpack.c.l.b16 %v5360_v14  ;;  %v1840_v56 = vpack.c.b16 %v1829_v51, %v1828_v16  ;;  %v6844_v16 = vld [vmem:[#allocation52_spill] sm:$0xff] }
 0x315   : > { %2884 = vmatpush.bf16.msra.mxu0 %v2873_v10  ;;  %v1512_v44 = vpop.f32.mrf.mxu3  ;;  %v1680_v10 = vunpack.c.l.b16 %v5380_v49  ;;  %v6824_v49 = vld [vmem:[#allocation14_spill] sm:$0xff] }
 0x316   : > { %3016 = vmatpush.bf16.msrb.mxu1 %v2999_v22  ;;  %v5806_v7 = vsel %vm1967_vm3, %v1512_v44, -1e+30  ;;  %v2853_v55 = vunpack.c.l.b16 %v6824_v49  ;;  %v1535_v22 = vunpack.c.l.b16 %v5414_v15  ;;  %v1537_v15 = vunpack.c.l.b16 %v5451_v17  ;;  %v6831_v17 = vld [vmem:[#allocation28_spill] sm:$0xff]  ;;  %v6838_v49 = vld [vmem:[#allocation38_spill] sm:$0xff] }
 0x317   : > { %2052 = vmax.xlane.f32.xlu1 %v5806_v7  ;;  %v1693_v23 = vpack.c.b16 %v1680_v10, %v1679_v41  ;;  %v1686_v8 = vunpack.c.l.b16 %v6831_v17  ;;  %v1539_v10 = vunpack.c.l.b16 %v6832_v43  ;;  %v6836_v41 = vld [vmem:[#allocation30_spill] sm:$0xff] }
 0x318   : > { %v2868_v57 = vpack.c.b16 %v2854_v45, %v2853_v55  ;;  %v1548_v44 = vpack.c.b16 %v1535_v22, %v1534_v0  ;;  %v1832_v2 = vunpack.c.l.b16 %v6836_v41  ;;  %v1541_v55 = vunpack.c.l.b16 %v6838_v49  ;;  %v6843_v22 = vld [vmem:[#allocation46_spill] sm:$0xff] }
 0x319   : > { %2885 = vmatpush.bf16.msra.mxu0 %v2872_v29  ;;  %v2851_v29 = vunpack.c.l.b16 %v6826_v1  ;;  %v1696_v45 = vpack.c.b16 %v1686_v8, %v1685_v63  ;;  %v1690_v0 = vunpack.c.l.b16 %v6844_v16  ;;  %v6853_v16 = vld [vmem:[#allocation57_spill] sm:$0xff] }
 0x31a   : > { %3017 = vmatpush.bf16.msrb.mxu1 %v2998_v38  ;;  %v1536_v38 = vunpack.c.l.b16 %v5395_v60  ;;  %v6834_v60 = vld [vmem:[#allocation23_spill] sm:$0xff] }
 0x31b   : > { %v2867_v36 = vpack.c.b16 %v2852_v31, %v2851_v29  ;;  %v1538_v18 = vunpack.c.l.b16 %v6834_v60  ;;  %v1687_v31 = vunpack.c.l.b16 %v6841_v58 }
 0x31c   : > { %v1549_v4 = vpack.c.b16 %v1537_v15, %v1536_v38 }
 0x31d   : > { %2886 = vmatpush.bf16.msra.mxu0 %v2871_v62  ;;  %v1515_v13 = vpop.f32.mrf.mxu3  ;;  %v1681_v62 = vunpack.c.l.b16 %v5378_v30 }
 0x31e   : > { %3018 = vmatpush.bf16.msrb.mxu1 %v2997_v39  ;;  %v5823_v46 = vsel %vm1967_vm3, %v1515_v13, -1e+30  ;;  %v1833_v39 = vunpack.c.l.b16 %v6833_v19  ;;  %v1688_v13 = vunpack.c.l.b16 %v6837_v54  ;;  %v6851_v54 = vld [vmem:[#allocation55_spill] sm:$0xff] }
 0x31f   : > { %2054 = vmax.xlane.f32.xlu0 %v5823_v46  ;;  %4127 = vmatmul.msk.bf16.gmra.mxu2 %vm1432_vm2, %v1839_v61  ;;  %v1694_v48 = vpack.c.b16 %v1682_v26, %v1681_v62  ;;  %v6840_v61 = vld [vmem:[#allocation26_spill] sm:$0xff]  ;;  %v1543_v26 = vunpack.c.l.b16 %v6843_v22  ;;  %v6845_v62 = vld [vmem:[#allocation32_spill] sm:$0xff] }
 0x320   : > { %4109 = vmatmul.msk.bf16.gmra.mxu0 %vm1432_vm2, %v1547_v21  ;;  %4118 = vmatmul.msk.bf16.gmra.mxu1 %vm1432_vm2, %v1693_v23  ;;  %v1842_v50 = vpack.c.b16 %v1833_v39, %v1832_v2  ;;  %v6839_v21 = vld [vmem:[#allocation48_spill] sm:$0xff]  ;;  %v1697_v29 = vpack.c.b16 %v1688_v13, %v1687_v31  ;;  %v1542_v51 = vunpack.c.l.b16 %v6845_v62 }
 0x321   : > { %2887 = vmatpush.bf16.msra.mxu0 %v2870_v6  ;;  %v1831_v6 = vunpack.c.l.b16 %v6830_v5  ;;  %v1835_v23 = vunpack.c.l.b16 %v6839_v21 }
 0x322   : > { %3019 = vmatpush.bf16.msrb.mxu1 %v2996_v42  ;;  %v1540_v42 = vunpack.c.l.b16 %v6840_v61 }
 0x323   : > { %v1841_v11 = vpack.c.b16 %v1831_v6, %v1830_v32  ;;  %v6848_v32 = vld [vmem:[#allocation53_spill] sm:$0xff] }
 0x324   : > { %v1544_v38 = vunpack.c.l.b16 %v6848_v32 }
 0x325   : > { %2888 = vmatpush.bf16.msra.mxu0 %v2869_v53  ;;  %v1517_v47 = vpop.f32.mrf.mxu3  ;;  %v1550_v53 = vpack.c.b16 %v1539_v10, %v1538_v18 }
 0x326   : > { %v5833_v59 = vsel %vm1967_vm3, %v1517_v47, -1e+30  ;;  %v1553_v5 = vpack.c.b16 %v1545_v27, %v1544_v38 }
 0x327   : > { %2056 = vmax.xlane.f32.xlu0 %v5833_v59 }
 0x329   : > { %2889 = vmatpush.bf16.msra.mxu0 %v2868_v57  ;;  %v6842_v57 = vld [vmem:[#allocation40_spill] sm:$0xff] }
 0x32a   : > { %v1834_v1 = vunpack.c.l.b16 %v6842_v57 }
 0x32c   : > { %v1843_v47 = vpack.c.b16 %v1835_v23, %v1834_v1 }
 0x32d   : > { %2890 = vmatpush.bf16.msra.mxu0 %v2867_v36  ;;  %v1520_v28 = vpop.f32.mrf.mxu3  ;;  %v1551_v36 = vpack.c.b16 %v1541_v55, %v1540_v42 }
 0x32e   : > { %v5844_v35 = vsel %vm1967_vm3, %v1520_v28, -1e+30  ;;  %v6846_v28 = vld [vmem:[#allocation39_spill] sm:$0xff] }
 0x32f   : > { %6827 = vst [vmem:[#allocation41_spill] sm:$0xff] %v5844_v35  ;;  %2058 = vmax.xlane.f32.xlu2 %v5844_v35  ;;  %4128 = vmatmul.msk.bf16.gmra.mxu2 %vm1432_vm2, %v1840_v56 }
 0x330   : > { %4110 = vmatmul.msk.bf16.gmra.mxu0 %vm1432_vm2, %v1548_v44  ;;  %4119 = vmatmul.msk.bf16.gmra.mxu1 %vm1432_vm2, %v1694_v48  ;;  %v1689_v44 = vunpack.c.l.b16 %v6846_v28  ;;  %v1552_v48 = vpack.c.b16 %v1543_v26, %v1542_v51 }
 0x332   : > { %v1698_v56 = vpack.c.b16 %v1690_v0, %v1689_v44 }
 0x335   : > { %v1522_v14 = vpop.f32.mrf.mxu3 }
 0x336   : > { %v5852_v30 = vsel %vm1967_vm3, %v1522_v14, -1e+30 }
 0x337   : > { %6828 = vst [vmem:[#allocation47_spill] sm:$0xff] %v5852_v30  ;;  %2060 = vmax.xlane.f32.xlu1 %v5852_v30 }
 0x33d   : > { %v1525_v15 = vpop.f32.mrf.mxu3 }
 0x33e   : > { %v5912_v18 = vsel %vm1967_vm3, %v1525_v15, -1e+30 }
 0x33f   : > { %4129 = vmatmul.msk.bf16.gmra.mxu2 %vm1432_vm2, %v1841_v11  ;;  %6850 = vst [vmem:[#allocation13_spill] sm:$0xff] %v5912_v18 }
 0x340   : > { %4111 = vmatmul.msk.bf16.gmra.mxu0 %vm1432_vm2, %v1549_v4  ;;  %4120 = vmatmul.msk.bf16.gmra.mxu1 %vm1432_vm2, %v1695_v34 }
 0x342   : > { %v2035_v63 = vpop.xlane.xlu0 %2034 }
 0x343   : > { %v2162_v13 = vsub.f32 %v6851_v54, %v2035_v63 }
 0x345   : > { %v1527_v34 = vpop.f32.mrf.mxu3  ;;  %v2226_v49 = vmul.f32 1.442695, %v2162_v13 }
 0x346   : > { %v5898_v11 = vsel %vm1967_vm3, %v1527_v34, -1e+30 }
 0x347   : > { %6849 = vst [vmem:[#allocation16_spill] sm:$0xff] %v5898_v11  ;;  %4301 = vpow2.f32 %v2226_v49 }
 0x34a   : > { %v2037_v31 = vpop.xlane.xlu2 %2036 }
 0x34f   : > { %4130 = vmatmul.msk.bf16.gmra.mxu2 %vm1432_vm2, %v1842_v50 }
 0x350   : > { %4112 = vmatmul.msk.bf16.gmra.mxu0 %vm1432_vm2, %v1550_v53  ;;  %4121 = vmatmul.msk.bf16.gmra.mxu1 %vm1432_vm2, %v1696_v45 }
 0x352   : > { %v2039_v57 = vpop.xlane.xlu1 %2038 }
 0x353   : > { %v2164_v0 = vsub.f32 %v6853_v16, %v2039_v57 }
 0x355   : > { %v2230_v44 = vmul.f32 1.442695, %v2164_v0 }
 0x35f   : > { %4131 = vmatmul.msk.bf16.gmra.mxu2 %vm1432_vm2, %v1843_v47  ;;  %v6852_v47 = vld [vmem:[#allocation56_spill] sm:$0xff] }
 0x360   : > { %4113 = vmatmul.msk.bf16.gmra.mxu0 %vm1432_vm2, %v1551_v36  ;;  %4122 = vmatmul.msk.bf16.gmra.mxu1 %vm1432_vm2, %v1697_v29  ;;  %v5949_v29 = vpop.eup %4301  ;;  %v2163_v22 = vsub.f32 %v6852_v47, %v2037_v31 }
 0x362   : > { %v2228_v51 = vmul.f32 1.442695, %v2163_v22 }
 0x364   : > { %4303 = vpow2.f32 %v2228_v51 }
 0x365   : > { %4305 = vpow2.f32 %v2230_v44 }
 0x370   : > { %4114 = vmatmul.msk.bf16.gmra.mxu0 %vm1432_vm2, %v1552_v48  ;;  %4123 = vmatmul.msk.bf16.gmra.mxu1 %vm1432_vm2, %v1698_v56  ;;  %v2041_v48 = vpop.xlane.xlu2 %2040 }
 0x371   : > { %v2165_v27 = vsub.f32 %v5703_v3, %v2041_v48 }
 0x372   : > { %v1925_v14 = vpop.f32.mrf.mxu2 }
 0x373   : > { %v5922_v53 = vsel %vm1967_vm3, %v1925_v14, -1e+30  ;;  %v2232_v38 = vmul.f32 1.442695, %v2165_v27 }
 0x375   : > { %4307 = vpow2.f32 %v2232_v38 }
 0x37a   : > { %v1927_v4 = vpop.f32.mrf.mxu2 }
 0x37b   : > { %v5918_v45 = vsel %vm1967_vm3, %v1927_v4, -1e+30 }
 0x37d   : > { %v1780_v40 = vpop.f32.mrf.mxu1 }
 0x37e   : > { %v5892_v6 = vsel %vm1967_vm3, %v1780_v40, -1e+30  ;;  %v5982_v40 = vpop.eup %4303 }
 0x37f   : > { %2098 = vmax.xlane.f32.xlu0 %v5892_v6  ;;  %v5984_v4 = vpop.eup %4305 }
 0x380   : > { %4115 = vmatmul.msk.bf16.gmra.mxu0 %vm1432_vm2, %v1553_v5 }
 0x382   : > { %v1930_v17 = vpop.f32.mrf.mxu2 }
 0x383   : > { %v5953_v36 = vsel %vm1967_vm3, %v1930_v17, -1e+30  ;;  %v2045_v17 = vpop.xlane.xlu1 %2044 }
 0x385   : > { %v1782_v10 = vpop.f32.mrf.mxu1 }
 0x386   : > { %v5938_v61 = vsel %vm1967_vm3, %v1782_v10, -1e+30 }
 0x387   : > { %2064 = vmax.xlane.f32.xlu0 %v5898_v11 }
 0x38a   : > { %v1932_v19 = vpop.f32.mrf.mxu2 }
 0x38b   : > { %v5960_v26 = vsel %vm1967_vm3, %v1932_v19, -1e+30  ;;  %v5993_v19 = vpop.eup %4307 }
 0x38d   : > { %v1635_v8 = vpop.f32.mrf.mxu0  ;;  %v1785_v9 = vpop.f32.mrf.mxu1 }
 0x38e   : > { %v5903_v43 = vsel %vm1967_vm3, %v1635_v8, -1e+30  ;;  %v5934_v23 = vsel %vm1967_vm3, %v1785_v9, -1e+30 }
 0x38f   : > { %2066 = vmax.xlane.f32.xlu1 %v5903_v43 }
 0x392   : > { %v1935_v41 = vpop.f32.mrf.mxu2 }
 0x393   : > { %v5990_v34 = vsel %vm1967_vm3, %v1935_v41, -1e+30  ;;  %v2167_v41 = vsub.f32 %v5741_v52, %v2045_v17  ;;  %v2047_v52 = vpop.xlane.xlu0 %2046 }
 0x395   : > { %v1637_v39 = vpop.f32.mrf.mxu0  ;;  %v1787_v55 = vpop.f32.mrf.mxu1  ;;  %v2236_v13 = vmul.f32 1.442695, %v2167_v41 }
 0x396   : > { %v5908_v60 = vsel %vm1967_vm3, %v1637_v39, -1e+30  ;;  %v5946_v58 = vsel %vm1967_vm3, %v1787_v55, -1e+30  ;;  %v2043_v39 = vpop.xlane.xlu2 %2042 }
 0x397   : > { %2068 = vmax.xlane.f32.xlu2 %v5908_v60  ;;  %2062 = vmax.xlane.f32.xlu1 %v5912_v18  ;;  %4309 = vpow2.f32 %v2236_v13 }
 0x39a   : > { %v5940_v42 = vpop.f32.mrf.mxu2 }
 0x39d   : > { %v1640_v2 = vpop.f32.mrf.mxu0  ;;  %v1790_v28 = vpop.f32.mrf.mxu1 }
 0x39e   : > { %v5926_v50 = vsel %vm1967_vm3, %v1640_v2, -1e+30  ;;  %v5968_v14 = vsel %vm1967_vm3, %v1790_v28, -1e+30  ;;  %v2166_v2 = vsub.f32 %v5725_v25, %v2043_v39  ;;  %v6021_v25 = vsel %vm1967_vm3, %v5940_v42, -1e+30  ;;  %v6024_v22 = vpop.eup %4309  ;;  %v2049_v41 = vpop.xlane.xlu2 %2048 }
 0x39f   : > { %2132 = vmax.xlane.f32.xlu2 %v5918_v45  ;;  %2130 = vmax.xlane.f32.xlu1 %v5922_v53  ;;  %v2168_v42 = vsub.f32 %v5758_v12, %v2047_v52  ;;  %v2169_v52 = vsub.f32 %v5770_v37, %v2049_v41 }
 0x3a0   : > { %2070 = vmax.xlane.f32.xlu0 %v5926_v50  ;;  %v2234_v49 = vmul.f32 1.442695, %v2166_v2 }
 0x3a1   : > { %v2238_v28 = vmul.f32 1.442695, %v2168_v42 }
 0x3a2   : > { %v5964_v62 = vpop.f32.mrf.mxu2  ;;  %4311 = vpow2.f32 %v2234_v49 }
 0x3a3   : > { %v6049_v12 = vsel %vm1967_vm3, %v5964_v62, -1e+30  ;;  %4313 = vpow2.f32 %v2238_v28 }
 0x3a5   : > { %v1642_v21 = vpop.f32.mrf.mxu0  ;;  %v1792_v3 = vpop.f32.mrf.mxu1 }
 0x3a6   : > { %v5972_v15 = vsel %vm1967_vm3, %v1642_v21, -1e+30  ;;  %v6003_v63 = vsel %vm1967_vm3, %v1792_v3, -1e+30  ;;  %v6123_v30 = vpop.xlane.xlu2 %2058 }
 0x3a7   : > { %2102 = vmax.xlane.f32.xlu2 %v5934_v23  ;;  %2100 = vmax.xlane.f32.xlu1 %v5938_v61  ;;  %6863 = vst [vmem:[#allocation27_spill] sm:$0xff] %v6123_v30 }
 0x3a8   : > { %2104 = vmax.xlane.f32.xlu0 %v5946_v58  ;;  %v6030_v0 = vpop.eup %4311 }
 0x3a9   : > { %v6052_v3 = vpop.eup %4313 }
 0x3aa   : > { %v1942_v32 = vpop.f32.mrf.mxu2  ;;  %6854 = vst [vmem:[#allocation45_spill] sm:$0xff] %v6052_v3 }
 0x3ab   : > { %v6056_v17 = vsel %vm1967_vm3, %v1942_v32, -1e+30 }
 0x3ad   : > { %v1645_v1 = vpop.f32.mrf.mxu0  ;;  %v1795_v54 = vpop.f32.mrf.mxu1 }
 0x3ae   : > { %v5978_v20 = vsel %vm1967_vm3, %v1645_v1, -1e+30  ;;  %v6010_v21 = vsel %vm1967_vm3, %v1795_v54, -1e+30 }
 0x3af   : > { %2134 = vmax.xlane.f32.xlu2 %v5953_v36  ;;  %2354 = vadd.xlane.f32.xlu1 %v5949_v29 }
 0x3b0   : > { %2136 = vmax.xlane.f32.xlu0 %v5960_v26 }
 0x3b2   : > { %v1945_v8 = vpop.f32.mrf.mxu2 }
 0x3b3   : > { %v6071_v32 = vsel %vm1967_vm3, %v1945_v8, -1e+30  ;;  %v6087_v8 = vpop.xlane.xlu1 %2052 }
 0x3b4   : > { %6855 = vst [vmem:[#allocation43_spill] sm:$0xff] %v6071_v32 }
 0x3b5   : > { %v1647_v56 = vpop.f32.mrf.mxu0  ;;  %v1797_v1 = vpop.f32.mrf.mxu1 }
 0x3b6   : > { %v5997_v9 = vsel %vm1967_vm3, %v1647_v56, -1e+30  ;;  %v6042_v56 = vsel %vm1967_vm3, %v1797_v1, -1e+30 }
 0x3b7   : > { %2106 = vmax.xlane.f32.xlu2 %v5968_v14  ;;  %2072 = vmax.xlane.f32.xlu1 %v5972_v15 }
 0x3b8   : > { %2074 = vmax.xlane.f32.xlu0 %v5978_v20 }
 0x3ba   : > { %v1947_v57 = vpop.f32.mrf.mxu2 }
 0x3bb   : > { %v6075_v54 = vsel %vm1967_vm3, %v1947_v57, -1e+30  ;;  %v2240_v57 = vmul.f32 1.442695, %v2169_v52  ;;  %v6106_v52 = vpop.xlane.xlu1 %2060 }
 0x3bc   : > { %6859 = vst [vmem:[#allocation44_spill] sm:$0xff] %v6106_v52 }
 0x3bd   : > { %v1650_v5 = vpop.f32.mrf.mxu0  ;;  %v1800_v27 = vpop.f32.mrf.mxu1  ;;  %4315 = vpow2.f32 %v2240_v57 }
 0x3be   : > { %v6014_v31 = vsel %vm1967_vm3, %v1650_v5, -1e+30  ;;  %v6064_v62 = vsel %vm1967_vm3, %v1800_v27, -1e+30 }
 0x3bf   : > { %2358 = vadd.xlane.f32.xlu2 %v5984_v4  ;;  %2356 = vadd.xlane.f32.xlu1 %v5982_v40 }
 0x3c0   : > { %2138 = vmax.xlane.f32.xlu0 %v5990_v34 }
 0x3c2   : > { %v1950_v51 = vpop.f32.mrf.mxu2 }
 0x3c5   : > { %v1652_v10 = vpop.f32.mrf.mxu0  ;;  %v1802_v39 = vpop.f32.mrf.mxu1 }
 0x3c6   : > { %v6028_v16 = vsel %vm1967_vm3, %v1652_v10, -1e+30  ;;  %v6058_v10 = vpop.xlane.xlu0 %2050 }
 0x3c7   : > { %2076 = vmax.xlane.f32.xlu2 %v5997_v9  ;;  %2360 = vadd.xlane.f32.xlu1 %v5993_v19 }
 0x3c8   : > { %2108 = vmax.xlane.f32.xlu0 %v6003_v63 }
 0x3ca   : > { %v1952_v38 = vpop.f32.mrf.mxu2 }
 0x3cd   : > { %v1655_v55 = vpop.f32.mrf.mxu0  ;;  %v1805_v1 = vpop.f32.mrf.mxu1 }
 0x3ce   : > { %v6038_v48 = vsel %vm1967_vm3, %v1655_v55, -1e+30  ;;  %v6077_v13 = vpop.xlane.xlu0 %2054  ;;  %v6083_v55 = vsel %vm1967_vm3, %v1802_v39, -1e+30  ;;  %v6091_v42 = vsel %vm1967_vm3, %v1805_v1, -1e+30  ;;  %v6108_v1 = vpop.eup %4315 }
 0x3cf   : > { %2110 = vmax.xlane.f32.xlu2 %v6010_v21  ;;  %2078 = vmax.xlane.f32.xlu1 %v6014_v31  ;;  %6856 = vst [vmem:[#allocation42_spill] sm:$0xff] %v6083_v55 }
 0x3d0   : > { %2140 = vmax.xlane.f32.xlu0 %v6021_v25  ;;  %6857 = vst [vmem:[#allocation51_spill] sm:$0xff] %v6091_v42 }
 0x3d1   : > { %6860 = vst [vmem:[#allocation35_spill] sm:$0xff] %v6108_v1 }
 0x3d2   : > { %v6067_v2 = vpop.f32.mrf.mxu2 }
 0x3d5   : > { %v1657_v47 = vpop.f32.mrf.mxu0  ;;  %v1807_v11 = vpop.f32.mrf.mxu1 }
 0x3d6   : > { %v6095_v28 = vsel %vm1967_vm3, %v1657_v47, -1e+30  ;;  %v6104_v39 = vpop.xlane.xlu0 %2056 }
 0x3d7   : > { %2364 = vadd.xlane.f32.xlu2 %v6024_v22  ;;  %2080 = vmax.xlane.f32.xlu1 %v6028_v16 }
 0x3d8   : > { %2362 = vadd.xlane.f32.xlu0 %v6030_v0 }
 0x3da   : > { %v1957_v27 = vpop.f32.mrf.mxu2 }
 0x3dd   : > { %v1660_v44 = vpop.f32.mrf.mxu0  ;;  %v1810_v30 = vpop.f32.mrf.mxu1 }
 0x3de   : > { %v6101_v37 = vsel %vm1967_vm3, %v1660_v44, -1e+30 }
 0x3df   : > { %2082 = vmax.xlane.f32.xlu2 %v6038_v48  ;;  %2112 = vmax.xlane.f32.xlu1 %v6042_v56  ;;  %6858 = vst [vmem:[#allocation49_spill] sm:$0xff] %v6101_v37 }
 0x3e0   : > { %2142 = vmax.xlane.f32.xlu0 %v6049_v12 }
 0x3e2   : > { %v1960_v57 = vpop.f32.mrf.mxu2 }
 0x3e5   : > { %v1662_v5 = vpop.f32.mrf.mxu0 }
 0x3e6   : > { %v6118_v44 = vsel %vm1967_vm3, %v1662_v5, -1e+30  ;;  %v6137_v5 = vsel %vm1967_vm3, %v1952_v38, -1e+30 }
 0x3e7   : > { %2366 = vadd.xlane.f32.xlu2 %v6052_v3  ;;  %2144 = vmax.xlane.f32.xlu1 %v6056_v17  ;;  %6862 = vst [vmem:[#allocation50_spill] sm:$0xff] %v6118_v44 }
 0x3e8   : > { %2114 = vmax.xlane.f32.xlu0 %v6064_v62  ;;  %6866 = vst [vmem:[#allocation24_spill] sm:$0xff] %v6137_v5 }
 0x3ed   : > { %v1665_v49 = vpop.f32.mrf.mxu0 }
 0x3ee   : > { %v6154_v38 = vsel %vm1967_vm3, %v1665_v49, -1e+30 }
 0x3ef   : > { %2148 = vmax.xlane.f32.xlu2 %v6075_v54  ;;  %2146 = vmax.xlane.f32.xlu1 %v6071_v32  ;;  %6871 = vst [vmem:[#allocation14_spill] sm:$0xff] %v6154_v38 }
 0x3f0   : > { %2116 = vmax.xlane.f32.xlu0 %v6083_v55 }
 0x3f2   : > { %v6121_v18 = vpop.xlane.xlu0 %2098 }
 0x3f5   : > { %v1667_v41 = vpop.f32.mrf.mxu0 }
 0x3f6   : > { %v6112_v47 = vsel %vm1967_vm3, %v1667_v41, -1e+30  ;;  %v6127_v41 = vsel %vm1967_vm3, %v1950_v51, -1e+30  ;;  %v1962_v51 = vpop.f32.mrf.mxu2 }
 0x3f7   : > { %2118 = vmax.xlane.f32.xlu2 %v6091_v42  ;;  %2084 = vmax.xlane.f32.xlu1 %v6095_v28  ;;  %6861 = vst [vmem:[#allocation36_spill] sm:$0xff] %v6112_v47 }
 0x3f8   : > { %2086 = vmax.xlane.f32.xlu0 %v6101_v37  ;;  %6864 = vst [vmem:[#allocation11_spill] sm:$0xff] %v6127_v41 }
 0x3fd   : > { %v1670_v35 = vpop.f32.mrf.mxu0 }
 0x3ff   : > { %2092 = vmax.xlane.f32.xlu2 %v6112_v47  ;;  %2368 = vadd.xlane.f32.xlu1 %v6108_v1  ;;  %v6131_v47 = vsel %vm1967_vm3, %v1670_v35, -1e+30  ;;  %v6142_v1 = vpop.xlane.xlu0 %2064  ;;  %v6146_v35 = vsel %vm1967_vm3, %v1962_v51, -1e+30  ;;  %v6161_v51 = vsel %vm1967_vm3, %v1810_v30, -1e+30 }
 0x400   : > { %2088 = vmax.xlane.f32.xlu0 %v6118_v44  ;;  %6865 = vst [vmem:[#allocation22_spill] sm:$0xff] %v6131_v47  ;;  %v6177_v30 = vsel %vm1967_vm3, %v6067_v2, -1e+30 }
 0x401   : > { %6868 = vst [vmem:[#allocation20_spill] sm:$0xff] %v6142_v1 }
 0x402   : > { %v2067_v52 = vpop.xlane.xlu1 %2066  ;;  %6869 = vst [vmem:[#allocation19_spill] sm:$0xff] %v6146_v35 }
 0x403   : > { %6872 = vst [vmem:[#allocation17_spill] sm:$0xff] %v6161_v51 }
 0x404   : > { %6874 = vst [vmem:[#allocation33_spill] sm:$0xff] %v6177_v30 }
 0x405   : > { %v1672_v37 = vpop.f32.mrf.mxu0 }
 0x407   : > { %2094 = vmax.xlane.f32.xlu2 %v6131_v47  ;;  %2150 = vmax.xlane.f32.xlu1 %v6127_v41  ;;  %v6150_v47 = vsel %vm1967_vm3, %v1807_v11, -1e+30  ;;  %v1812_v41 = vpop.f32.mrf.mxu1 }
 0x408   : > { %2152 = vmax.xlane.f32.xlu0 %v6137_v5  ;;  %6870 = vst [vmem:[#allocation18_spill] sm:$0xff] %v6150_v47  ;;  %v6166_v11 = vsel %vm1967_vm3, %v1812_v41, -1e+30  ;;  %v6182_v41 = vsel %vm1967_vm3, %v1957_v27, -1e+30 }
 0x409   : > { %6873 = vst [vmem:[#allocation15_spill] sm:$0xff] %v6166_v11  ;;  %v6195_v27 = vsel %vm1967_vm3, %v1672_v37, -1e+30 }
 0x40a   : > { %v2069_v44 = vpop.xlane.xlu2 %2068  ;;  %v6140_v55 = vpop.xlane.xlu1 %2062 }
 0x40b   : > { %6867 = vst [vmem:[#allocation21_spill] sm:$0xff] %v6140_v55 }
 0x40f   : > { %2160 = vmax.xlane.f32.xlu2 %v6146_v35  ;;  %2120 = vmax.xlane.f32.xlu1 %v6150_v47 }
 0x410   : > { %2090 = vmax.xlane.f32.xlu0 %v6154_v38 }
 0x412   : > { %v2133_v55 = vpop.xlane.xlu2 %2132  ;;  %v2131_v1 = vpop.xlane.xlu1 %2130 }
 0x413   : > { %v2071_v5 = vpop.xlane.xlu0 %2070 }
 0x417   : > { %2122 = vmax.xlane.f32.xlu1 %v6161_v51  ;;  %v2210_v51 = vsub.f32 %v5922_v53, %v2131_v1  ;;  %v6199_v53 = vsel %vm1967_vm3, %v1960_v57, -1e+30 }
 0x418   : > { %2124 = vmax.xlane.f32.xlu0 %v6166_v11 }
 0x419   : > { %v2322_v42 = vmul.f32 1.442695, %v2210_v51 }
 0x41a   : > { %v6169_v49 = vpop.xlane.xlu2 %2102  ;;  %v2101_v35 = vpop.xlane.xlu1 %2100 }
 0x41b   : > { %v2195_v38 = vsub.f32 %v5938_v61, %v2101_v35  ;;  %v6172_v47 = vpop.xlane.xlu0 %2104  ;;  %v6186_v61 = vpop.f32.mrf.mxu1  ;;  %v2178_v35 = vsub.f32 %v5903_v43, %v2067_v52  ;;  %v2180_v43 = vsub.f32 %v5926_v50, %v2071_v5  ;;  %v2194_v52 = vsub.f32 %v5892_v6, %v6121_v18 }
 0x41c   : > { %v2211_v6 = vsub.f32 %v5918_v45, %v2133_v55  ;;  %v2171_v5 = vsub.f32 %v5806_v7, %v6087_v8  ;;  %v2197_v8 = vsub.f32 %v5946_v58, %v6172_v47 }
 0x41d   : > { %v2292_v32 = vmul.f32 1.442695, %v2195_v38 }
 0x41e   : > { %v2244_v55 = vmul.f32 1.442695, %v2171_v5  ;;  %v2296_v5 = vmul.f32 1.442695, %v2197_v8 }
 0x41f   : > { %2154 = vmax.xlane.f32.xlu1 %v6177_v30  ;;  %4317 = vpow2.f32 %v2292_v32  ;;  %v2258_v30 = vmul.f32 1.442695, %v2178_v35  ;;  %v2179_v32 = vsub.f32 %v5908_v60, %v2069_v44  ;;  %v2262_v44 = vmul.f32 1.442695, %v2180_v43 }
 0x420   : > { %2156 = vmax.xlane.f32.xlu0 %v6182_v41  ;;  %4319 = vpow2.f32 %v2322_v42  ;;  %v2290_v35 = vmul.f32 1.442695, %v2194_v52 }
 0x421   : > { %4321 = vpow2.f32 %v2258_v30  ;;  %v2260_v51 = vmul.f32 1.442695, %v2179_v32  ;;  %v2324_v32 = vmul.f32 1.442695, %v2211_v6 }
 0x422   : > { %v2135_v38 = vpop.xlane.xlu2 %2134  ;;  %v2355_v11 = vpop.xlane.xlu1 %2354 }
 0x423   : > { %v6189_v2 = vpop.xlane.xlu0 %2136  ;;  %v1817_v57 = vpop.f32.mrf.mxu1  ;;  %4323 = vrcp.f32 %v2355_v11  ;;  %v2212_v18 = vsub.f32 %v5953_v36, %v2135_v38  ;;  %v2170_v36 = vsub.f32 %v5790_v24, %v6058_v10 }
 0x424   : > { %v6218_v50 = vsel %vm1967_vm3, %v1817_v57, -1e+30  ;;  %4325 = vpow2.f32 %v2260_v51 }
 0x425   : > { %v6191_v3 = vpop.eup %4317  ;;  %4327 = vpow2.f32 %v2262_v44  ;;  %v2326_v57 = vmul.f32 1.442695, %v2212_v18  ;;  %v2242_v18 = vmul.f32 1.442695, %v2170_v36 }
 0x426   : > { %6875 = vst [vmem:[#allocation25_spill] sm:$0xff] %v6191_v3  ;;  %2420 = vadd.xlane.f32.xlu2 %v6191_v3  ;;  %v6214_v3 = vpop.eup %4319  ;;  %4329 = vpow2.f32 %v2290_v35 }
 0x427   : > { %2096 = vmax.xlane.f32.xlu1 %v6195_v27  ;;  %v6220_v42 = vpop.eup %4321 }
 0x428   : > { %2158 = vmax.xlane.f32.xlu0 %v6199_v53 }
 0x429   : > { %v4324_v52 = vpop.eup %4323 }
 0x42a   : > { %v6208_v37 = vpop.xlane.xlu2 %2106  ;;  %v6210_v1 = vpop.xlane.xlu1 %2072  ;;  %v2546_v7 = vmul.f32 %v4324_v52, %v5949_v29 }
 0x42b   : > { %v6212_v60 = vpop.xlane.xlu0 %2074  ;;  %v6229_v45 = vpop.eup %4325  ;;  %v2181_v33 = vsub.f32 %v5972_v15, %v6210_v1 }
 0x42c   : > { %v6231_v51 = vpop.eup %4327  ;;  %v2610_v24 = vpack.c.bf16 %v2546_v7, %v2546_v7 }
 0x42d   : > { %v6233_v44 = vpop.eup %4329 }
 0x42e   : > { %2128 = vmax.xlane.f32.xlu2 %v6218_v50  ;;  %v2690_v47 = vunpack.c.l.b16 %v2610_v24 }
 0x42f   : > { %2450 = vadd.xlane.f32.xlu1 %v6214_v3 }
 0x430   : > { %2386 = vadd.xlane.f32.xlu0 %v6220_v42 }
 0x432   : > { %v2359_v11 = vpop.xlane.xlu2 %2358  ;;  %v2357_v30 = vpop.xlane.xlu1 %2356 }
 0x433   : > { %v2139_v43 = vpop.xlane.xlu0 %2138  ;;  %4331 = vrcp.f32 %v2357_v30 }
 0x434   : > { %4333 = vpow2.f32 %v2324_v32 }
 0x435   : > { %4335 = vpow2.f32 %v2326_v57  ;;  %v2213_v57 = vsub.f32 %v5960_v26, %v6189_v2 }
 0x436   : > { %2390 = vadd.xlane.f32.xlu2 %v6231_v51  ;;  %4337 = vpow2.f32 %v2244_v55 }
 0x437   : > { %2388 = vadd.xlane.f32.xlu1 %v6229_v45 }
 0x438   : > { %2418 = vadd.xlane.f32.xlu0 %v6233_v44 }
 0x439   : > { %v4332_v38 = vpop.eup %4331 }
 0x43a   : > { %v6243_v35 = vpop.xlane.xlu2 %2076  ;;  %v2361_v6 = vpop.xlane.xlu1 %2360  ;;  %v2547_v10 = vmul.f32 %v4332_v38, %v5982_v40  ;;  %v2214_v40 = vsub.f32 %v5990_v34, %v2139_v43 }
 0x43b   : > { %v2109_v29 = vpop.xlane.xlu0 %2108  ;;  %4339 = vrcp.f32 %v2361_v6  ;;  %v6246_v30 = vpop.eup %4333  ;;  %v2328_v6 = vmul.f32 1.442695, %v2213_v57 }
 0x43c   : > { %v2611_v32 = vpack.c.bf16 %v2547_v10, %v2547_v10  ;;  %v6248_v52 = vpop.eup %4335  ;;  %4341 = vrcp.f32 %v2359_v11  ;;  %v2196_v11 = vsub.f32 %v5934_v23, %v6169_v49  ;;  %v6270_v23 = vsel %vm1967_vm3, %v6186_v61, -1e+30 }
 0x43d   : > { %v6250_v58 = vpop.eup %4337  ;;  %4343 = vpow2.f32 %v2242_v18  ;;  %v2330_v18 = vmul.f32 1.442695, %v2214_v40  ;;  %v2182_v49 = vsub.f32 %v5978_v20, %v6212_v60 }
 0x43e   : > { %v2691_v55 = vunpack.c.l.b16 %v2611_v32  ;;  %2454 = vadd.xlane.f32.xlu2 %v6248_v52  ;;  %4345 = vpow2.f32 %v2296_v5  ;;  %v2294_v10 = vmul.f32 1.442695, %v2196_v11 }
 0x43f   : > { %2452 = vadd.xlane.f32.xlu1 %v6246_v30  ;;  %4347 = vpow2.f32 %v2328_v6  ;;  %v2266_v57 = vmul.f32 1.442695, %v2182_v49  ;;  %v2198_v6 = vsub.f32 %v5968_v14, %v6208_v37 }
 0x440   : > { %2372 = vadd.xlane.f32.xlu0 %v6250_v58  ;;  %v2706_v36 = vpack.c.b16 %v2691_v55, %v2690_v47  ;;  %4349 = vpow2.f32 %v2330_v18 }
 0x441   : > { %v4340_v7 = vpop.eup %4339  ;;  %4351 = vpow2.f32 %v2294_v10 }
 0x442   : > { %v2111_v8 = vpop.xlane.xlu2 %2110  ;;  %v6260_v38 = vpop.xlane.xlu1 %2078  ;;  %2762 = vmatmul.bf16.vlgmr.msra.gmra.mxu3 %v2706_v36  ;;  %v2549_v34 = vmul.f32 %v4340_v7, %v5993_v19  ;;  %v2199_v19 = vsub.f32 %v6003_v63, %v2109_v29 }
 0x443   : > { %v2141_v26 = vpop.xlane.xlu0 %2140  ;;  %v4342_v2 = vpop.eup %4341  ;;  %v2200_v15 = vsub.f32 %v6010_v21, %v2111_v8 }
 0x444   : > { %v6262_v24 = vpop.eup %4343  ;;  %v2548_v5 = vmul.f32 %v4342_v2, %v5984_v4  ;;  %v2613_v61 = vpack.c.bf16 %v2549_v34, %v2549_v34  ;;  %v2300_v55 = vmul.f32 1.442695, %v2199_v19  ;;  %v2264_v4 = vmul.f32 1.442695, %v2181_v33 }
 0x445   : > { %v6265_v43 = vpop.eup %4345  ;;  %v2215_v36 = vsub.f32 %v6021_v25, %v2141_v26  ;;  %v2302_v34 = vmul.f32 1.442695, %v2200_v15 }
 0x446   : > { %2424 = vadd.xlane.f32.xlu2 %v6265_v43  ;;  %v2612_v60 = vpack.c.bf16 %v2548_v5, %v2548_v5  ;;  %v6281_v40 = vpop.eup %4347  ;;  %v2693_v11 = vunpack.c.l.b16 %v2613_v61  ;;  %v2298_v5 = vmul.f32 1.442695, %v2198_v6 }
 0x447   : > { %2370 = vadd.xlane.f32.xlu1 %v6262_v24  ;;  %v6283_v63 = vpop.eup %4349  ;;  %v2332_v8 = vmul.f32 1.442695, %v2215_v36  ;;  %v2184_v36 = vsub.f32 %v6014_v31, %v6260_v38 }
 0x448   : > { %2126 = vmax.xlane.f32.xlu0 %v6270_v23  ;;  %v6285_v29 = vpop.eup %4351  ;;  %v2692_v1 = vunpack.c.l.b16 %v2612_v60 }
 0x44a   : > { %v2365_v32 = vpop.xlane.xlu2 %2364  ;;  %v2081_v47 = vpop.xlane.xlu1 %2080  ;;  %v2707_v2 = vpack.c.b16 %v2693_v11, %v2692_v1  ;;  %v2173_v1 = vsub.f32 %v5833_v59, %v6104_v39 }
 0x44b   : > { %4353 = vrcp.f32 %v2365_v32  ;;  %v2363_v20 = vpop.xlane.xlu0 %2362  ;;  %v2185_v14 = vsub.f32 %v6028_v16, %v2081_v47 }
 0x44c   : > { %4355 = vrcp.f32 %v2363_v20 }
 0x44d   : > { %4357 = vpow2.f32 %v2266_v57  ;;  %v2272_v20 = vmul.f32 1.442695, %v2185_v14 }
 0x44e   : > { %2458 = vadd.xlane.f32.xlu2 %v6283_v63  ;;  %4359 = vpow2.f32 %v2300_v55 }
 0x44f   : > { %2456 = vadd.xlane.f32.xlu1 %v6281_v40  ;;  %4361 = vpow2.f32 %v2264_v4 }
 0x450   : > { %2422 = vadd.xlane.f32.xlu0 %v6285_v29  ;;  %4363 = vpow2.f32 %v2302_v34  ;;  %v2270_v34 = vmul.f32 1.442695, %v2184_v36 }
 0x451   : > { %v4354_v7 = vpop.eup %4353  ;;  %4365 = vpow2.f32 %v2332_v8 }
 0x452   : > { %v4356_v18 = vpop.eup %4355  ;;  %v2113_v10 = vpop.xlane.xlu1 %2112  ;;  %2767 = vmatmul.bf16.gmra.mxu3 %v2707_v2  ;;  %v2551_v25 = vmul.f32 %v4354_v7, %v6024_v22  ;;  %4367 = vpow2.f32 %v2298_v5  ;;  %v2183_v22 = vsub.f32 %v5997_v9, %v6243_v35  ;;  %v2248_v2 = vmul.f32 1.442695, %v2173_v1 }
 0x453   : > { %v2143_v21 = vpop.xlane.xlu0 %2142  ;;  %v6294_v49 = vpop.eup %4357  ;;  %v2550_v19 = vmul.f32 %v4356_v18, %v6030_v0  ;;  %4369 = vpow2.f32 %v2272_v20  ;;  %v2201_v9 = vsub.f32 %v6042_v56, %v2113_v10 }
 0x454   : > { %v6298_v26 = vpop.eup %4359  ;;  %v2083_v33 = vpop.xlane.xlu2 %2082  ;;  %v2216_v37 = vsub.f32 %v6049_v12, %v2143_v21  ;;  %v2615_v32 = vpack.c.bf16 %v2551_v25, %v2551_v25  ;;  %v2268_v47 = vmul.f32 1.442695, %v2183_v22 }
 0x455   : > { %v6300_v61 = vpop.eup %4361  ;;  %v2614_v0 = vpack.c.bf16 %v2550_v19, %v2550_v19  ;;  %v2304_v39 = vmul.f32 1.442695, %v2201_v9  ;;  %v2186_v21 = vsub.f32 %v6038_v48, %v2083_v33 }
 0x456   : > { %2428 = vadd.xlane.f32.xlu2 %v6298_v26  ;;  %v2334_v55 = vmul.f32 1.442695, %v2216_v37  ;;  %v6309_v16 = vpop.eup %4363  ;;  %v2695_v11 = vunpack.c.l.b16 %v2615_v32 }
 0x457   : > { %2394 = vadd.xlane.f32.xlu1 %v6294_v49  ;;  %v2694_v4 = vunpack.c.l.b16 %v2614_v0  ;;  %v6311_v15 = vpop.eup %4365  ;;  %v2274_v19 = vmul.f32 1.442695, %v2186_v21  ;;  %v2172_v0 = vsub.f32 %v5823_v46, %v6077_v13  ;;  %v6877_v46 = vld [vmem:[#allocation51_spill] sm:$0xff] }
 0x458   : > { %2392 = vadd.xlane.f32.xlu0 %v6300_v61  ;;  %v6313_v12 = vpop.eup %4367  ;;  %4371 = vpow2.f32 %v2334_v55  ;;  %v6880_v21 = vld [vmem:[#allocation35_spill] sm:$0xff] }
 0x459   : > { %4373 = vpow2.f32 %v2268_v47  ;;  %v2708_v7 = vpack.c.b16 %v2695_v11, %v2694_v4  ;;  %v6327_v18 = vpop.eup %4369  ;;  %v2246_v4 = vmul.f32 1.442695, %v2172_v0 }
 0x45a   : > { %v2145_v57 = vpop.xlane.xlu1 %2144  ;;  %4375 = vpow2.f32 %v2248_v2  ;;  %v6879_v2 = vld [vmem:[#allocation43_spill] sm:$0xff] }
 0x45b   : > { %v2115_v60 = vpop.xlane.xlu0 %2114  ;;  %4377 = vpow2.f32 %v2304_v39  ;;  %v2217_v38 = vsub.f32 %v6056_v17, %v2145_v57 }
 0x45c   : > { %v2367_v35 = vpop.xlane.xlu2 %2366  ;;  %v2202_v31 = vsub.f32 %v6064_v62, %v2115_v60  ;;  %4379 = vpow2.f32 %v2270_v34 }
 0x45d   : > { %4381 = vrcp.f32 %v2367_v35  ;;  %v2336_v48 = vmul.f32 1.442695, %v2217_v38  ;;  %v6878_v35 = vld [vmem:[#allocation49_spill] sm:$0xff] }
 0x45e   : > { %2430 = vadd.xlane.f32.xlu2 %v6309_v16  ;;  %v6329_v56 = vpop.eup %4371  ;;  %v2306_v14 = vmul.f32 1.442695, %v2202_v31  ;;  %4383 = vpow2.f32 %v2274_v19 }
 0x45f   : > { %2460 = vadd.xlane.f32.xlu1 %v6311_v15  ;;  %v6331_v10 = vpop.eup %4373 }
 0x460   : > { %2426 = vadd.xlane.f32.xlu0 %v6313_v12  ;;  %v6339_v37 = vpop.eup %4375  ;;  %4385 = vpow2.f32 %v2306_v14 }
 0x461   : > { %v6341_v33 = vpop.eup %4377  ;;  %4387 = vpow2.f32 %v2336_v48 }
 0x462   : > { %v6323_v6 = vpop.xlane.xlu1 %2146  ;;  %2772 = vmatmul.bf16.gmra.mxu3 %v2708_v7  ;;  %v6343_v22 = vpop.eup %4379 }
 0x463   : > { %v6325_v59 = vpop.xlane.xlu0 %2116  ;;  %v4382_v57 = vpop.eup %4381  ;;  %v2218_v39 = vsub.f32 %v6879_v2, %v6323_v6  ;;  %v6881_v6 = vld [vmem:[#allocation11_spill] sm:$0xff] }
 0x464   : > { %v2149_v8 = vpop.xlane.xlu2 %2148  ;;  %v6354_v47 = vpop.eup %4383 }
 0x465   : > { %v2219_v62 = vsub.f32 %v6075_v54, %v2149_v8 }
 0x466   : > { %2400 = vadd.xlane.f32.xlu2 %v6327_v18  ;;  %v6356_v11 = vpop.eup %4385 }
 0x467   : > { %2462 = vadd.xlane.f32.xlu1 %v6329_v56  ;;  %v2340_v20 = vmul.f32 1.442695, %v2219_v62  ;;  %v6359_v9 = vpop.eup %4387  ;;  %v2338_v62 = vmul.f32 1.442695, %v2218_v39 }
 0x468   : > { %2396 = vadd.xlane.f32.xlu0 %v6331_v10 }
 0x46a   : > { %v2085_v5 = vpop.xlane.xlu1 %2084 }
 0x46b   : > { %v2087_v25 = vpop.xlane.xlu0 %2086  ;;  %v2187_v17 = vsub.f32 %v6095_v28, %v2085_v5  ;;  %v6876_v28 = vld [vmem:[#allocation45_spill] sm:$0xff] }
 0x46c   : > { %v2119_v54 = vpop.xlane.xlu2 %2118  ;;  %v2552_v1 = vmul.f32 %v4382_v57, %v6876_v28  ;;  %v2188_v36 = vsub.f32 %v6878_v35, %v2087_v25  ;;  %v6883_v28 = vld [vmem:[#allocation42_spill] sm:$0xff] }
 0x46d   : > { %v2276_v55 = vmul.f32 1.442695, %v2187_v17  ;;  %v2204_v13 = vsub.f32 %v6877_v46, %v2119_v54  ;;  %v6882_v54 = vld [vmem:[#allocation24_spill] sm:$0xff] }
 0x46e   : > { %2376 = vadd.xlane.f32.xlu2 %v6339_v37  ;;  %v2616_v38 = vpack.c.bf16 %v2552_v1, %v2552_v1  ;;  %v2278_v19 = vmul.f32 1.442695, %v2188_v36  ;;  %v2203_v1 = vsub.f32 %v6883_v28, %v6325_v59  ;;  %v6889_v28 = vld [vmem:[#allocation41_spill] sm:$0xff] }
 0x46f   : > { %2432 = vadd.xlane.f32.xlu1 %v6341_v33  ;;  %v2310_v8 = vmul.f32 1.442695, %v2204_v13 }
 0x470   : > { %2398 = vadd.xlane.f32.xlu0 %v6343_v22  ;;  %v2696_v0 = vunpack.c.l.b16 %v2616_v38  ;;  %v2308_v2 = vmul.f32 1.442695, %v2203_v1  ;;  %v6886_v38 = vld [vmem:[#allocation14_spill] sm:$0xff] }
 0x472   : > { %v2369_v32 = vpop.xlane.xlu1 %2368 }
 0x473   : > { %4389 = vrcp.f32 %v2369_v32  ;;  %v6352_v60 = vpop.xlane.xlu0 %2088 }
 0x474   : > { %4391 = vpow2.f32 %v2340_v20  ;;  %v6373_v25 = vpop.xlane.xlu2 %2092 }
 0x475   : > { %4393 = vpow2.f32 %v2276_v55 }
 0x476   : > { %2402 = vadd.xlane.f32.xlu2 %v6354_v47  ;;  %4395 = vpow2.f32 %v2246_v4 }
 0x477   : > { %2434 = vadd.xlane.f32.xlu1 %v6356_v11  ;;  %4397 = vpow2.f32 %v2310_v8 }
 0x478   : > { %2464 = vadd.xlane.f32.xlu0 %v6359_v9  ;;  %4399 = vpow2.f32 %v2278_v19 }
 0x479   : > { %v4390_v7 = vpop.eup %4389  ;;  %4401 = vpow2.f32 %v2338_v62 }
 0x47a   : > { %v2151_v34 = vpop.xlane.xlu1 %2150  ;;  %v2553_v31 = vmul.f32 %v4390_v7, %v6880_v21  ;;  %v6369_v48 = vpop.eup %4391  ;;  %v6885_v21 = vld [vmem:[#allocation18_spill] sm:$0xff] }
 0x47b   : > { %v2153_v5 = vpop.xlane.xlu0 %2152  ;;  %v6371_v17 = vpop.eup %4393  ;;  %v2220_v20 = vsub.f32 %v6881_v6, %v2151_v34 }
 0x47c   : > { %v2617_v14 = vpack.c.bf16 %v2553_v31, %v2553_v31  ;;  %v6375_v57 = vpop.eup %4395  ;;  %v2221_v55 = vsub.f32 %v6882_v54, %v2153_v5  ;;  %v6393_v59 = vpop.xlane.xlu2 %2094  ;;  %v6887_v5 = vld [vmem:[#allocation50_spill] sm:$0xff] }
 0x47d   : > { %v2342_v13 = vmul.f32 1.442695, %v2220_v20  ;;  %v6384_v7 = vpop.eup %4397  ;;  %v2189_v19 = vsub.f32 %v6887_v5, %v6352_v60  ;;  %v6890_v60 = vld [vmem:[#allocation44_spill] sm:$0xff] }
 0x47e   : > { %v2697_v32 = vunpack.c.l.b16 %v2617_v14  ;;  %2468 = vadd.xlane.f32.xlu2 %v6369_v48  ;;  %v2344_v36 = vmul.f32 1.442695, %v2221_v55  ;;  %6884 = vst [vmem:[#allocation28_spill] sm:$0xff] %v6384_v7  ;;  %v6386_v39 = vpop.eup %4399 }
 0x47f   : > { %2404 = vadd.xlane.f32.xlu1 %v6371_v17  ;;  %v6388_v34 = vpop.eup %4401  ;;  %4403 = vpow2.f32 %v2342_v13  ;;  %v2280_v20 = vmul.f32 1.442695, %v2189_v19 }
 0x480   : > { %2374 = vadd.xlane.f32.xlu0 %v6375_v57  ;;  %v2709_v4 = vpack.c.b16 %v2697_v32, %v2696_v0  ;;  %4405 = vpow2.f32 %v2344_v36 }
 0x481   : > { %4407 = vpow2.f32 %v2308_v2 }
 0x482   : > { %v2121_v46 = vpop.xlane.xlu1 %2120  ;;  %2777 = vmatmul.bf16.gmra.mxu3 %v2709_v4  ;;  %v6888_v4 = vld [vmem:[#allocation27_spill] sm:$0xff] }
 0x483   : > { %v2091_v35 = vpop.xlane.xlu0 %2090  ;;  %v2205_v31 = vsub.f32 %v6885_v21, %v2121_v46  ;;  %v2174_v1 = vsub.f32 %v6889_v28, %v6888_v4  ;;  %v6891_v46 = vld [vmem:[#allocation47_spill] sm:$0xff] }
 0x484   : > { %v2190_v8 = vsub.f32 %v6886_v38, %v2091_v35  ;;  %v2175_v13 = vsub.f32 %v6891_v46, %v6890_v60  ;;  %v6412_v35 = vpop.xlane.xlu2 %2160 }
 0x485   : > { %v2312_v62 = vmul.f32 1.442695, %v2205_v31  ;;  %v6399_v6 = vpop.eup %4403  ;;  %v2250_v2 = vmul.f32 1.442695, %v2174_v1 }
 0x486   : > { %2438 = vadd.xlane.f32.xlu2 %v6384_v7  ;;  %v2282_v32 = vmul.f32 1.442695, %v2190_v8  ;;  %v6401_v54 = vpop.eup %4405  ;;  %v2252_v8 = vmul.f32 1.442695, %v2175_v13 }
 0x487   : > { %2406 = vadd.xlane.f32.xlu1 %v6386_v39  ;;  %v6403_v55 = vpop.eup %4407  ;;  %4409 = vpow2.f32 %v2312_v62 }
 0x488   : > { %2466 = vadd.xlane.f32.xlu0 %v6388_v34  ;;  %4411 = vpow2.f32 %v2282_v32  ;;  %v6894_v32 = vld [vmem:[#allocation36_spill] sm:$0xff] }
 0x489   : > { %4413 = vpow2.f32 %v2280_v20  ;;  %v2191_v4 = vsub.f32 %v6894_v32, %v6373_v25  ;;  %v6895_v20 = vld [vmem:[#allocation15_spill] sm:$0xff]  ;;  %v6897_v25 = vld [vmem:[#allocation21_spill] sm:$0xff] }
 0x48a   : > { %v2123_v14 = vpop.xlane.xlu1 %2122  ;;  %4415 = vpow2.f32 %v2250_v2  ;;  %v6898_v32 = vld [vmem:[#allocation13_spill] sm:$0xff] }
 0x48b   : > { %v2125_v0 = vpop.xlane.xlu0 %2124  ;;  %v2284_v13 = vmul.f32 1.442695, %v2191_v4 }
 0x48c   : > { %v2207_v28 = vsub.f32 %v6895_v20, %v2125_v0 }
 0x48d   : > { %v6415_v38 = vpop.eup %4409 }
 0x48e   : > { %2470 = vadd.xlane.f32.xlu2 %v6399_v6  ;;  %6892 = vst [vmem:[#allocation29_spill] sm:$0xff] %v6415_v38  ;;  %v6417_v5 = vpop.eup %4411  ;;  %v2316_v2 = vmul.f32 1.442695, %v2207_v28 }
 0x48f   : > { %2472 = vadd.xlane.f32.xlu1 %v6401_v54  ;;  %6893 = vst [vmem:[#allocation34_spill] sm:$0xff] %v6417_v5  ;;  %v6419_v62 = vpop.eup %4413 }
 0x490   : > { %2436 = vadd.xlane.f32.xlu0 %v6403_v55 }
 0x492   : > { %v2155_v36 = vpop.xlane.xlu1 %2154 }
 0x493   : > { %v2157_v21 = vpop.xlane.xlu0 %2156 }
 0x494   : > { %v2223_v31 = vsub.f32 %v6182_v41, %v2157_v21  ;;  %v6896_v41 = vld [vmem:[#allocation33_spill] sm:$0xff] }
 0x495   : > { %v2222_v1 = vsub.f32 %v6896_v41, %v2155_v36 }
 0x496   : > { %v2348_v19 = vmul.f32 1.442695, %v2223_v31  ;;  %2410 = vadd.xlane.f32.xlu2 %v6417_v5  ;;  %v6428_v31 = vpop.eup %4415  ;;  %v2176_v5 = vsub.f32 %v6898_v32, %v6897_v25 }
 0x497   : > { %2440 = vadd.xlane.f32.xlu1 %v6415_v38  ;;  %v2346_v7 = vmul.f32 1.442695, %v2222_v1 }
 0x498   : > { %4417 = vpow2.f32 %v2348_v19  ;;  %2408 = vadd.xlane.f32.xlu0 %v6419_v62  ;;  %v6899_v19 = vld [vmem:[#allocation17_spill] sm:$0xff] }
 0x499   : > { %4419 = vpow2.f32 %v2252_v8  ;;  %v2421_v60 = vpop.xlane.xlu2 %2420  ;;  %v2254_v8 = vmul.f32 1.442695, %v2176_v5  ;;  %v2206_v4 = vsub.f32 %v6899_v19, %v2123_v14  ;;  %v6904_v14 = vld [vmem:[#allocation19_spill] sm:$0xff] }
 0x49a   : > { %v2097_v46 = vpop.xlane.xlu1 %2096  ;;  %4421 = vpow2.f32 %v2284_v13 }
 0x49b   : > { %v2159_v21 = vpop.xlane.xlu0 %2158  ;;  %4423 = vpow2.f32 %v2316_v2  ;;  %v2314_v13 = vmul.f32 1.442695, %v2206_v4 }
 0x49c   : > { %v2224_v36 = vsub.f32 %v6199_v53, %v2159_v21  ;;  %4425 = vpow2.f32 %v2346_v7  ;;  %v6902_v53 = vld [vmem:[#allocation20_spill] sm:$0xff]  ;;  %v2193_v7 = vsub.f32 %v6195_v27, %v2097_v46 }
 0x49d   : > { %4427 = vpow2.f32 %v2254_v8  ;;  %v6903_v21 = vld [vmem:[#allocation16_spill] sm:$0xff] }
 0x49e   : > { %v6432_v38 = vpop.eup %4417  ;;  %v2350_v1 = vmul.f32 1.442695, %v2224_v36  ;;  %v2177_v5 = vsub.f32 %v6903_v21, %v6902_v53  ;;  %v2225_v36 = vsub.f32 %v6904_v14, %v6412_v35  ;;  %v2288_v21 = vmul.f32 1.442695, %v2193_v7 }
 0x49f   : > { %v6434_v0 = vpop.eup %4419  ;;  %2476 = vadd.xlane.f32.xlu2 %v6432_v38  ;;  %2378 = vadd.xlane.f32.xlu1 %v6428_v31 }
 0x4a0   : > { %2380 = vadd.xlane.f32.xlu0 %v6434_v0  ;;  %v6443_v25 = vpop.eup %4421 }
 0x4a1   : > { %v6441_v20 = vpop.xlane.xlu2 %2128  ;;  %6900 = vst [vmem:[#allocation23_spill] sm:$0xff] %v6443_v25  ;;  %v6445_v32 = vpop.eup %4423 }
 0x4a2   : > { %v2451_v28 = vpop.xlane.xlu1 %2450  ;;  %6901 = vst [vmem:[#allocation12_spill] sm:$0xff] %v6445_v32  ;;  %v6447_v2 = vpop.eup %4425 }
 0x4a3   : > { %v2387_v41 = vpop.xlane.xlu0 %2386  ;;  %v6459_v4 = vpop.eup %4427 }
 0x4a4   : > { %4429 = vrcp.f32 %v2387_v41  ;;  %6905 = vst [vmem:[#allocation30_spill] sm:$0xff] %v6459_v4  ;;  %v2256_v41 = vmul.f32 1.442695, %v2177_v5  ;;  %v6909_v5 = vld [vmem:[#allocation22_spill] sm:$0xff] }
 0x4a5   : > { %4431 = vrcp.f32 %v2421_v60  ;;  %v2192_v7 = vsub.f32 %v6909_v5, %v6393_v59 }
 0x4a6   : > { %4433 = vpow2.f32 %v2350_v1  ;;  %v6908_v1 = vld [vmem:[#allocation25_spill] sm:$0xff] }
 0x4a7   : > { %2444 = vadd.xlane.f32.xlu2 %v6445_v32  ;;  %2412 = vadd.xlane.f32.xlu1 %v6443_v25  ;;  %4435 = vpow2.f32 %v2314_v13  ;;  %v2352_v25 = vmul.f32 1.442695, %v2225_v36 }
 0x4a8   : > { %2474 = vadd.xlane.f32.xlu0 %v6447_v2 }
 0x4a9   : > { %v6457_v8 = vpop.xlane.xlu2 %2390 }
 0x4aa   : > { %v2389_v19 = vpop.xlane.xlu1 %2388  ;;  %v4430_v53 = vpop.eup %4429 }
 0x4ab   : > { %v2419_v60 = vpop.xlane.xlu0 %2418  ;;  %4437 = vrcp.f32 %v2389_v19  ;;  %v4432_v32 = vpop.eup %4431  ;;  %v2562_v35 = vmul.f32 %v4430_v53, %v6220_v42 }
 0x4ac   : > { %4439 = vrcp.f32 %v2419_v60  ;;  %v6461_v27 = vpop.eup %4433  ;;  %v2579_v13 = vmul.f32 %v4432_v32, %v6908_v1 }
 0x4ad   : > { %6906 = vst [vmem:[#allocation37_spill] sm:$0xff] %v6461_v27  ;;  %4441 = vrcp.f32 %v2451_v28  ;;  %v6463_v46 = vpop.eup %4435 }
 0x4ae   : > { %6907 = vst [vmem:[#allocation38_spill] sm:$0xff] %v6463_v46  ;;  %4443 = vpow2.f32 %v2256_v41  ;;  %v2626_v41 = vpack.c.bf16 %v2562_v35, %v2562_v35 }
 0x4af   : > { %2382 = vadd.xlane.f32.xlu2 %v6459_v4  ;;  %2478 = vadd.xlane.f32.xlu1 %v6461_v27  ;;  %4445 = vpow2.f32 %v2288_v21  ;;  %v2643_v4 = vpack.c.bf16 %v2579_v13, %v2579_v13  ;;  %v2286_v21 = vmul.f32 1.442695, %v2192_v7  ;;  %v2209_v7 = vsub.f32 %v6218_v50, %v6441_v20 }
 0x4b0   : > { %2442 = vadd.xlane.f32.xlu0 %v6463_v46  ;;  %4447 = vpow2.f32 %v2352_v25  ;;  %v2819_v5 = vunpack.c.l.b16 %v2626_v41 }
 0x4b1   : > { %v4438_v14 = vpop.eup %4437  ;;  %v2455_v28 = vpop.xlane.xlu2 %2454 }
 0x4b2   : > { %v2453_v36 = vpop.xlane.xlu1 %2452  ;;  %v4440_v19 = vpop.eup %4439  ;;  %v2563_v42 = vmul.f32 %v4438_v14, %v6229_v45 }
 0x4b3   : > { %v2373_v60 = vpop.xlane.xlu0 %2372  ;;  %v4442_v53 = vpop.eup %4441  ;;  %v2578_v27 = vmul.f32 %v4440_v19, %v6233_v44  ;;  %4449 = vrcp.f32 %v2453_v36  ;;  %v2949_v44 = vunpack.c.l.b16 %v2643_v4 }
 0x4b4   : > { %v6474_v32 = vpop.eup %4443  ;;  %v2627_v1 = vpack.c.bf16 %v2563_v42, %v2563_v42  ;;  %4451 = vrcp.f32 %v2373_v60  ;;  %v2594_v35 = vmul.f32 %v4442_v53, %v6214_v3 }
 0x4b5   : > { %v6476_v46 = vpop.eup %4445  ;;  %v2642_v59 = vpack.c.bf16 %v2578_v27, %v2578_v27  ;;  %4453 = vpow2.f32 %v2286_v21 }
 0x4b6   : > { %v6478_v25 = vpop.eup %4447  ;;  %v2820_v45 = vunpack.c.l.b16 %v2627_v1  ;;  %v2658_v3 = vpack.c.bf16 %v2594_v35, %v2594_v35  ;;  %v2320_v1 = vmul.f32 1.442695, %v2209_v7 }
 0x4b7   : > { %2416 = vadd.xlane.f32.xlu2 %v6476_v46  ;;  %2384 = vadd.xlane.f32.xlu1 %v6474_v32  ;;  %v2948_v13 = vunpack.c.l.b16 %v2642_v59 }
 0x4b8   : > { %2480 = vadd.xlane.f32.xlu0 %v6478_v25  ;;  %v2835_v27 = vpack.c.b16 %v2820_v45, %v2819_v5  ;;  %v3077_v20 = vunpack.c.l.b16 %v2658_v3 }
 0x4b9   : > { %v4450_v14 = vpop.eup %4449  ;;  %v2964_v36 = vpack.c.b16 %v2949_v44, %v2948_v13  ;;  %v2425_v19 = vpop.xlane.xlu2 %2424 }
 0x4ba   : > { %v2371_v42 = vpop.xlane.xlu1 %2370  ;;  %v2595_v41 = vmul.f32 %v4450_v14, %v6246_v30  ;;  %2891 = vmatmul.bf16.vlgmr.msra.gmra.mxu0 %v2835_v27  ;;  %v4452_v53 = vpop.eup %4451 }
 0x4bb   : > { %v2127_v60 = vpop.xlane.xlu0 %2126  ;;  %4455 = vrcp.f32 %v2371_v42  ;;  %3020 = vmatmul.bf16.vlgmr.msrb.gmra.mxu1 %v2964_v36  ;;  %v6488_v50 = vpop.eup %4453  ;;  %v2555_v35 = vmul.f32 %v4452_v53, %v6250_v58 }
 0x4bc   : > { %v2208_v4 = vsub.f32 %v6270_v23, %v2127_v60  ;;  %v2659_v21 = vpack.c.bf16 %v2595_v41, %v2595_v41  ;;  %4457 = vrcp.f32 %v2455_v28 }
 0x4bd   : > { %4459 = vrcp.f32 %v2425_v19  ;;  %v2619_v7 = vpack.c.bf16 %v2555_v35, %v2555_v35 }
 0x4be   : > { %v2318_v59 = vmul.f32 1.442695, %v2208_v4  ;;  %v3078_v5 = vunpack.c.l.b16 %v2659_v21 }
 0x4bf   : > { %v2699_v3 = vunpack.c.l.b16 %v2619_v7 }
 0x4c0   : > { %4461 = vpow2.f32 %v2318_v59  ;;  %2414 = vadd.xlane.f32.xlu0 %v6488_v50  ;;  %v3093_v30 = vpack.c.b16 %v3078_v5, %v3077_v20 }
 0x4c1   : > { %4463 = vpow2.f32 %v2320_v1  ;;  %v4456_v45 = vpop.eup %4455  ;;  %v2459_v44 = vpop.xlane.xlu2 %2458 }
 0x4c2   : > { %v2457_v13 = vpop.xlane.xlu1 %2456  ;;  %3149 = vmatmul.bf16.vlgmr.msrb.gmra.mxu2 %v3093_v30  ;;  %v2554_v28 = vmul.f32 %v4456_v45, %v6262_v24  ;;  %v4458_v27 = vpop.eup %4457 }
 0x4c3   : > { %v2423_v23 = vpop.xlane.xlu0 %2422  ;;  %4465 = vrcp.f32 %v2457_v13  ;;  %v4460_v14 = vpop.eup %4459  ;;  %v2596_v41 = vmul.f32 %v4458_v27, %v6248_v52 }
 0x4c4   : > { %4467 = vrcp.f32 %v2423_v23  ;;  %v2618_v36 = vpack.c.bf16 %v2554_v28, %v2554_v28  ;;  %v2581_v24 = vmul.f32 %v4460_v14, %v6265_v43 }
 0x4c5   : > { %4469 = vrcp.f32 %v6457_v8  ;;  %v2660_v8 = vpack.c.bf16 %v2596_v41, %v2596_v41 }
 0x4c6   : > { %v6493_v19 = vpop.eup %4461  ;;  %v2698_v42 = vunpack.c.l.b16 %v2618_v36  ;;  %v2645_v35 = vpack.c.bf16 %v2581_v24, %v2581_v24 }
 0x4c7   : > { %v6495_v58 = vpop.eup %4463  ;;  %2446 = vadd.xlane.f32.xlu1 %v6493_v19  ;;  %v3079_v43 = vunpack.c.l.b16 %v2660_v8 }
 0x4c8   : > { %2448 = vadd.xlane.f32.xlu0 %v6495_v58  ;;  %v2710_v60 = vpack.c.b16 %v2699_v3, %v2698_v42  ;;  %v2951_v28 = vunpack.c.l.b16 %v2645_v35 }
 0x4c9   : > { %v4466_v53 = vpop.eup %4465  ;;  %v2429_v4 = vpop.xlane.xlu2 %2428 }
 0x4ca   : > { %v2395_v1 = vpop.xlane.xlu1 %2394  ;;  %v4468_v21 = vpop.eup %4467  ;;  %2782 = vmatmul.bf16.gmra.mxu3 %v2710_v60  ;;  %v2597_v20 = vmul.f32 %v4466_v53, %v6281_v40 }
 0x4cb   : > { %v2393_v59 = vpop.xlane.xlu0 %2392  ;;  %v2580_v5 = vmul.f32 %v4468_v21, %v6285_v29  ;;  %v4470_v30 = vpop.eup %4469 }
 0x4cc   : > { %4471 = vrcp.f32 %v2393_v59  ;;  %v2661_v52 = vpack.c.bf16 %v2597_v20, %v2597_v20  ;;  %v2564_v7 = vmul.f32 %v4470_v30, %v6231_v51 }
 0x4cd   : > { %4473 = vrcp.f32 %v2459_v44  ;;  %v2644_v45 = vpack.c.bf16 %v2580_v5, %v2580_v5 }
 0x4ce   : > { %4475 = vrcp.f32 %v2429_v4  ;;  %v3080_v13 = vunpack.c.l.b16 %v2661_v52  ;;  %v2628_v41 = vpack.c.bf16 %v2564_v7, %v2564_v7 }
 0x4cf   : > { %v2950_v23 = vunpack.c.l.b16 %v2644_v45 }
 0x4d0   : > { %v3094_v27 = vpack.c.b16 %v3080_v13, %v3079_v43  ;;  %v2821_v51 = vunpack.c.l.b16 %v2628_v41 }
 0x4d1   : > { %v2431_v14 = vpop.xlane.xlu2 %2430  ;;  %v2965_v40 = vpack.c.b16 %v2951_v28, %v2950_v23 }
 0x4d2   : > { %v2461_v36 = vpop.xlane.xlu1 %2460  ;;  %v4472_v42 = vpop.eup %4471  ;;  %3154 = vmatmul.bf16.gmra.mxu2 %v3094_v27 }
 0x4d3   : > { %v2427_v29 = vpop.xlane.xlu0 %2426  ;;  %v4474_v3 = vpop.eup %4473  ;;  %4477 = vrcp.f32 %v2461_v36  ;;  %3025 = vmatmul.bf16.gmra.mxu1 %v2965_v40  ;;  %v2565_v44 = vmul.f32 %v4472_v42, %v6300_v61 }
 0x4d4   : > { %v4476_v24 = vpop.eup %4475  ;;  %4479 = vrcp.f32 %v2427_v29  ;;  %v2598_v53 = vmul.f32 %v4474_v3, %v6283_v63 }
 0x4d5   : > { %v2629_v60 = vpack.c.bf16 %v2565_v44, %v2565_v44  ;;  %4481 = vrcp.f32 %v2395_v1  ;;  %v2583_v21 = vmul.f32 %v4476_v24, %v6298_v26 }
 0x4d6   : > { %v2662_v61 = vpack.c.bf16 %v2598_v53, %v2598_v53 }
 0x4d7   : > { %v2822_v4 = vunpack.c.l.b16 %v2629_v60  ;;  %v2647_v43 = vpack.c.bf16 %v2583_v21, %v2583_v21 }
 0x4d8   : > { %v3081_v23 = vunpack.c.l.b16 %v2662_v61 }
 0x4d9   : > { %v4478_v59 = vpop.eup %4477  ;;  %v2401_v20 = vpop.xlane.xlu2 %2400  ;;  %v2836_v5 = vpack.c.b16 %v2822_v4, %v2821_v51  ;;  %v2953_v7 = vunpack.c.l.b16 %v2647_v43 }
 0x4da   : > { %v2463_v8 = vpop.xlane.xlu1 %2462  ;;  %v4480_v35 = vpop.eup %4479  ;;  %v2599_v52 = vmul.f32 %v4478_v59, %v6311_v15 }
 0x4db   : > { %v2397_v30 = vpop.xlane.xlu0 %2396  ;;  %2896 = vmatmul.bf16.gmra.mxu0 %v2836_v5  ;;  %v2582_v45 = vmul.f32 %v4480_v35, %v6313_v12  ;;  %v4482_v1 = vpop.eup %4481 }
 0x4dc   : > { %4483 = vrcp.f32 %v2397_v30  ;;  %v2663_v63 = vpack.c.bf16 %v2599_v52, %v2599_v52  ;;  %v2566_v27 = vmul.f32 %v4482_v1, %v6294_v49 }
 0x4dd   : > { %4485 = vrcp.f32 %v2431_v14  ;;  %v2646_v13 = vpack.c.bf16 %v2582_v45, %v2582_v45 }
 0x4de   : > { %v3082_v26 = vunpack.c.l.b16 %v2663_v63  ;;  %v2630_v14 = vpack.c.bf16 %v2566_v27, %v2566_v27 }
 0x4df   : > { %v2952_v28 = vunpack.c.l.b16 %v2646_v13 }
 0x4e0   : > { %v3095_v36 = vpack.c.b16 %v3082_v26, %v3081_v23  ;;  %v2823_v49 = vunpack.c.l.b16 %v2630_v14 }
 0x4e1   : > { %v2377_v40 = vpop.xlane.xlu2 %2376  ;;  %v2966_v15 = vpack.c.b16 %v2953_v7, %v2952_v28 }
 0x4e2   : > { %v2433_v42 = vpop.xlane.xlu1 %2432  ;;  %v4484_v29 = vpop.eup %4483  ;;  %3159 = vmatmul.bf16.gmra.mxu2 %v3095_v36  ;;  %v4158_v36 = vld [vmem:[%s6682_s5 + $0xc] sm:$0xf] }
 0x4e3   : > { %v2399_v3 = vpop.xlane.xlu0 %2398  ;;  %v4486_v12 = vpop.eup %4485  ;;  %4487 = vrcp.f32 %v2433_v42  ;;  %3030 = vmatmul.bf16.gmra.mxu1 %v2966_v15  ;;  %v2567_v44 = vmul.f32 %v4484_v29, %v6331_v10  ;;  %v4149_v42 = vld [vmem:[%s6682_s5 + $0x8] sm:$0xf] }
 0x4e4   : > { %4489 = vrcp.f32 %v2399_v3  ;;  %v2584_v24 = vmul.f32 %v4486_v12, %v6309_v16  ;;  %v3557_v12 = vsel %vm3321_vm4, %v4149_v42, 0 }
 0x4e5   : > { %4491 = vrcp.f32 %v2401_v20  ;;  %v2631_v41 = vpack.c.bf16 %v2567_v44, %v2567_v44  ;;  %3566 = vmatpush.bf16.msra.mxu1 %v3557_v12 }
 0x4e6   : > { %4493 = vrcp.f32 %v2463_v8  ;;  %v2648_v30 = vpack.c.bf16 %v2584_v24, %v2584_v24 }
 0x4e7   : > { %v2824_v60 = vunpack.c.l.b16 %v2631_v41 }
 0x4e8   : > { %v2954_v16 = vunpack.c.l.b16 %v2648_v30 }
 0x4e9   : > { %v4488_v53 = vpop.eup %4487  ;;  %v2403_v51 = vpop.xlane.xlu2 %2402  ;;  %v2837_v21 = vpack.c.b16 %v2824_v60, %v2823_v49 }
 0x4ea   : > { %v6513_v4 = vpop.xlane.xlu1 %2434  ;;  %v4490_v59 = vpop.eup %4489  ;;  %v2585_v35 = vmul.f32 %v4488_v53, %v6341_v33  ;;  %v4132_v33 = vld [vmem:[%s6682_s5 + $0x4] sm:$0xf] }
 0x4eb   : > { %v2465_v5 = vpop.xlane.xlu0 %2464  ;;  %v4492_v10 = vpop.eup %4491  ;;  %2901 = vmatmul.bf16.gmra.mxu0 %v2837_v21  ;;  %v2568_v8 = vmul.f32 %v4490_v59, %v6343_v22  ;;  %v3323_v22 = vsel %vm3321_vm4, %v4132_v33, 0 }
 0x4ec   : > { %v4494_v52 = vpop.eup %4493  ;;  %4495 = vrcp.f32 %v2465_v5  ;;  %v2649_v20 = vpack.c.bf16 %v2585_v35, %v2585_v35  ;;  %v2569_v45 = vmul.f32 %v4492_v10, %v6327_v18  ;;  %3332 = vmatpush.bf16.msrb.mxu3 %v3323_v22 }
 0x4ed   : > { %4497 = vrcp.f32 %v2377_v40  ;;  %v2600_v43 = vmul.f32 %v4494_v52, %v6329_v56  ;;  %v2632_v23 = vpack.c.bf16 %v2568_v8, %v2568_v8  ;;  %v3254_v40 = vld [vmem:[%s6682_s5] sm:$0xf] }
 0x4ee   : > { %v2955_v61 = vunpack.c.l.b16 %v2649_v20  ;;  %4499 = vrcp.f32 %v2403_v51  ;;  %v2633_v7 = vpack.c.bf16 %v2569_v45, %v2569_v45  ;;  %v3439_v3 = vsel %vm3321_vm4, %v3254_v40, 0 }
 0x4ef   : > { %v2664_v56 = vpack.c.bf16 %v2600_v43, %v2600_v43  ;;  %v2825_v15 = vunpack.c.l.b16 %v2632_v23  ;;  %3448 = vmatpush.bf16.msrb.mxu0 %v3439_v3 }
 0x4f0   : > { %v2967_v1 = vpack.c.b16 %v2955_v61, %v2954_v16  ;;  %v2826_v44 = vunpack.c.l.b16 %v2633_v7 }
 0x4f1   : > { %v2469_v63 = vpop.xlane.xlu2 %2468  ;;  %v3083_v14 = vunpack.c.l.b16 %v2664_v56 }
 0x4f2   : > { %v2405_v13 = vpop.xlane.xlu1 %2404  ;;  %v4496_v26 = vpop.eup %4495  ;;  %v2838_v21 = vpack.c.b16 %v2826_v44, %v2825_v15 }
 0x4f3   : > { %v2375_v28 = vpop.xlane.xlu0 %2374  ;;  %4501 = vrcp.f32 %v2405_v13  ;;  %3035 = vmatmul.bf16.gmra.mxu1 %v2967_v1  ;;  %v2601_v18 = vmul.f32 %v4496_v26, %v6359_v9  ;;  %v4498_v27 = vpop.eup %4497  ;;  %v3691_v9 = vsel %vm3321_vm4, %v4158_v36, 0 }
 0x4f4   : > { %4503 = vrcp.f32 %v2375_v28  ;;  %3700 = vmatpush.bf16.msra.mxu2 %v3691_v9  ;;  %v2557_v24 = vmul.f32 %v4498_v27, %v6339_v37  ;;  %v4500_v49 = vpop.eup %4499 }
 0x4f5   : > { %v2665_v29 = vpack.c.bf16 %v2601_v18, %v2601_v18  ;;  %4505 = vrcp.f32 %v2469_v63  ;;  %v2570_v61 = vmul.f32 %v4500_v49, %v6354_v47 }
 0x4f6   : > { %v2621_v10 = vpack.c.bf16 %v2557_v24, %v2557_v24 }
 0x4f7   : > { %v3084_v41 = vunpack.c.l.b16 %v2665_v29  ;;  %v2634_v33 = vpack.c.bf16 %v2570_v61, %v2570_v61  ;;  %v6911_v61 = vld [vmem:[#allocation28_spill] sm:$0xff] }
 0x4f8   : > { %v2701_v16 = vunpack.c.l.b16 %v2621_v10 }
 0x4f9   : > { %v4502_v60 = vpop.eup %4501  ;;  %v2439_v53 = vpop.xlane.xlu2 %2438  ;;  %v3096_v59 = vpack.c.b16 %v3084_v41, %v3083_v14  ;;  %v2827_v47 = vunpack.c.l.b16 %v2634_v33 }
 0x4fa   : > { %v2407_v51 = vpop.xlane.xlu1 %2406  ;;  %v4504_v5 = vpop.eup %4503  ;;  %v2571_v8 = vmul.f32 %v4502_v60, %v6371_v17 }
 0x4fb   : > { %v2467_v35 = vpop.xlane.xlu0 %2466  ;;  %2906 = vmatmul.bf16.gmra.mxu0 %v2838_v21  ;;  %3164 = vmatmul.bf16.gmra.mxu2 %v3096_v59  ;;  %v2556_v30 = vmul.f32 %v4504_v5, %v6375_v57  ;;  %v4506_v52 = vpop.eup %4505 }
 0x4fc   : > { %4507 = vrcp.f32 %v2467_v35  ;;  %v2603_v45 = vmul.f32 %v4506_v52, %v6369_v48  ;;  %v2635_v13 = vpack.c.bf16 %v2571_v8, %v2571_v8 }
 0x4fd   : > { %v2620_v20 = vpack.c.bf16 %v2556_v30, %v2556_v30  ;;  %4509 = vrcp.f32 %v6513_v4 }
 0x4fe   : > { %v2667_v26 = vpack.c.bf16 %v2603_v45, %v2603_v45  ;;  %v2828_v28 = vunpack.c.l.b16 %v2635_v13 }
 0x4ff   : > { %v2700_v37 = vunpack.c.l.b16 %v2620_v20 }
 0x500   : > { %v3086_v7 = vunpack.c.l.b16 %v2667_v26  ;;  %v2839_v42 = vpack.c.b16 %v2828_v28, %v2827_v47 }
 0x501   : > { %v2471_v43 = vpop.xlane.xlu2 %2470  ;;  %v2711_v63 = vpack.c.b16 %v2701_v16, %v2700_v37 }
 0x502   : > { %v2473_v1 = vpop.xlane.xlu1 %2472  ;;  %v4508_v23 = vpop.eup %4507  ;;  %4511 = vrcp.f32 %v2471_v43 }
 0x503   : > { %v2437_v57 = vpop.xlane.xlu0 %2436  ;;  %4513 = vrcp.f32 %v2473_v1  ;;  %2787 = vmatmul.bf16.gmra.mxu3 %v2711_v63  ;;  %v2602_v17 = vmul.f32 %v4508_v23, %v6388_v34  ;;  %v4510_v4 = vpop.eup %4509 }
 0x504   : > { %4515 = vrcp.f32 %v2437_v57  ;;  %v2586_v18 = vmul.f32 %v4510_v4, %v6356_v11 }
 0x505   : > { %v2666_v22 = vpack.c.bf16 %v2602_v17, %v2602_v17  ;;  %4517 = vrcp.f32 %v2407_v51 }
 0x506   : > { %v2650_v3 = vpack.c.bf16 %v2586_v18, %v2586_v18 }
 0x507   : > { %v3085_v48 = vunpack.c.l.b16 %v2666_v22 }
 0x508   : > { %v4512_v56 = vpop.eup %4511  ;;  %v2956_v41 = vunpack.c.l.b16 %v2650_v3 }
 0x509   : > { %v4514_v27 = vpop.eup %4513  ;;  %v2411_v36 = vpop.xlane.xlu2 %2410  ;;  %v3097_v15 = vpack.c.b16 %v3086_v7, %v3085_v48  ;;  %v2604_v14 = vmul.f32 %v4512_v56, %v6399_v6  ;;  %v6912_v56 = vld [vmem:[#allocation34_spill] sm:$0xff] }
 0x50a   : > { %v2441_v40 = vpop.xlane.xlu1 %2440  ;;  %v4516_v29 = vpop.eup %4515  ;;  %v2605_v11 = vmul.f32 %v4514_v27, %v6401_v54 }
 0x50b   : > { %v2409_v9 = vpop.xlane.xlu0 %2408  ;;  %4519 = vrcp.f32 %v2441_v40  ;;  %2911 = vmatmul.bf16.gmra.mxu0 %v2839_v42  ;;  %3169 = vmatmul.bf16.gmra.mxu2 %v3097_v15  ;;  %v2587_v34 = vmul.f32 %v4516_v29, %v6403_v55  ;;  %v4518_v12 = vpop.eup %4517  ;;  %v2668_v5 = vpack.c.bf16 %v2604_v14, %v2604_v14 }
 0x50c   : > { %4521 = vrcp.f32 %v2409_v9  ;;  %v2572_v49 = vmul.f32 %v4518_v12, %v6386_v39  ;;  %v2669_v35 = vpack.c.bf16 %v2605_v11, %v2605_v11  ;;  %v6910_v39 = vld [vmem:[#allocation29_spill] sm:$0xff]  ;;  %v6913_v12 = vld [vmem:[#allocation23_spill] sm:$0xff] }
 0x50d   : > { %v2651_v44 = vpack.c.bf16 %v2587_v34, %v2587_v34  ;;  %4523 = vrcp.f32 %v2439_v53  ;;  %v3087_v52 = vunpack.c.l.b16 %v2668_v5  ;;  %v6914_v5 = vld [vmem:[#allocation12_spill] sm:$0xff] }
 0x50e   : > { %4525 = vrcp.f32 %v2411_v36  ;;  %v2636_v10 = vpack.c.bf16 %v2572_v49, %v2572_v49  ;;  %v3088_v20 = vunpack.c.l.b16 %v2669_v35 }
 0x50f   : > { %v2957_v24 = vunpack.c.l.b16 %v2651_v44 }
 0x510   : > { %v2829_v37 = vunpack.c.l.b16 %v2636_v10  ;;  %v3098_v57 = vpack.c.b16 %v3088_v20, %v3087_v52  ;;  %v6915_v52 = vld [vmem:[#allocation38_spill] sm:$0xff] }
 0x511   : > { %v4520_v60 = vpop.eup %4519  ;;  %v2968_v59 = vpack.c.b16 %v2957_v24, %v2956_v41 }
 0x512   : > { %v2477_v51 = vpop.xlane.xlu2 %2476  ;;  %v2379_v21 = vpop.xlane.xlu1 %2378  ;;  %v2589_v8 = vmul.f32 %v4520_v60, %v6910_v39 }
 0x513   : > { %v4522_v55 = vpop.eup %4521  ;;  %v2381_v30 = vpop.xlane.xlu0 %2380  ;;  %4527 = vrcp.f32 %v2379_v21  ;;  %3040 = vmatmul.bf16.gmra.mxu1 %v2968_v59 }
 0x514   : > { %v2573_v6 = vmul.f32 %v4522_v55, %v6419_v62  ;;  %v4524_v54 = vpop.eup %4523  ;;  %4529 = vrcp.f32 %v2381_v30  ;;  %v2653_v62 = vpack.c.bf16 %v2589_v8, %v2589_v8 }
 0x515   : > { %4531 = vrcp.f32 %v2477_v51  ;;  %v2588_v45 = vmul.f32 %v4524_v54, %v6911_v61  ;;  %v4526_v43 = vpop.eup %4525  ;;  %v6916_v61 = vld [vmem:[#allocation30_spill] sm:$0xff] }
 0x516   : > { %v2637_v53 = vpack.c.bf16 %v2573_v6, %v2573_v6  ;;  %v2959_v7 = vunpack.c.l.b16 %v2653_v62  ;;  %v2574_v27 = vmul.f32 %v4526_v43, %v6912_v56 }
 0x517   : > { %v2652_v28 = vpack.c.bf16 %v2588_v45, %v2588_v45 }
 0x518   : > { %v2830_v16 = vunpack.c.l.b16 %v2637_v53  ;;  %v2638_v14 = vpack.c.bf16 %v2574_v27, %v2574_v27 }
 0x519   : > { %v4528_v1 = vpop.eup %4527  ;;  %v2958_v40 = vunpack.c.l.b16 %v2652_v28 }
 0x51a   : > { %v2445_v63 = vpop.xlane.xlu2 %2444  ;;  %v2413_v13 = vpop.xlane.xlu1 %2412  ;;  %v2840_v23 = vpack.c.b16 %v2830_v16, %v2829_v37  ;;  %v2558_v26 = vmul.f32 %v4528_v1, %v6428_v31  ;;  %v2831_v60 = vunpack.c.l.b16 %v2638_v14 }
 0x51b   : > { %v4530_v33 = vpop.eup %4529  ;;  %v2475_v17 = vpop.xlane.xlu0 %2474  ;;  %4533 = vrcp.f32 %v2413_v13  ;;  %3174 = vmatmul.bf16.gmra.mxu2 %v3098_v57  ;;  %v2969_v34 = vpack.c.b16 %v2959_v7, %v2958_v40 }
 0x51c   : > { %2916 = vmatmul.bf16.gmra.mxu0 %v2840_v23  ;;  %v2559_v4 = vmul.f32 %v4530_v33, %v6434_v0  ;;  %v4532_v22 = vpop.eup %4531  ;;  %4535 = vrcp.f32 %v2475_v17  ;;  %v2622_v47 = vpack.c.bf16 %v2558_v26, %v2558_v26  ;;  %v6559_v37 = vpop.f32.mrf.mxu3 }
 0x51d   : > { %4537 = vrcp.f32 %v2445_v63  ;;  %v2607_v42 = vmul.f32 %v4532_v22, %v6432_v38  ;;  %v6917_v63 = vld [vmem:[#allocation37_spill] sm:$0xff] }
 0x51e   : > { %v2623_v48 = vpack.c.bf16 %v2559_v4, %v2559_v4  ;;  %v2702_v18 = vunpack.c.l.b16 %v2622_v47 }
 0x51f   : > { %v2671_v41 = vpack.c.bf16 %v2607_v42, %v2607_v42 }
 0x520   : > { %v2703_v36 = vunpack.c.l.b16 %v2623_v48 }
 0x521   : > { %v4534_v31 = vpop.eup %4533  ;;  %v3090_v59 = vunpack.c.l.b16 %v2671_v41 }
 0x522   : > { %v2383_v15 = vpop.xlane.xlu2 %2382  ;;  %v2479_v29 = vpop.xlane.xlu1 %2478  ;;  %v2712_v9 = vpack.c.b16 %v2703_v36, %v2702_v18  ;;  %v2575_v44 = vmul.f32 %v4534_v31, %v6913_v12 }
 0x523   : > { %v4536_v0 = vpop.eup %4535  ;;  %v2443_v3 = vpop.xlane.xlu0 %2442  ;;  %3045 = vmatmul.bf16.gmra.mxu1 %v2969_v34 }
 0x524   : > { %2792 = vmatmul.bf16.gmra.mxu3 %v2712_v9  ;;  %v2606_v11 = vmul.f32 %v4536_v0, %v6447_v2  ;;  %v4538_v24 = vpop.eup %4537  ;;  %4539 = vrcp.f32 %v2443_v3  ;;  %v2639_v49 = vpack.c.bf16 %v2575_v44, %v2575_v44  ;;  %v2765_v27 = vpop.f32.mrf.mxu3 }
 0x525   : > { %4541 = vrcp.f32 %v2383_v15  ;;  %v2591_v35 = vmul.f32 %v4538_v24, %v6914_v5 }
 0x526   : > { %v2670_v38 = vpack.c.bf16 %v2606_v11, %v2606_v11  ;;  %4543 = vrcp.f32 %v2479_v29  ;;  %v2832_v51 = vunpack.c.l.b16 %v2639_v49 }
 0x527   : > { %v2655_v39 = vpack.c.bf16 %v2591_v35, %v2591_v35 }
 0x528   : > { %v3089_v21 = vunpack.c.l.b16 %v2670_v38  ;;  %v2841_v55 = vpack.c.b16 %v2832_v51, %v2831_v60 }
 0x529   : > { %v2961_v1 = vunpack.c.l.b16 %v2655_v39 }
 0x52a   : > { %v2385_v30 = vpop.xlane.xlu1 %2384  ;;  %v3099_v6 = vpack.c.b16 %v3090_v59, %v3089_v21  ;;  %v4540_v10 = vpop.eup %4539 }
 0x52b   : > { %v2417_v54 = vpop.xlane.xlu2 %2416  ;;  %v2481_v53 = vpop.xlane.xlu0 %2480  ;;  %4545 = vrcp.f32 %v2385_v30  ;;  %v2590_v20 = vmul.f32 %v4540_v10, %v6915_v52 }
 0x52c   : > { %v4542_v2 = vpop.eup %4541  ;;  %2921 = vmatmul.bf16.gmra.mxu0 %v2841_v55  ;;  %3179 = vmatmul.bf16.gmra.mxu2 %v3099_v6  ;;  %4547 = vrcp.f32 %v2481_v53  ;;  %v2768_v49 = vpop.f32.mrf.mxu3  ;;  %v3191_v6 = vpack.c.bf16 %v2765_v27, %v2765_v27 }
 0x52d   : > { %v4544_v8 = vpop.eup %4543  ;;  %4549 = vrcp.f32 %v2417_v54  ;;  %v2654_v16 = vpack.c.bf16 %v2590_v20, %v2590_v20  ;;  %v2560_v45 = vmul.f32 %v4542_v2, %v6916_v61  ;;  %v3190_v2 = vpack.c.bf16 %v6559_v37, %v6559_v37 }
 0x52e   : > { %v2608_v13 = vmul.f32 %v4544_v8, %v6917_v63 }
 0x52f   : > { %v2960_v43 = vunpack.c.l.b16 %v2654_v16  ;;  %v2624_v26 = vpack.c.bf16 %v2560_v45, %v2560_v45  ;;  %v3390_v39 = vunpack.c.l.b16 %v3190_v2 }
 0x530   : > { %v2672_v22 = vpack.c.bf16 %v2608_v13, %v2608_v13 }
 0x531   : > { %v4546_v23 = vpop.eup %4545  ;;  %v2970_v57 = vpack.c.b16 %v2961_v1, %v2960_v43  ;;  %v2704_v18 = vunpack.c.l.b16 %v2624_v26 }
 0x532   : > { %v4548_v62 = vpop.eup %4547  ;;  %v2561_v17 = vmul.f32 %v4546_v23, %v6474_v32  ;;  %v3091_v40 = vunpack.c.l.b16 %v2672_v22 }
 0x533   : > { %v2415_v33 = vpop.xlane.xlu0 %2414  ;;  %v4550_v4 = vpop.eup %4549  ;;  %3050 = vmatmul.bf16.gmra.mxu1 %v2970_v57  ;;  %v2609_v28 = vmul.f32 %v4548_v62, %v6478_v25 }
 0x534   : > { %4551 = vrcp.f32 %v2415_v33  ;;  %v2625_v47 = vpack.c.bf16 %v2561_v17, %v2561_v17  ;;  %v2577_v7 = vmul.f32 %v4550_v4, %v6476_v46 }
 0x535   : > { %v2673_v48 = vpack.c.bf16 %v2609_v28, %v2609_v28  ;;  %v3192_v28 = vpack.c.bf16 %v2768_v49, %v2768_v49 }
 0x536   : > { %v2705_v56 = vunpack.c.l.b16 %v2625_v47  ;;  %v2641_v34 = vpack.c.bf16 %v2577_v7, %v2577_v7 }
 0x537   : > { %v2892_v36 = vpop.f32.mrf.mxu0  ;;  %v3092_v42 = vunpack.c.l.b16 %v2673_v48  ;;  %v3392_v7 = vunpack.c.l.b16 %v3192_v28 }
 0x538   : > { %v2713_v31 = vpack.c.b16 %v2705_v56, %v2704_v18  ;;  %v3021_v46 = vpop.f32.mrf.mxu1  ;;  %v2834_v12 = vunpack.c.l.b16 %v2641_v34  ;;  %v3206_v60 = vpack.c.bf16 %v2892_v36, %v2892_v36 }
 0x539   : > { %v3100_v29 = vpack.c.b16 %v3092_v42, %v3091_v40  ;;  %v3222_v63 = vpack.c.bf16 %v3021_v46, %v3021_v46 }
 0x53a   : > { %v4552_v15 = vpop.eup %4551  ;;  %v2447_v32 = vpop.xlane.xlu1 %2446  ;;  %2797 = vmatmul.bf16.gmra.mxu3 %v2713_v31  ;;  %v3273_v55 = vunpack.c.l.b16 %v3206_v60 }
 0x53b   : > { %4553 = vrcp.f32 %v2447_v32  ;;  %v2449_v9 = vpop.xlane.xlu0 %2448  ;;  %v2576_v25 = vmul.f32 %v4552_v15, %v6488_v50  ;;  %v3508_v62 = vunpack.c.l.b16 %v3222_v63 }
 0x53c   : > { %3184 = vmatmul.bf16.gmra.mxu2 %v3100_v29  ;;  %4555 = vrcp.f32 %v2449_v9 }
 0x53d   : > { %v2640_v0 = vpack.c.bf16 %v2576_v25, %v2576_v25 }
 0x53f   : > { %v2833_v3 = vunpack.c.l.b16 %v2640_v0  ;;  %v2894_v44 = vpop.f32.mrf.mxu0 }
 0x540   : > { %v3207_v11 = vpack.c.bf16 %v2894_v44, %v2894_v44  ;;  %v3023_v54 = vpop.f32.mrf.mxu1 }
 0x541   : > { %v4554_v14 = vpop.eup %4553  ;;  %v2842_v41 = vpack.c.b16 %v2834_v12, %v2833_v3  ;;  %v3223_v61 = vpack.c.bf16 %v3023_v54, %v3023_v54 }
 0x542   : > { %v4556_v24 = vpop.eup %4555  ;;  %v2592_v38 = vmul.f32 %v4554_v14, %v6493_v19  ;;  %v3274_v21 = vunpack.c.l.b16 %v3207_v11  ;;  %v2770_v19 = vpop.f32.mrf.mxu3 }
 0x543   : > { %v2593_v51 = vmul.f32 %v4556_v24, %v6495_v58  ;;  %2926 = vmatmul.bf16.gmra.mxu0 %v2842_v41  ;;  %v3391_v58 = vunpack.c.l.b16 %v3191_v6  ;;  %v3509_v23 = vunpack.c.l.b16 %v3223_v61  ;;  %v3193_v33 = vpack.c.bf16 %v2770_v19, %v2770_v19 }
 0x544   : > { %v2656_v50 = vpack.c.bf16 %v2592_v38, %v2592_v38  ;;  %v3289_v10 = vpack.c.b16 %v3274_v21, %v3273_v55 }
 0x545   : > { %v2657_v59 = vpack.c.bf16 %v2593_v51, %v2593_v51  ;;  %v3150_v5 = vpop.f32.mrf.mxu2  ;;  %v3406_v16 = vpack.c.b16 %v3391_v58, %v3390_v39  ;;  %v3524_v17 = vpack.c.b16 %v3509_v23, %v3508_v62  ;;  %v3393_v22 = vunpack.c.l.b16 %v3193_v33 }
 0x546   : > { %v2962_v35 = vunpack.c.l.b16 %v2656_v50  ;;  %v3238_v52 = vpack.c.bf16 %v3150_v5, %v3150_v5 }
 0x547   : > { %v2963_v30 = vunpack.c.l.b16 %v2657_v59  ;;  %v3407_v36 = vpack.c.b16 %v3393_v22, %v3392_v7 }
 0x548   : > { %v3642_v45 = vunpack.c.l.b16 %v3238_v52 }
 0x549   : > { %v2971_v53 = vpack.c.b16 %v2963_v30, %v2962_v35 }
 0x54a   : > { %4133 = vmatmul.msk.bf16.vlgmr.msrb.gmra.mxu3 %vm1432_vm2, %v3289_v10  ;;  %v2773_v37 = vpop.f32.mrf.mxu3 }
 0x54b   : > { %3055 = vmatmul.bf16.gmra.mxu1 %v2971_v53  ;;  %v3194_v38 = vpack.c.bf16 %v2773_v37, %v2773_v37 }
 0x54d   : > { %v3152_v20 = vpop.f32.mrf.mxu2  ;;  %v3394_v21 = vunpack.c.l.b16 %v3194_v38 }
 0x54e   : > { %v3239_v8 = vpack.c.bf16 %v3152_v20, %v3152_v20 }
 0x550   : > { %v3643_v43 = vunpack.c.l.b16 %v3239_v8  ;;  %v3026_v1 = vpop.f32.mrf.mxu1 }
 0x551   : > { %v3224_v9 = vpack.c.bf16 %v3026_v1, %v3026_v1 }
 0x552   : > { %v3658_v13 = vpack.c.b16 %v3643_v43, %v3642_v45  ;;  %v2775_v56 = vpop.f32.mrf.mxu3 }
 0x553   : > { %4141 = vmatmul.msk.bf16.vlgmr.msrb.gmra.mxu0 %vm1432_vm2, %v3406_v16  ;;  %v3510_v44 = vunpack.c.l.b16 %v3224_v9  ;;  %v3195_v11 = vpack.c.bf16 %v2775_v56, %v2775_v56 }
 0x554   : > { %4159 = vmatmul.msk.bf16.vlgmr.msra.gmra.mxu2 %vm1432_vm2, %v3658_v13 }
 0x555   : > { %v3155_v57 = vpop.f32.mrf.mxu2  ;;  %v3395_v60 = vunpack.c.l.b16 %v3195_v11 }
 0x556   : > { %v3240_v47 = vpack.c.bf16 %v3155_v57, %v3155_v57 }
 0x557   : > { %v3408_v35 = vpack.c.b16 %v3395_v60, %v3394_v21 }
 0x558   : > { %v2897_v26 = vpop.f32.mrf.mxu0  ;;  %v3028_v4 = vpop.f32.mrf.mxu1  ;;  %v3644_v40 = vunpack.c.l.b16 %v3240_v47 }
 0x559   : > { %v3208_v27 = vpack.c.bf16 %v2897_v26, %v2897_v26  ;;  %v3225_v42 = vpack.c.bf16 %v3028_v4, %v3028_v4 }
 0x55a   : > { %v2778_v14 = vpop.f32.mrf.mxu3 }
 0x55b   : > { %4150 = vmatmul.msk.bf16.vlgmr.msra.gmra.mxu1 %vm1432_vm2, %v3524_v17  ;;  %v3275_v34 = vunpack.c.l.b16 %v3208_v27  ;;  %v3511_v46 = vunpack.c.l.b16 %v3225_v42  ;;  %v3196_v63 = vpack.c.bf16 %v2778_v14, %v2778_v14 }
 0x55d   : > { %v3157_v48 = vpop.f32.mrf.mxu2  ;;  %v3525_v41 = vpack.c.b16 %v3511_v46, %v3510_v44  ;;  %v3396_v37 = vunpack.c.l.b16 %v3196_v63 }
 0x55e   : > { %v3241_v18 = vpack.c.bf16 %v3157_v48, %v3157_v48 }
 0x560   : > { %v3645_v31 = vunpack.c.l.b16 %v3241_v18  ;;  %v2899_v15 = vpop.f32.mrf.mxu0  ;;  %v3031_v32 = vpop.f32.mrf.mxu1 }
 0x561   : > { %v3209_v29 = vpack.c.bf16 %v2899_v15, %v2899_v15  ;;  %v3226_v2 = vpack.c.bf16 %v3031_v32, %v3031_v32 }
 0x562   : > { %v3659_v25 = vpack.c.b16 %v3645_v31, %v3644_v40  ;;  %v2780_v54 = vpop.f32.mrf.mxu3 }
 0x563   : > { %4142 = vmatmul.msk.bf16.gmra.mxu0 %vm1432_vm2, %v3407_v36  ;;  %v3276_v0 = vunpack.c.l.b16 %v3209_v29  ;;  %v3512_v16 = vunpack.c.l.b16 %v3226_v2  ;;  %v3197_v61 = vpack.c.bf16 %v2780_v54, %v2780_v54 }
 0x564   : > { %4160 = vmatmul.msk.bf16.gmra.mxu2 %vm1432_vm2, %v3659_v25 }
 0x565   : > { %v3290_v3 = vpack.c.b16 %v3276_v0, %v3275_v34  ;;  %v3160_v12 = vpop.f32.mrf.mxu2  ;;  %v3397_v13 = vunpack.c.l.b16 %v3197_v61 }
 0x566   : > { %v3242_v51 = vpack.c.bf16 %v3160_v12, %v3160_v12 }
 0x567   : > { %4134 = vmatmul.msk.bf16.gmra.mxu3 %vm1432_vm2, %v3290_v3  ;;  %v3409_v33 = vpack.c.b16 %v3397_v13, %v3396_v37 }
 0x568   : > { %v2902_v24 = vpop.f32.mrf.mxu0  ;;  %v3033_v49 = vpop.f32.mrf.mxu1  ;;  %v3646_v55 = vunpack.c.l.b16 %v3242_v51 }
 0x569   : > { %v3210_v5 = vpack.c.bf16 %v2902_v24, %v2902_v24  ;;  %v3227_v30 = vpack.c.bf16 %v3033_v49, %v3033_v49 }
 0x56a   : > { %v2783_v1 = vpop.f32.mrf.mxu3 }
 0x56b   : > { %4151 = vmatmul.msk.bf16.gmra.mxu1 %vm1432_vm2, %v3525_v41  ;;  %v3277_v58 = vunpack.c.l.b16 %v3210_v5  ;;  %v3513_v39 = vunpack.c.l.b16 %v3227_v30  ;;  %v3198_v9 = vpack.c.bf16 %v2783_v1, %v2783_v1 }
 0x56d   : > { %v3162_v50 = vpop.f32.mrf.mxu2  ;;  %v3526_v45 = vpack.c.b16 %v3513_v39, %v3512_v16  ;;  %v3398_v46 = vunpack.c.l.b16 %v3198_v9 }
 0x56e   : > { %v3243_v59 = vpack.c.bf16 %v3162_v50, %v3162_v50 }
 0x570   : > { %v3647_v6 = vunpack.c.l.b16 %v3243_v59  ;;  %v2904_v10 = vpop.f32.mrf.mxu0  ;;  %v3036_v20 = vpop.f32.mrf.mxu1 }
 0x571   : > { %v3211_v53 = vpack.c.bf16 %v2904_v10, %v2904_v10  ;;  %v3228_v28 = vpack.c.bf16 %v3036_v20, %v3036_v20 }
 0x572   : > { %v3660_v19 = vpack.c.b16 %v3647_v6, %v3646_v55  ;;  %v2785_v22 = vpop.f32.mrf.mxu3 }
 0x573   : > { %4143 = vmatmul.msk.bf16.gmra.mxu0 %vm1432_vm2, %v3408_v35  ;;  %v3278_v52 = vunpack.c.l.b16 %v3211_v53  ;;  %v3514_v27 = vunpack.c.l.b16 %v3228_v28  ;;  %v3199_v42 = vpack.c.bf16 %v2785_v22, %v2785_v22 }
 0x574   : > { %4161 = vmatmul.msk.bf16.gmra.mxu2 %vm1432_vm2, %v3660_v19 }
 0x575   : > { %v3291_v8 = vpack.c.b16 %v3278_v52, %v3277_v58  ;;  %v3399_v0 = vunpack.c.l.b16 %v3199_v42 }
 0x577   : > { %4135 = vmatmul.msk.bf16.gmra.mxu3 %vm1432_vm2, %v3291_v8  ;;  %v3410_v44 = vpack.c.b16 %v3399_v0, %v3398_v46 }
 0x578   : > { %v2907_v43 = vpop.f32.mrf.mxu0  ;;  %v3038_v23 = vpop.f32.mrf.mxu1 }
 0x579   : > { %v3212_v62 = vpack.c.bf16 %v2907_v43, %v2907_v43  ;;  %v3229_v17 = vpack.c.bf16 %v3038_v23, %v3038_v23 }
 0x57b   : > { %4152 = vmatmul.msk.bf16.gmra.mxu1 %vm1432_vm2, %v3526_v45  ;;  %v3279_v47 = vunpack.c.l.b16 %v3212_v62  ;;  %v3515_v7 = vunpack.c.l.b16 %v3229_v17 }
 0x57d   : > { %v3527_v31 = vpack.c.b16 %v3515_v7, %v3514_v27 }
 0x57e   : > { %v3165_v57 = vpop.f32.mrf.mxu2 }
 0x57f   : > { %v3244_v18 = vpack.c.bf16 %v3165_v57, %v3165_v57 }
 0x580   : > { %v2909_v26 = vpop.f32.mrf.mxu0 }
 0x581   : > { %v3213_v4 = vpack.c.bf16 %v2909_v26, %v2909_v26  ;;  %v3648_v32 = vunpack.c.l.b16 %v3244_v18 }
 0x583   : > { %4144 = vmatmul.msk.bf16.gmra.mxu0 %vm1432_vm2, %v3409_v33  ;;  %v3280_v48 = vunpack.c.l.b16 %v3213_v4 }
 0x585   : > { %v3292_v56 = vpack.c.b16 %v3280_v48, %v3279_v47 }
 0x586   : > { %v3167_v36 = vpop.f32.mrf.mxu2  ;;  %v2788_v25 = vpop.f32.mrf.mxu3 }
 0x587   : > { %v3245_v40 = vpack.c.bf16 %v3167_v36, %v3167_v36  ;;  %4136 = vmatmul.msk.bf16.gmra.mxu3 %vm1432_vm2, %v3292_v56  ;;  %v3200_v54 = vpack.c.bf16 %v2788_v25, %v2788_v25 }
 0x588   : > { %v2912_v15 = vpop.f32.mrf.mxu0 }
 0x589   : > { %v3649_v29 = vunpack.c.l.b16 %v3245_v40  ;;  %v3214_v12 = vpack.c.bf16 %v2912_v15, %v2912_v15  ;;  %v3400_v20 = vunpack.c.l.b16 %v3200_v54 }
 0x58b   : > { %4153 = vmatmul.msk.bf16.gmra.mxu1 %vm1432_vm2, %v3527_v31  ;;  %v3661_v34 = vpack.c.b16 %v3649_v29, %v3648_v32  ;;  %v3281_v24 = vunpack.c.l.b16 %v3214_v12 }
 0x58d   : > { %4162 = vmatmul.msk.bf16.gmra.mxu2 %vm1432_vm2, %v3661_v34 }
 0x58e   : > { %v3170_v3 = vpop.f32.mrf.mxu2  ;;  %v2790_v38 = vpop.f32.mrf.mxu3 }
 0x58f   : > { %v3246_v60 = vpack.c.bf16 %v3170_v3, %v3170_v3  ;;  %v3201_v5 = vpack.c.bf16 %v2790_v38, %v2790_v38 }
 0x590   : > { %v2914_v14 = vpop.f32.mrf.mxu0  ;;  %v3041_v11 = vpop.f32.mrf.mxu1 }
 0x591   : > { %v3215_v41 = vpack.c.bf16 %v2914_v14, %v2914_v14  ;;  %v3230_v21 = vpack.c.bf16 %v3041_v11, %v3041_v11  ;;  %v3650_v30 = vunpack.c.l.b16 %v3246_v60  ;;  %v3401_v58 = vunpack.c.l.b16 %v3201_v5 }
 0x593   : > { %4145 = vmatmul.msk.bf16.gmra.mxu0 %vm1432_vm2, %v3410_v44  ;;  %v3282_v49 = vunpack.c.l.b16 %v3215_v41  ;;  %v3516_v53 = vunpack.c.l.b16 %v3230_v21  ;;  %v3411_v16 = vpack.c.b16 %v3401_v58, %v3400_v20 }
 0x595   : > { %v3293_v51 = vpack.c.b16 %v3282_v49, %v3281_v24 }
 0x596   : > { %v3172_v50 = vpop.f32.mrf.mxu2 }
 0x597   : > { %v3247_v59 = vpack.c.bf16 %v3172_v50, %v3172_v50  ;;  %4137 = vmatmul.msk.bf16.gmra.mxu3 %vm1432_vm2, %v3293_v51 }
 0x598   : > { %v3043_v55 = vpop.f32.mrf.mxu1 }
 0x599   : > { %v2917_v35 = vpop.f32.mrf.mxu0  ;;  %v3651_v6 = vunpack.c.l.b16 %v3247_v59  ;;  %v3231_v10 = vpack.c.bf16 %v3043_v55, %v3043_v55 }
 0x59a   : > { %v3216_v8 = vpack.c.bf16 %v2917_v35, %v2917_v35 }
 0x59b   : > { %v3662_v2 = vpack.c.b16 %v3651_v6, %v3650_v30  ;;  %v3517_v19 = vunpack.c.l.b16 %v3231_v10 }
 0x59c   : > { %v3283_v1 = vunpack.c.l.b16 %v3216_v8 }
 0x59d   : > { %v3528_v52 = vpack.c.b16 %v3517_v19, %v3516_v53  ;;  %4163 = vmatmul.msk.bf16.gmra.mxu2 %vm1432_vm2, %v3662_v2 }
 0x59e   : > { %v3175_v39 = vpop.f32.mrf.mxu2 }
 0x59f   : > { %4154 = vmatmul.msk.bf16.gmra.mxu1 %vm1432_vm2, %v3528_v52  ;;  %v3248_v13 = vpack.c.bf16 %v3175_v39, %v3175_v39 }
 0x5a0   : > { %v3046_v45 = vpop.f32.mrf.mxu1 }
 0x5a1   : > { %v2919_v61 = vpop.f32.mrf.mxu0  ;;  %v3232_v62 = vpack.c.bf16 %v3046_v45, %v3046_v45  ;;  %v3652_v4 = vunpack.c.l.b16 %v3248_v13 }
 0x5a2   : > { %v3217_v43 = vpack.c.bf16 %v2919_v61, %v2919_v61 }
 0x5a3   : > { %4146 = vmatmul.msk.bf16.gmra.mxu0 %vm1432_vm2, %v3411_v16  ;;  %v3518_v47 = vunpack.c.l.b16 %v3232_v62 }
 0x5a4   : > { %v3284_v63 = vunpack.c.l.b16 %v3217_v43 }
 0x5a6   : > { %v3294_v23 = vpack.c.b16 %v3284_v63, %v3283_v1  ;;  %v3177_v57 = vpop.f32.mrf.mxu2 }
 0x5a7   : > { %v2793_v37 = vpop.f32.mrf.mxu3  ;;  %v3249_v33 = vpack.c.bf16 %v3177_v57, %v3177_v57 }
 0x5a8   : > { %4138 = vmatmul.msk.bf16.gmra.mxu3 %vm1432_vm2, %v3294_v23  ;;  %v3048_v26 = vpop.f32.mrf.mxu1  ;;  %v3202_v18 = vpack.c.bf16 %v2793_v37, %v2793_v37 }
 0x5a9   : > { %v2922_v17 = vpop.f32.mrf.mxu0  ;;  %v3653_v28 = vunpack.c.l.b16 %v3249_v33  ;;  %v3233_v22 = vpack.c.bf16 %v3048_v26, %v3048_v26 }
 0x5aa   : > { %v3218_v40 = vpack.c.bf16 %v2922_v17, %v2922_v17  ;;  %v3402_v32 = vunpack.c.l.b16 %v3202_v18 }
 0x5ab   : > { %v3663_v48 = vpack.c.b16 %v3653_v28, %v3652_v4  ;;  %v3519_v7 = vunpack.c.l.b16 %v3233_v22 }
 0x5ac   : > { %v3285_v25 = vunpack.c.l.b16 %v3218_v40 }
 0x5ad   : > { %v3529_v56 = vpack.c.b16 %v3519_v7, %v3518_v47  ;;  %4164 = vmatmul.msk.bf16.gmra.mxu2 %vm1432_vm2, %v3663_v48  ;;  %v6607_v48 = vld [vmem:[%s6683_s6] ss:$0 sm:$0xff] }
 0x5af   : > { %v2795_v27 = vpop.f32.mrf.mxu3  ;;  %v3180_v36 = vpop.f32.mrf.mxu2  ;;  %4155 = vmatmul.msk.bf16.gmra.mxu1 %vm1432_vm2, %v3529_v56 }
 0x5b0   : > { %v3203_v42 = vpack.c.bf16 %v2795_v27, %v2795_v27  ;;  %v3051_v15 = vpop.f32.mrf.mxu1  ;;  %v3250_v46 = vpack.c.bf16 %v3180_v36, %v3180_v36 }
 0x5b1   : > { %v2924_v31 = vpop.f32.mrf.mxu0  ;;  %v3234_v44 = vpack.c.bf16 %v3051_v15, %v3051_v15 }
 0x5b2   : > { %v3403_v29 = vunpack.c.l.b16 %v3203_v42  ;;  %v3219_v9 = vpack.c.bf16 %v2924_v31, %v2924_v31  ;;  %v3654_v41 = vunpack.c.l.b16 %v3250_v46 }
 0x5b3   : > { %v3520_v38 = vunpack.c.l.b16 %v3234_v44 }
 0x5b4   : > { %v3412_v34 = vpack.c.b16 %v3403_v29, %v3402_v32  ;;  %v3286_v0 = vunpack.c.l.b16 %v3219_v9 }
 0x5b6   : > { %v3295_v3 = vpack.c.b16 %v3286_v0, %v3285_v25  ;;  %4147 = vmatmul.msk.bf16.gmra.mxu0 %vm1432_vm2, %v3412_v34 }
 0x5b7   : > { %v3182_v12 = vpop.f32.mrf.mxu2 }
 0x5b8   : > { %v3251_v14 = vpack.c.bf16 %v3182_v12, %v3182_v12  ;;  %4139 = vmatmul.msk.bf16.gmra.mxu3 %vm1432_vm2, %v3295_v3  ;;  %v3053_v11 = vpop.f32.mrf.mxu1 }
 0x5b9   : > { %v3235_v49 = vpack.c.bf16 %v3053_v11, %v3053_v11 }
 0x5ba   : > { %v3655_v24 = vunpack.c.l.b16 %v3251_v14 }
 0x5bb   : > { %v3521_v51 = vunpack.c.l.b16 %v3235_v49 }
 0x5bc   : > { %v3664_v60 = vpack.c.b16 %v3655_v24, %v3654_v41 }
 0x5bd   : > { %v3530_v50 = vpack.c.b16 %v3521_v51, %v3520_v38  ;;  %v2798_v21 = vpop.f32.mrf.mxu3 }
 0x5be   : > { %4165 = vmatmul.msk.bf16.gmra.mxu2 %vm1432_vm2, %v3664_v60  ;;  %v3204_v35 = vpack.c.bf16 %v2798_v21, %v2798_v21 }
 0x5bf   : > { %v3185_v59 = vpop.f32.mrf.mxu2  ;;  %4156 = vmatmul.msk.bf16.gmra.mxu1 %vm1432_vm2, %v3530_v50 }
 0x5c0   : > { %v2927_v5 = vpop.f32.mrf.mxu0  ;;  %v3252_v55 = vpack.c.bf16 %v3185_v59, %v3185_v59  ;;  %v3404_v58 = vunpack.c.l.b16 %v3204_v35 }
 0x5c1   : > { %v3220_v6 = vpack.c.bf16 %v2927_v5, %v2927_v5 }
 0x5c2   : > { %v3656_v39 = vunpack.c.l.b16 %v3252_v55 }
 0x5c3   : > { %v3287_v16 = vunpack.c.l.b16 %v3220_v6 }
 0x5c5   : > { %v2800_v30 = vpop.f32.mrf.mxu3 }
 0x5c6   : > { %v3205_v10 = vpack.c.bf16 %v2800_v30, %v2800_v30 }
 0x5c7   : > { %v3187_v54 = vpop.f32.mrf.mxu2 }
 0x5c8   : > { %v3253_v53 = vpack.c.bf16 %v3187_v54, %v3187_v54  ;;  %v2929_v2 = vpop.f32.mrf.mxu0  ;;  %v3056_v19 = vpop.f32.mrf.mxu1  ;;  %v3405_v52 = vunpack.c.l.b16 %v3205_v10 }
 0x5c9   : > { %v3221_v20 = vpack.c.bf16 %v2929_v2, %v2929_v2  ;;  %v3236_v63 = vpack.c.bf16 %v3056_v19, %v3056_v19 }
 0x5ca   : > { %v3657_v8 = vunpack.c.l.b16 %v3253_v53  ;;  %v3413_v61 = vpack.c.b16 %v3405_v52, %v3404_v58 }
 0x5cb   : > { %v3288_v45 = vunpack.c.l.b16 %v3221_v20  ;;  %v3522_v57 = vunpack.c.l.b16 %v3236_v63 }
 0x5cc   : > { %v3665_v43 = vpack.c.b16 %v3657_v8, %v3656_v39  ;;  %4148 = vmatmul.msk.bf16.gmra.mxu0 %vm1432_vm2, %v3413_v61 }
 0x5cd   : > { %v3296_v1 = vpack.c.b16 %v3288_v45, %v3287_v16  ;;  %v3334_v33 = vpop.f32.mrf.mxu3 }
 0x5ce   : > { %4166 = vmatmul.msk.bf16.gmra.mxu2 %vm1432_vm2, %v3665_v43 }
 0x5cf   : > { %4140 = vmatmul.msk.bf16.gmra.mxu3 %vm1432_vm2, %v3296_v1 }
 0x5d0   : > { %v3058_v13 = vpop.f32.mrf.mxu1  ;;  %v3450_v23 = vpop.f32.mrf.mxu0 }
 0x5d1   : > { %v3237_v37 = vpack.c.bf16 %v3058_v13, %v3058_v13  ;;  %v3451_v26 = vadd.f32 %v3450_v23, %v3334_v33 }
 0x5d3   : > { %v3523_v62 = vunpack.c.l.b16 %v3237_v37 }
 0x5d5   : > { %v3531_v17 = vpack.c.b16 %v3523_v62, %v3522_v57  ;;  %v3336_v56 = vpop.f32.mrf.mxu3 }
 0x5d7   : > { %4157 = vmatmul.msk.bf16.gmra.mxu1 %vm1432_vm2, %v3531_v17  ;;  %v3702_v47 = vpop.f32.mrf.mxu2 }
 0x5d8   : > { %v3452_v4 = vpop.f32.mrf.mxu0  ;;  %v3568_v28 = vpop.f32.mrf.mxu1 }
 0x5d9   : > { %v3608_v22 = vadd.f32 %v3568_v28, %v3451_v26  ;;  %v3453_v27 = vadd.f32 %v3452_v4, %v3336_v56 }
 0x5db   : > { %v3742_v7 = vadd.f32 %v3702_v47, %v3608_v22 }
 0x5dd   : > { %v3762_v18 = vadd.f32 %v6607_v48, %v3742_v7 }
 0x5df   : > { %3778 = vst [vmem:[%s6610_s16] sm:$0xff] %v3762_v18  ;;  %v3704_v31 = vpop.f32.mrf.mxu2 }
 0x5e0   : > { %v3455_v36 = vpop.f32.mrf.mxu0  ;;  %v3570_v40 = vpop.f32.mrf.mxu1 }
 0x5e1   : > { %v3609_v42 = vadd.f32 %v3570_v40, %v3453_v27 }
 0x5e3   : > { %v3743_v15 = vadd.f32 %v3704_v31, %v3609_v42 }
 0x5e5   : > { %v3763_v32 = vadd.f32 %v6607_v48, %v3743_v15 }
 0x5e7   : > { %3779 = vst [vmem:[%s6610_s16 + $0x8] sm:$0xff] %v3763_v32  ;;  %v3707_v25 = vpop.f32.mrf.mxu2 }
 0x5e8   : > { %v3457_v29 = vpop.f32.mrf.mxu0  ;;  %v3573_v9 = vpop.f32.mrf.mxu1 }
 0x5ea   : > { %v3339_v34 = vpop.f32.mrf.mxu3 }
 0x5eb   : > { %v3456_v0 = vadd.f32 %v3455_v36, %v3339_v34 }
 0x5ed   : > { %v3610_v46 = vadd.f32 %v3573_v9, %v3456_v0 }
 0x5ef   : > { %v3744_v3 = vadd.f32 %v3707_v25, %v3610_v46  ;;  %v3709_v11 = vpop.f32.mrf.mxu2 }
 0x5f0   : > { %v3460_v12 = vpop.f32.mrf.mxu0  ;;  %v3575_v44 = vpop.f32.mrf.mxu1 }
 0x5f1   : > { %v3764_v14 = vadd.f32 %v6607_v48, %v3744_v3 }
 0x5f2   : > { %v3341_v41 = vpop.f32.mrf.mxu3 }
 0x5f3   : > { %3780 = vst [vmem:[%s6610_s16 + $0x10] sm:$0xff] %v3764_v14  ;;  %v3458_v24 = vadd.f32 %v3457_v29, %v3341_v41 }
 0x5f5   : > { %v3611_v49 = vadd.f32 %v3575_v44, %v3458_v24 }
 0x5f7   : > { %v3745_v38 = vadd.f32 %v3709_v11, %v3611_v49  ;;  %v3712_v5 = vpop.f32.mrf.mxu2 }
 0x5f8   : > { %v3462_v60 = vpop.f32.mrf.mxu0  ;;  %v3578_v51 = vpop.f32.mrf.mxu1 }
 0x5f9   : > { %v3765_v50 = vadd.f32 %v6607_v48, %v3745_v38 }
 0x5fa   : > { %v3344_v21 = vpop.f32.mrf.mxu3 }
 0x5fb   : > { %3781 = vst [vmem:[%s6610_s16 + $0x18] sm:$0xff] %v3765_v50  ;;  %v3461_v59 = vadd.f32 %v3460_v12, %v3344_v21 }
 0x5fd   : > { %v3612_v35 = vadd.f32 %v3578_v51, %v3461_v59 }
 0x5ff   : > { %v3746_v55 = vadd.f32 %v3712_v5, %v3612_v35  ;;  %v3714_v19 = vpop.f32.mrf.mxu2 }
 0x600   : > { %v3465_v30 = vpop.f32.mrf.mxu0  ;;  %v3580_v6 = vpop.f32.mrf.mxu1 }
 0x601   : > { %v3766_v10 = vadd.f32 %v6607_v48, %v3746_v55 }
 0x602   : > { %v3346_v54 = vpop.f32.mrf.mxu3 }
 0x603   : > { %3782 = vst [vmem:[%s6610_s16 + $0x20] sm:$0xff] %v3766_v10  ;;  %v3463_v53 = vadd.f32 %v3462_v60, %v3346_v54 }
 0x605   : > { %v3613_v2 = vadd.f32 %v3580_v6, %v3463_v53 }
 0x607   : > { %v3747_v58 = vadd.f32 %v3714_v19, %v3613_v2 }
 0x608   : > { %v3467_v52 = vpop.f32.mrf.mxu0  ;;  %v3583_v39 = vpop.f32.mrf.mxu1 }
 0x609   : > { %v3767_v20 = vadd.f32 %v6607_v48, %v3747_v58 }
 0x60a   : > { %v3349_v8 = vpop.f32.mrf.mxu3 }
 0x60b   : > { %3783 = vst [vmem:[%s6610_s16 + $0x28] sm:$0xff] %v3767_v20  ;;  %v3466_v16 = vadd.f32 %v3465_v30, %v3349_v8 }
 0x60d   : > { %v3614_v61 = vadd.f32 %v3583_v39, %v3466_v16 }
 0x610   : > { %v3717_v45 = vpop.f32.mrf.mxu2  ;;  %v3470_v1 = vpop.f32.mrf.mxu0 }
 0x611   : > { %v3748_v43 = vadd.f32 %v3717_v45, %v3614_v61  ;;  %v3585_v37 = vpop.f32.mrf.mxu1 }
 0x612   : > { %v3351_v63 = vpop.f32.mrf.mxu3 }
 0x613   : > { %v3768_v13 = vadd.f32 %v6607_v48, %v3748_v43  ;;  %v3468_v23 = vadd.f32 %v3467_v52, %v3351_v63 }
 0x615   : > { %3784 = vst [vmem:[%s6610_s16 + $0x30] sm:$0xff] %v3768_v13  ;;  %v3615_v57 = vadd.f32 %v3585_v37, %v3468_v23 }
 0x618   : > { %v3719_v62 = vpop.f32.mrf.mxu2  ;;  %v3472_v28 = vpop.f32.mrf.mxu0 }
 0x619   : > { %v3749_v33 = vadd.f32 %v3719_v62, %v3615_v57 }
 0x61a   : > { %v3354_v17 = vpop.f32.mrf.mxu3 }
 0x61b   : > { %v3769_v26 = vadd.f32 %v6607_v48, %v3749_v33  ;;  %v3471_v4 = vadd.f32 %v3470_v1, %v3354_v17 }
 0x61c   : > { %v3588_v22 = vpop.f32.mrf.mxu1 }
 0x61d   : > { %3785 = vst [vmem:[%s6610_s16 + $0x38] sm:$0xff] %v3769_v26  ;;  %v3616_v47 = vadd.f32 %v3588_v22, %v3471_v4 }
 0x620   : > { %v3722_v7 = vpop.f32.mrf.mxu2  ;;  %v3475_v42 = vpop.f32.mrf.mxu0 }
 0x621   : > { %v3750_v18 = vadd.f32 %v3722_v7, %v3616_v47 }
 0x622   : > { %v3356_v56 = vpop.f32.mrf.mxu3 }
 0x623   : > { %v3770_v27 = vadd.f32 %v6607_v48, %v3750_v18  ;;  %v3473_v36 = vadd.f32 %v3472_v28, %v3356_v56 }
 0x624   : > { %v3590_v40 = vpop.f32.mrf.mxu1 }
 0x625   : > { %3786 = vst [vmem:[%s6610_s16 + $0x40] sm:$0xff] %v3770_v27  ;;  %v3617_v31 = vadd.f32 %v3590_v40, %v3473_v36 }
 0x628   : > { %v3724_v15 = vpop.f32.mrf.mxu2  ;;  %v3477_v46 = vpop.f32.mrf.mxu0 }
 0x629   : > { %v3751_v32 = vadd.f32 %v3724_v15, %v3617_v31 }
 0x62b   : > { %v3359_v29 = vpop.f32.mrf.mxu3  ;;  %v3771_v9 = vadd.f32 %v6607_v48, %v3751_v32 }
 0x62c   : > { %v3476_v25 = vadd.f32 %v3475_v42, %v3359_v29  ;;  %v3593_v34 = vpop.f32.mrf.mxu1 }
 0x62d   : > { %3787 = vst [vmem:[%s6610_s16 + $0x48] sm:$0xff] %v3771_v9 }
 0x62e   : > { %v3618_v0 = vadd.f32 %v3593_v34, %v3476_v25 }
 0x630   : > { %v3727_v3 = vpop.f32.mrf.mxu2 }
 0x631   : > { %v3752_v12 = vadd.f32 %v3727_v3, %v3618_v0 }
 0x633   : > { %v3361_v44 = vpop.f32.mrf.mxu3  ;;  %v3772_v14 = vadd.f32 %v6607_v48, %v3752_v12  ;;  %v3480_v49 = vpop.f32.mrf.mxu0 }
 0x634   : > { %v3478_v11 = vadd.f32 %v3477_v46, %v3361_v44  ;;  %v3595_v41 = vpop.f32.mrf.mxu1 }
 0x635   : > { %3788 = vst [vmem:[%s6610_s16 + $0x50] sm:$0xff] %v3772_v14 }
 0x636   : > { %v3619_v24 = vadd.f32 %v3595_v41, %v3478_v11 }
 0x638   : > { %v3729_v38 = vpop.f32.mrf.mxu2 }
 0x639   : > { %v3753_v60 = vadd.f32 %v3729_v38, %v3619_v24 }
 0x63b   : > { %v3364_v51 = vpop.f32.mrf.mxu3  ;;  %v3773_v50 = vadd.f32 %v6607_v48, %v3753_v60  ;;  %v3482_v30 = vpop.f32.mrf.mxu0 }
 0x63c   : > { %v3481_v21 = vadd.f32 %v3480_v49, %v3364_v51  ;;  %v3598_v59 = vpop.f32.mrf.mxu1 }
 0x63d   : > { %3789 = vst [vmem:[%s6610_s16 + $0x58] sm:$0xff] %v3773_v50 }
 0x63e   : > { %v3620_v5 = vadd.f32 %v3598_v59, %v3481_v21 }
 0x641   : > { %v3732_v35 = vpop.f32.mrf.mxu2 }
 0x642   : > { %v3754_v55 = vadd.f32 %v3732_v35, %v3620_v5 }
 0x643   : > { %v3366_v6 = vpop.f32.mrf.mxu3 }
 0x644   : > { %v3774_v10 = vadd.f32 %v6607_v48, %v3754_v55  ;;  %v3483_v54 = vadd.f32 %v3482_v30, %v3366_v6  ;;  %v3600_v53 = vpop.f32.mrf.mxu1 }
 0x646   : > { %3790 = vst [vmem:[%s6610_s16 + $0x60] sm:$0xff] %v3774_v10  ;;  %v3621_v2 = vadd.f32 %v3600_v53, %v3483_v54 }
 0x649   : > { %v3734_v19 = vpop.f32.mrf.mxu2  ;;  %v3485_v20 = vpop.f32.mrf.mxu0 }
 0x64a   : > { %v3755_v58 = vadd.f32 %v3734_v19, %v3621_v2 }
 0x64c   : > { %v3775_v52 = vadd.f32 %v6607_v48, %v3755_v58 }
 0x64e   : > { %3791 = vst [vmem:[%s6610_s16 + $0x68] sm:$0xff] %v3775_v52 }
 0x651   : > { %v3737_v16 = vpop.f32.mrf.mxu2  ;;  %v3487_v63 = vpop.f32.mrf.mxu0 }
 0x652   : > { %v3369_v39 = vpop.f32.mrf.mxu3 }
 0x653   : > { %v3486_v8 = vadd.f32 %v3485_v20, %v3369_v39 }
 0x654   : > { %v3603_v61 = vpop.f32.mrf.mxu1 }
 0x655   : > { %v3622_v45 = vadd.f32 %v3603_v61, %v3486_v8 }
 0x657   : > { %v3756_v43 = vadd.f32 %v3737_v16, %v3622_v45 }
 0x659   : > { %v3776_v1 = vadd.f32 %v6607_v48, %v3756_v43  ;;  %v3739_v62 = vpop.f32.mrf.mxu2 }
 0x65a   : > { %v3371_v13 = vpop.f32.mrf.mxu3 }
 0x65b   : > { %3792 = vst [vmem:[%s6610_s16 + $0x70] sm:$0xff] %v3776_v1  ;;  %v3488_v23 = vadd.f32 %v3487_v63, %v3371_v13 }
 0x65c   : > { %v3605_v37 = vpop.f32.mrf.mxu1 }
 0x65d   : > { %v3623_v57 = vadd.f32 %v3605_v37, %v3488_v23 }
 0x65f   : > { %v3757_v33 = vadd.f32 %v3739_v62, %v3623_v57 }
 0x661   : > { %v3777_v17 = vadd.f32 %v6607_v48, %v3757_v33 }
 0x663   : > { %3793 = vst [vmem:[%s6610_s16 + $0x78] sm:$0xff] %v3777_v17 }
 0x664   : > { %4644 = shalt.err (!%p4641_p10)
}
 0x665   : > { %s4697_s23 = smov 128   ;;  %s4698_s16 = smov 8  }
 0x666   : > { %4240 = dma.vmem_to_hbm [thread:$0]  (%p4806_p7), %s3808_s10, 2048, %s3810_s11, %s3795_s28, %s4697_s23, %s4697_s23, %s4698_s16  }
 0x667 PF: > { %s3824_s17 = sand.u32 1, %s4675_s24   ;;  %p6918_p12 = scmp.ge.s32.totalorder %s4687_s27, 2 }
 0x668   : > { %s3825_s18 = scalar_lea.sflag [#allocation4], %s3824_s17 }
 0x669   : > { %p4251_p13 = pnand %p6918_p12, %p4774_p6 }
 0x66b   : > { %p4252_p0 = pneg %p4251_p13 }
 0x66d   : > { %4670 = dma.done.wait (%p4252_p0), %s3825_s18, 2048  }
 0x66e   : > { %4672 = vsyncadd (%p4252_p0), %s3825_s18, 4294965248  ;;  %p21_p3 = scmp.ge.s32.totalorder %s4792_s15, 4   ;;  %s6919_s24 = smov %s4679_s25 }
 0x66f   : > { %s6920_s25 = smov %s4683_s26  ;;  %s6921_s26 = smov %s4802_s20 }
 0x670   : > { %s6922_s27 = smov %s4792_s15  ;;  %23 = sbr.rel (!%p21_p3) target bundleno = 8 (0x8), region = 100 }
 0x675   :  { %3831 = vsyncpa [#allocation3], 1 }
 0x676   :  { %3833 = vsyncpa [#allocation3 + $0x1], 1 }
 0x677   :  { %3834 = vsyncpa [#allocation6], 1 }
 0x678   :  { %3835 = vsyncpa [#allocation4], 1 }
 0x679   :  { %3837 = vsyncpa [#allocation4 + $0x1], 1 }

</bundles_post_ra>
